<compile_context>
chip_gen: v5e
topology: v5e:2x2
jax: 0.10.0
libtpu: 0.0.40
codegen_flags: <defaults>
</compile_context>

<pallas_src>
import jax
import jax.numpy as jnp
from jax.experimental import pallas as pl
from jax.experimental.pallas import tpu as pltpu


def srn_kernel(xproj_ref, wh_ref, last_ref, out_ref, h_ref):
    """One (batch-tile, time-chunk) grid step of the ReLU recurrence.

    xproj_ref: [TC, TB, H_pad]  x @ W_ih^T + b_ih + b_hh for this time chunk
    wh_ref:    [H_pad, H_pad]   W_hh^T (loop invariant)
    last_ref:  [TB, 1]          int32 lengths - 1 (padded rows hold -1)
    out_ref:   [TB, H_pad]      f32, resident across the time axis; accumulates
                                the hidden state selected at t == last
    h_ref:     [TB, H_pad]      f32 scratch carrying h across time chunks
    """
    ti = pl.program_id(1)
    tc = xproj_ref.shape[0]

    @pl.when(ti == 0)
    def _():
        h_ref[...] = jnp.zeros_like(h_ref)
        out_ref[...] = jnp.zeros_like(out_ref)

    wh = wh_ref[...]              # hoist the weight load out of the time loop
    last = last_ref[...]          # [TB, 1] int32
    cdt = wh.dtype
    t0 = ti * tc

    def step(i, carry):
        h, sel = carry
        pre = xproj_ref[i].astype(jnp.float32) + jnp.dot(
            h.astype(cdt), wh, preferred_element_type=jnp.float32)
        h_new = jnp.maximum(pre, 0.0)                      # ReLU
        keep = (last == t0 + i).astype(jnp.float32)        # [TB, 1]
        sel = sel + keep * h_new                           # fused select-FMA
        return h_new, sel

    # Partial unroll lets the scheduler overlap the next x_proj load and the
    # select FMA (VPU) with the MXU push/drain of the recurrence matmul.
    unroll = True if tc <= 16 else 4
    h, sel = jax.lax.fori_loop(0, tc, step, (h_ref[...], out_ref[...]),
                               unroll=unroll)
    h_ref[...] = h
    out_ref[...] = sel


def _round_up(x, m):
    return ((x + m - 1) // m) * m


def srn_acceptor(xs, lengths, params, *, compute_dtype=jnp.bfloat16, tb=128):
    """xs: int32 [B, T] tokens, lengths: int32 [B]. Returns float32 [B, 2]."""
    B, T = xs.shape
    H, A = params["W_ih"].shape

    itemsize = jnp.dtype(compute_dtype).itemsize
    H_pad = _round_up(H, 128)          # lane-dense hidden width
    B_pad = _round_up(B, tb)           # TB=128 feeds full MXU rows per step

    # Time-chunk length: keep the x_proj block around ~2 MiB per buffer so
    # VMEM use is independent of the full sequence length (v7x: 64 MiB).
    tc = (2 * 1024 * 1024) // max(1, tb * H_pad * itemsize)
    tc = max(8, min(128, (tc // 8) * 8))
    tc = min(tc, _round_up(T, 8))
    T_pad = _round_up(T, tc)

    # --- XLA glue -----------------------------------------------------------
    # Embedding gather instead of a one-hot matmul; both biases folded into the
    # table; built time-major directly (gather of xs.T, no [B,T,H] transpose).
    emb = params["W_ih"].T + (params["b_ih"] + params["b_hh"])[None, :]
    emb = emb.astype(compute_dtype)                        # [A, H]
    x_proj = emb[jnp.transpose(xs.astype(jnp.int32))]      # [T, B, H] time-major
    x_proj = jnp.pad(x_proj, ((0, T_pad - T), (0, B_pad - B), (0, H_pad - H)))

    wh = jnp.pad(params["W_hh"].T.astype(compute_dtype),
                 ((0, H_pad - H), (0, H_pad - H)))         # [H_pad, H_pad]

    # lengths - 1; padded rows get -1 so they never match any t >= 0.
    # NOTE: lengths outside [1, T] select nothing (output collapses to b_lin);
    # the PyTorch reference's h[lengths-1] indexing would wrap/clamp instead.
    last = lengths.astype(jnp.int32) - 1
    last = jnp.pad(last, (0, B_pad - B), constant_values=-1)[:, None]

    num_b = B_pad // tb
    num_t = T_pad // tc

    # Explicit VMEM budget (x_proj double-buffered, wh, output, h scratch, last).
    vmem_bytes = (2 * tc * tb * H_pad * itemsize
                  + 2 * H_pad * H_pad * itemsize
                  + 2 * tb * H_pad * 4
                  + tb * H_pad * 4
                  + 2 * tb * 128 * 4)
    vmem_limit = int(min(max(2 * vmem_bytes, 32 * 1024 * 1024),
                         64 * 1024 * 1024))

    def call(wh_spec):
        return pl.pallas_call(
            srn_kernel,
            out_shape=jax.ShapeDtypeStruct((B_pad, H_pad), jnp.float32),
            grid=(num_b, num_t),
            in_specs=[
                pl.BlockSpec((tc, tb, H_pad), lambda b, t: (t, b, 0)),
                wh_spec,
                pl.BlockSpec((tb, 1), lambda b, t: (b, 0)),
            ],
            out_specs=pl.BlockSpec((tb, H_pad), lambda b, t: (b, 0)),
            scratch_shapes=[pltpu.VMEM((tb, H_pad), jnp.float32)],
            compiler_params=pltpu.CompilerParams(
                dimension_semantics=("parallel", "arbitrary"),
                vmem_limit_bytes=vmem_limit),
        )(x_proj, wh, last)

    try:
        # W_hh^T is loop-invariant (constant index_map): one VMEM buffer is
        # enough and saves H_pad^2 bytes of headroom against v7x's 64 MiB.
        sel = call(pl.BlockSpec((H_pad, H_pad), lambda b, t: (0, 0),
                                pipeline_mode=pl.Buffered(1)))
    except Exception:  # fallback if pipeline_mode/Buffered(1) is unsupported
        sel = call(pl.BlockSpec((H_pad, H_pad), lambda b, t: (0, 0)))

    # Final tiny [H, 2] projection stays in XLA (lane-dense kernel output).
    h_last = sel[:B, :H]
    return h_last @ params["W_lin"].T + params["b_lin"]


def srn_reference(xs, lengths, params):
    """Pure-JAX reference mirroring the PyTorch forward (f32)."""
    B, T = xs.shape
    H, A = params["W_ih"].shape
    x_onehot = jax.nn.one_hot(xs, A, dtype=jnp.float32)        # [B, T, A]
    b = params["b_ih"] + params["b_hh"]

    def step(h, x_t):
        h_new = jnp.maximum(x_t @ params["W_ih"].T + h @ params["W_hh"].T + b, 0.0)
        return h_new, h_new

    h0 = jnp.zeros((B, H), jnp.float32)
    _, hs = jax.lax.scan(step, h0, jnp.transpose(x_onehot, (1, 0, 2)))  # [T, B, H]
    hs = jnp.transpose(hs, (1, 0, 2))                          # [B, T, H]
    h_last = hs[jnp.arange(B), lengths - 1, :]                 # [B, H]
    return h_last @ params["W_lin"].T + params["b_lin"]


def init_params(key, alphabet_size, hidden_size):
    """Deterministic init, shapes matching nn.RNN + nn.Linear."""
    ks = jax.random.split(key, 6)
    s = 1.0 / jnp.sqrt(hidden_size)
    return {
        "W_ih": jax.random.uniform(ks[0], (hidden_size, alphabet_size), jnp.float32, -s, s),
        "W_hh": jax.random.uniform(ks[1], (hidden_size, hidden_size), jnp.float32, -s, s),
        "b_ih": jax.random.uniform(ks[2], (hidden_size,), jnp.float32, -s, s),
        "b_hh": jax.random.uniform(ks[3], (hidden_size,), jnp.float32, -s, s),
        "W_lin": jax.random.uniform(ks[4], (2, hidden_size), jnp.float32, -s, s),
        "b_lin": jax.random.uniform(ks[5], (2,), jnp.float32, -s, s),
    }


if __name__ == "__main__":
    B, T, A, H = 2, 8, 4, 32
    key = jax.random.PRNGKey(0)
    k_tok, k_len, k_par = jax.random.split(key, 3)

    xs = jax.random.randint(k_tok, (B, T), 0, A, dtype=jnp.int32)         # [B, T]
    lengths = jax.random.randint(k_len, (B,), 1, T + 1, dtype=jnp.int32)  # [B]
    params = init_params(k_par, A, H)

    ref = jax.block_until_ready(srn_reference(xs, lengths, params))

    # f32 compute path: exact agreement with the f32 reference.
    out_f32 = jax.block_until_ready(
        srn_acceptor(xs, lengths, params, compute_dtype=jnp.float32))
    assert out_f32.shape == (B, 2)
    assert jnp.allclose(out_f32, ref, atol=1e-4, rtol=1e-4), (out_f32, ref)

    # bf16 weights/activations with f32 accumulation: fast MXU path; tolerance
    # relaxed accordingly (bf16 cannot match the f32 reference at 1e-5).
    out_bf16 = jax.block_until_ready(
        srn_acceptor(xs, lengths, params, compute_dtype=jnp.bfloat16))
    assert out_bf16.shape == (B, 2)
    assert jnp.allclose(out_bf16, ref, atol=1e-1, rtol=1e-1), (out_bf16, ref)

    print("KERNEL_OK")
</pallas_src>

<mosaic_0001>
module attributes {stable_mosaic.version = 11 : i64} {
  func.func @srn_kernel(%arg0: i32, %arg1: i32, %arg2: memref<8x128x128xf32, #tpu.memory_space<vmem>>, %arg3: memref<128x128xf32, #tpu.memory_space<vmem>>, %arg4: memref<128x1xi32, #tpu.memory_space<vmem>>, %arg5: memref<128x128xf32, #tpu.memory_space<vmem>>, %arg6: memref<128x128xf32, #tpu.memory_space<vmem>>) attributes {dimension_semantics = [#tpu.dimension_semantics<parallel>, #tpu.dimension_semantics<arbitrary>], iteration_bounds = array<i64: 1, 1>, scalar_prefetch = 0 : i64, scratch_operands = 1 : i64, tpu.core_type = #tpu.core_type<tc>, window_params = [{transform_indices = @transform_0, window_bounds = array<i64: 8, 128, 128>}, {pipeline_mode = #tpu.pipeline_mode<synchronous>, transform_indices = @transform_1, window_bounds = array<i64: 128, 128>}, {transform_indices = @transform_2, window_bounds = array<i64: 128, 1>}, {transform_indices = @transform_3, window_bounds = array<i64: 128, 128>}]} {
    %c0_i32 = arith.constant 0 : i32
    %0 = arith.cmpi eq, %arg1, %c0_i32 : i32
    %1 = arith.extui %0 : i1 to i32
    %c0_i32_0 = arith.constant 0 : i32
    %2 = arith.cmpi ne, %1, %c0_i32_0 : i32
    scf.if %2 {
      %cst_45 = arith.constant 0.000000e+00 : f32
      %130 = vector.broadcast %cst_45 : f32 to vector<128x128xf32>
      %c0_46 = arith.constant 0 : index
      %c0_47 = arith.constant 0 : index
      %131 = vector.load %arg6[%c0_46, %c0_47] : memref<128x128xf32, #tpu.memory_space<vmem>>, vector<128x128xf32>
      tpu.vector_store %arg6[%c0_46, %c0_47], %130 {strides = array<i32>} : memref<128x128xf32, #tpu.memory_space<vmem>>, vector<128x128xf32>,
      %cst_48 = arith.constant 0.000000e+00 : f32
      %132 = vector.broadcast %cst_48 : f32 to vector<128x128xf32>
      %c0_49 = arith.constant 0 : index
      %c0_50 = arith.constant 0 : index
      %133 = vector.load %arg5[%c0_49, %c0_50] : memref<128x128xf32, #tpu.memory_space<vmem>>, vector<128x128xf32>
      tpu.vector_store %arg5[%c0_49, %c0_50], %132 {strides = array<i32>} : memref<128x128xf32, #tpu.memory_space<vmem>>, vector<128x128xf32>,
    } else {
    }
    %c0 = arith.constant 0 : index
    %c0_1 = arith.constant 0 : index
    %3 = vector.load %arg3[%c0, %c0_1] : memref<128x128xf32, #tpu.memory_space<vmem>>, vector<128x128xf32>
    %c0_2 = arith.constant 0 : index
    %c0_3 = arith.constant 0 : index
    %4 = vector.load %arg4[%c0_2, %c0_3] : memref<128x1xi32, #tpu.memory_space<vmem>>, vector<128x1xi32>
    %c8_i32 = arith.constant 8 : i32
    %5 = arith.muli %arg1, %c8_i32 : i32
    %c0_4 = arith.constant 0 : index
    %c0_5 = arith.constant 0 : index
    %6 = vector.load %arg6[%c0_4, %c0_5] : memref<128x128xf32, #tpu.memory_space<vmem>>, vector<128x128xf32>
    %c0_6 = arith.constant 0 : index
    %c0_7 = arith.constant 0 : index
    %7 = vector.load %arg5[%c0_6, %c0_7] : memref<128x128xf32, #tpu.memory_space<vmem>>, vector<128x128xf32>
    %c0_i32_8 = arith.constant 0 : i32
    %8 = arith.index_cast %c0_i32_8 : i32 to index
    %c0_9 = arith.constant 0 : index
    %c0_10 = arith.constant 0 : index
    %9 = vector.load %arg2[%8, %c0_9, %c0_10] : memref<8x128x128xf32, #tpu.memory_space<vmem>>, vector<1x128x128xf32>
    %10 = vector.shape_cast %9 : vector<1x128x128xf32> to vector<128x128xf32>
    %cst = arith.constant dense<0.000000e+00> : vector<128x128xf32>
    %11 = tpu.matmul %6, %3, %cst {dimension_numbers = #tpu.dot_dimension_numbers<[1], [0], [0], [1], [0, 0, 1, 1], [], []>} : vector<128x128xf32>, vector<128x128xf32>, vector<128x128xf32> -> vector<128x128xf32>
    %12 = arith.addf %10, %11 : vector<128x128xf32>
    %cst_11 = arith.constant 0.000000e+00 : f32
    %13 = vector.broadcast %cst_11 : f32 to vector<128x128xf32>
    %14 = arith.maximumf %12, %13 : vector<128x128xf32>
    %15 = arith.addi %5, %c0_i32_8 : i32
    %16 = vector.broadcast %15 : i32 to vector<128x1xi32>
    %17 = arith.cmpi eq, %4, %16 : vector<128x1xi32>
    %18 = arith.extui %17 : vector<128x1xi1> to vector<128x1xi32>
    %19 = arith.sitofp %18 : vector<128x1xi32> to vector<128x1xf32>
    %20 = vector.broadcast %19 : vector<128x1xf32> to vector<128x128xf32>
    %21 = arith.mulf %20, %14 : vector<128x128xf32>
    %22 = arith.addf %7, %21 : vector<128x128xf32>
    %c1_i32 = arith.constant 1 : i32
    %23 = arith.index_cast %c1_i32 : i32 to index
    %c0_12 = arith.constant 0 : index
    %c0_13 = arith.constant 0 : index
    %24 = vector.load %arg2[%23, %c0_12, %c0_13] : memref<8x128x128xf32, #tpu.memory_space<vmem>>, vector<1x128x128xf32>
    %25 = vector.shape_cast %24 : vector<1x128x128xf32> to vector<128x128xf32>
    %cst_14 = arith.constant dense<0.000000e+00> : vector<128x128xf32>
    %26 = tpu.matmul %14, %3, %cst_14 {dimension_numbers = #tpu.dot_dimension_numbers<[1], [0], [0], [1], [0, 0, 1, 1], [], []>} : vector<128x128xf32>, vector<128x128xf32>, vector<128x128xf32> -> vector<128x128xf32>
    %27 = arith.addf %25, %26 : vector<128x128xf32>
    %cst_15 = arith.constant 0.000000e+00 : f32
    %28 = vector.broadcast %cst_15 : f32 to vector<128x128xf32>
    %29 = arith.maximumf %27, %28 : vector<128x128xf32>
    %30 = arith.addi %5, %c1_i32 : i32
    %31 = vector.broadcast %30 : i32 to vector<128x1xi32>
    %32 = arith.cmpi eq, %4, %31 : vector<128x1xi32>
    %33 = arith.extui %32 : vector<128x1xi1> to vector<128x1xi32>
    %34 = arith.sitofp %33 : vector<128x1xi32> to vector<128x1xf32>
    %35 = vector.broadcast %34 : vector<128x1xf32> to vector<128x128xf32>
    %36 = arith.mulf %35, %29 : vector<128x128xf32>
    %37 = arith.addf %22, %36 : vector<128x128xf32>
    %c2_i32 = arith.constant 2 : i32
    %38 = arith.index_cast %c2_i32 : i32 to index
    %c0_16 = arith.constant 0 : index
    %c0_17 = arith.constant 0 : index
    %39 = vector.load %arg2[%38, %c0_16, %c0_17] : memref<8x128x128xf32, #tpu.memory_space<vmem>>, vector<1x128x128xf32>
    %40 = vector.shape_cast %39 : vector<1x128x128xf32> to vector<128x128xf32>
    %cst_18 = arith.constant dense<0.000000e+00> : vector<128x128xf32>
    %41 = tpu.matmul %29, %3, %cst_18 {dimension_numbers = #tpu.dot_dimension_numbers<[1], [0], [0], [1], [0, 0, 1, 1], [], []>} : vector<128x128xf32>, vector<128x128xf32>, vector<128x128xf32> -> vector<128x128xf32>
    %42 = arith.addf %40, %41 : vector<128x128xf32>
    %cst_19 = arith.constant 0.000000e+00 : f32
    %43 = vector.broadcast %cst_19 : f32 to vector<128x128xf32>
    %44 = arith.maximumf %42, %43 : vector<128x128xf32>
    %45 = arith.addi %5, %c2_i32 : i32
    %46 = vector.broadcast %45 : i32 to vector<128x1xi32>
    %47 = arith.cmpi eq, %4, %46 : vector<128x1xi32>
    %48 = arith.extui %47 : vector<128x1xi1> to vector<128x1xi32>
    %49 = arith.sitofp %48 : vector<128x1xi32> to vector<128x1xf32>
    %50 = vector.broadcast %49 : vector<128x1xf32> to vector<128x128xf32>
    %51 = arith.mulf %50, %44 : vector<128x128xf32>
    %52 = arith.addf %37, %51 : vector<128x128xf32>
    %c3_i32 = arith.constant 3 : i32
    %53 = arith.index_cast %c3_i32 : i32 to index
    %c0_20 = arith.constant 0 : index
    %c0_21 = arith.constant 0 : index
    %54 = vector.load %arg2[%53, %c0_20, %c0_21] : memref<8x128x128xf32, #tpu.memory_space<vmem>>, vector<1x128x128xf32>
    %55 = vector.shape_cast %54 : vector<1x128x128xf32> to vector<128x128xf32>
    %cst_22 = arith.constant dense<0.000000e+00> : vector<128x128xf32>
    %56 = tpu.matmul %44, %3, %cst_22 {dimension_numbers = #tpu.dot_dimension_numbers<[1], [0], [0], [1], [0, 0, 1, 1], [], []>} : vector<128x128xf32>, vector<128x128xf32>, vector<128x128xf32> -> vector<128x128xf32>
    %57 = arith.addf %55, %56 : vector<128x128xf32>
    %cst_23 = arith.constant 0.000000e+00 : f32
    %58 = vector.broadcast %cst_23 : f32 to vector<128x128xf32>
    %59 = arith.maximumf %57, %58 : vector<128x128xf32>
    %60 = arith.addi %5, %c3_i32 : i32
    %61 = vector.broadcast %60 : i32 to vector<128x1xi32>
    %62 = arith.cmpi eq, %4, %61 : vector<128x1xi32>
    %63 = arith.extui %62 : vector<128x1xi1> to vector<128x1xi32>
    %64 = arith.sitofp %63 : vector<128x1xi32> to vector<128x1xf32>
    %65 = vector.broadcast %64 : vector<128x1xf32> to vector<128x128xf32>
    %66 = arith.mulf %65, %59 : vector<128x128xf32>
    %67 = arith.addf %52, %66 : vector<128x128xf32>
    %c4_i32 = arith.constant 4 : i32
    %68 = arith.index_cast %c4_i32 : i32 to index
    %c0_24 = arith.constant 0 : index
    %c0_25 = arith.constant 0 : index
    %69 = vector.load %arg2[%68, %c0_24, %c0_25] : memref<8x128x128xf32, #tpu.memory_space<vmem>>, vector<1x128x128xf32>
    %70 = vector.shape_cast %69 : vector<1x128x128xf32> to vector<128x128xf32>
    %cst_26 = arith.constant dense<0.000000e+00> : vector<128x128xf32>
    %71 = tpu.matmul %59, %3, %cst_26 {dimension_numbers = #tpu.dot_dimension_numbers<[1], [0], [0], [1], [0, 0, 1, 1], [], []>} : vector<128x128xf32>, vector<128x128xf32>, vector<128x128xf32> -> vector<128x128xf32>
    %72 = arith.addf %70, %71 : vector<128x128xf32>
    %cst_27 = arith.constant 0.000000e+00 : f32
    %73 = vector.broadcast %cst_27 : f32 to vector<128x128xf32>
    %74 = arith.maximumf %72, %73 : vector<128x128xf32>
    %75 = arith.addi %5, %c4_i32 : i32
    %76 = vector.broadcast %75 : i32 to vector<128x1xi32>
    %77 = arith.cmpi eq, %4, %76 : vector<128x1xi32>
    %78 = arith.extui %77 : vector<128x1xi1> to vector<128x1xi32>
    %79 = arith.sitofp %78 : vector<128x1xi32> to vector<128x1xf32>
    %80 = vector.broadcast %79 : vector<128x1xf32> to vector<128x128xf32>
    %81 = arith.mulf %80, %74 : vector<128x128xf32>
    %82 = arith.addf %67, %81 : vector<128x128xf32>
    %c5_i32 = arith.constant 5 : i32
    %83 = arith.index_cast %c5_i32 : i32 to index
    %c0_28 = arith.constant 0 : index
    %c0_29 = arith.constant 0 : index
    %84 = vector.load %arg2[%83, %c0_28, %c0_29] : memref<8x128x128xf32, #tpu.memory_space<vmem>>, vector<1x128x128xf32>
    %85 = vector.shape_cast %84 : vector<1x128x128xf32> to vector<128x128xf32>
    %cst_30 = arith.constant dense<0.000000e+00> : vector<128x128xf32>
    %86 = tpu.matmul %74, %3, %cst_30 {dimension_numbers = #tpu.dot_dimension_numbers<[1], [0], [0], [1], [0, 0, 1, 1], [], []>} : vector<128x128xf32>, vector<128x128xf32>, vector<128x128xf32> -> vector<128x128xf32>
    %87 = arith.addf %85, %86 : vector<128x128xf32>
    %cst_31 = arith.constant 0.000000e+00 : f32
    %88 = vector.broadcast %cst_31 : f32 to vector<128x128xf32>
    %89 = arith.maximumf %87, %88 : vector<128x128xf32>
    %90 = arith.addi %5, %c5_i32 : i32
    %91 = vector.broadcast %90 : i32 to vector<128x1xi32>
    %92 = arith.cmpi eq, %4, %91 : vector<128x1xi32>
    %93 = arith.extui %92 : vector<128x1xi1> to vector<128x1xi32>
    %94 = arith.sitofp %93 : vector<128x1xi32> to vector<128x1xf32>
    %95 = vector.broadcast %94 : vector<128x1xf32> to vector<128x128xf32>
    %96 = arith.mulf %95, %89 : vector<128x128xf32>
    %97 = arith.addf %82, %96 : vector<128x128xf32>
    %c6_i32 = arith.constant 6 : i32
    %98 = arith.index_cast %c6_i32 : i32 to index
    %c0_32 = arith.constant 0 : index
    %c0_33 = arith.constant 0 : index
    %99 = vector.load %arg2[%98, %c0_32, %c0_33] : memref<8x128x128xf32, #tpu.memory_space<vmem>>, vector<1x128x128xf32>
    %100 = vector.shape_cast %99 : vector<1x128x128xf32> to vector<128x128xf32>
    %cst_34 = arith.constant dense<0.000000e+00> : vector<128x128xf32>
    %101 = tpu.matmul %89, %3, %cst_34 {dimension_numbers = #tpu.dot_dimension_numbers<[1], [0], [0], [1], [0, 0, 1, 1], [], []>} : vector<128x128xf32>, vector<128x128xf32>, vector<128x128xf32> -> vector<128x128xf32>
    %102 = arith.addf %100, %101 : vector<128x128xf32>
    %cst_35 = arith.constant 0.000000e+00 : f32
    %103 = vector.broadcast %cst_35 : f32 to vector<128x128xf32>
    %104 = arith.maximumf %102, %103 : vector<128x128xf32>
    %105 = arith.addi %5, %c6_i32 : i32
    %106 = vector.broadcast %105 : i32 to vector<128x1xi32>
    %107 = arith.cmpi eq, %4, %106 : vector<128x1xi32>
    %108 = arith.extui %107 : vector<128x1xi1> to vector<128x1xi32>
    %109 = arith.sitofp %108 : vector<128x1xi32> to vector<128x1xf32>
    %110 = vector.broadcast %109 : vector<128x1xf32> to vector<128x128xf32>
    %111 = arith.mulf %110, %104 : vector<128x128xf32>
    %112 = arith.addf %97, %111 : vector<128x128xf32>
    %c7_i32 = arith.constant 7 : i32
    %113 = arith.index_cast %c7_i32 : i32 to index
    %c0_36 = arith.constant 0 : index
    %c0_37 = arith.constant 0 : index
    %114 = vector.load %arg2[%113, %c0_36, %c0_37] : memref<8x128x128xf32, #tpu.memory_space<vmem>>, vector<1x128x128xf32>
    %115 = vector.shape_cast %114 : vector<1x128x128xf32> to vector<128x128xf32>
    %cst_38 = arith.constant dense<0.000000e+00> : vector<128x128xf32>
    %116 = tpu.matmul %104, %3, %cst_38 {dimension_numbers = #tpu.dot_dimension_numbers<[1], [0], [0], [1], [0, 0, 1, 1], [], []>} : vector<128x128xf32>, vector<128x128xf32>, vector<128x128xf32> -> vector<128x128xf32>
    %117 = arith.addf %115, %116 : vector<128x128xf32>
    %cst_39 = arith.constant 0.000000e+00 : f32
    %118 = vector.broadcast %cst_39 : f32 to vector<128x128xf32>
    %119 = arith.maximumf %117, %118 : vector<128x128xf32>
    %120 = arith.addi %5, %c7_i32 : i32
    %121 = vector.broadcast %120 : i32 to vector<128x1xi32>
    %122 = arith.cmpi eq, %4, %121 : vector<128x1xi32>
    %123 = arith.extui %122 : vector<128x1xi1> to vector<128x1xi32>
    %124 = arith.sitofp %123 : vector<128x1xi32> to vector<128x1xf32>
    %125 = vector.broadcast %124 : vector<128x1xf32> to vector<128x128xf32>
    %126 = arith.mulf %125, %119 : vector<128x128xf32>
    %127 = arith.addf %112, %126 : vector<128x128xf32>
    %c8_i32_40 = arith.constant 8 : i32
    %c0_41 = arith.constant 0 : index
    %c0_42 = arith.constant 0 : index
    %128 = vector.load %arg6[%c0_41, %c0_42] : memref<128x128xf32, #tpu.memory_space<vmem>>, vector<128x128xf32>
    tpu.vector_store %arg6[%c0_41, %c0_42], %119 {strides = array<i32>} : memref<128x128xf32, #tpu.memory_space<vmem>>, vector<128x128xf32>,
    %c0_43 = arith.constant 0 : index
    %c0_44 = arith.constant 0 : index
    %129 = vector.load %arg5[%c0_43, %c0_44] : memref<128x128xf32, #tpu.memory_space<vmem>>, vector<128x128xf32>
    tpu.vector_store %arg5[%c0_43, %c0_44], %127 {strides = array<i32>} : memref<128x128xf32, #tpu.memory_space<vmem>>, vector<128x128xf32>,
    return
  }
  func.func @transform_0(%arg0: i32, %arg1: i32) -> (i32, i32, i32) {
    %c0_i32 = arith.constant 0 : i32
    %c0_i32_0 = arith.constant 0 : i32
    return %arg1, %arg0, %c0_i32 : i32, i32, i32
  }
  func.func @transform_1(%arg0: i32, %arg1: i32) -> (i32, i32) {
    %c0_i32 = arith.constant 0 : i32
    %c0_i32_0 = arith.constant 0 : i32
    %c0_i32_1 = arith.constant 0 : i32
    return %c0_i32, %c0_i32_0 : i32, i32
  }
  func.func @transform_2(%arg0: i32, %arg1: i32) -> (i32, i32) {
    %c0_i32 = arith.constant 0 : i32
    %c0_i32_0 = arith.constant 0 : i32
    return %arg0, %c0_i32 : i32, i32
  }
  func.func @transform_3(%arg0: i32, %arg1: i32) -> (i32, i32) {
    %c0_i32 = arith.constant 0 : i32
    %c0_i32_0 = arith.constant 0 : i32
    return %arg0, %c0_i32 : i32, i32
  }
}

module attributes {stable_mosaic.version = 11 : i64} {
  func.func @srn_kernel(%arg0: i32, %arg1: i32, %arg2: memref<8x128x128xf32, #tpu.memory_space<vmem>>, %arg3: memref<128x128xf32, #tpu.memory_space<vmem>>, %arg4: memref<128x1xi32, #tpu.memory_space<vmem>>, %arg5: memref<128x128xf32, #tpu.memory_space<vmem>>, %arg6: memref<128x128xf32, #tpu.memory_space<vmem>>) attributes {dimension_semantics = [#tpu.dimension_semantics<parallel>, #tpu.dimension_semantics<arbitrary>], iteration_bounds = array<i64: 1, 1>, scalar_prefetch = 0 : i64, scratch_operands = 1 : i64, tpu.core_type = #tpu.core_type<tc>, window_params = [{transform_indices = @transform_0, window_bounds = array<i64: 8, 128, 128>}, {pipeline_mode = #tpu.pipeline_mode<synchronous>, transform_indices = @transform_1, window_bounds = array<i64: 128, 128>}, {transform_indices = @transform_2, window_bounds = array<i64: 128, 1>}, {transform_indices = @transform_3, window_bounds = array<i64: 128, 128>}]} {
    %c0_i32 = arith.constant 0 : i32
    %0 = arith.cmpi eq, %arg1, %c0_i32 : i32
    %1 = arith.extui %0 : i1 to i32
    %c0_i32_0 = arith.constant 0 : i32
    %2 = arith.cmpi ne, %1, %c0_i32_0 : i32
    scf.if %2 {
      %cst_45 = arith.constant 0.000000e+00 : f32
      %130 = vector.broadcast %cst_45 : f32 to vector<128x128xf32>
      %c0_46 = arith.constant 0 : index
      %c0_47 = arith.constant 0 : index
      %131 = vector.load %arg6[%c0_46, %c0_47] : memref<128x128xf32, #tpu.memory_space<vmem>>, vector<128x128xf32>
      tpu.vector_store %arg6[%c0_46, %c0_47], %130 {strides = array<i32>} : memref<128x128xf32, #tpu.memory_space<vmem>>, vector<128x128xf32>,
      %cst_48 = arith.constant 0.000000e+00 : f32
      %132 = vector.broadcast %cst_48 : f32 to vector<128x128xf32>
      %c0_49 = arith.constant 0 : index
      %c0_50 = arith.constant 0 : index
      %133 = vector.load %arg5[%c0_49, %c0_50] : memref<128x128xf32, #tpu.memory_space<vmem>>, vector<128x128xf32>
      tpu.vector_store %arg5[%c0_49, %c0_50], %132 {strides = array<i32>} : memref<128x128xf32, #tpu.memory_space<vmem>>, vector<128x128xf32>,
    } else {
    }
    %c0 = arith.constant 0 : index
    %c0_1 = arith.constant 0 : index
    %3 = vector.load %arg3[%c0, %c0_1] : memref<128x128xf32, #tpu.memory_space<vmem>>, vector<128x128xf32>
    %c0_2 = arith.constant 0 : index
    %c0_3 = arith.constant 0 : index
    %4 = vector.load %arg4[%c0_2, %c0_3] : memref<128x1xi32, #tpu.memory_space<vmem>>, vector<128x1xi32>
    %c8_i32 = arith.constant 8 : i32
    %5 = arith.muli %arg1, %c8_i32 : i32
    %c0_4 = arith.constant 0 : index
    %c0_5 = arith.constant 0 : index
    %6 = vector.load %arg6[%c0_4, %c0_5] : memref<128x128xf32, #tpu.memory_space<vmem>>, vector<128x128xf32>
    %c0_6 = arith.constant 0 : index
    %c0_7 = arith.constant 0 : index
    %7 = vector.load %arg5[%c0_6, %c0_7] : memref<128x128xf32, #tpu.memory_space<vmem>>, vector<128x128xf32>
    %c0_i32_8 = arith.constant 0 : i32
    %8 = arith.index_cast %c0_i32_8 : i32 to index
    %c0_9 = arith.constant 0 : index
    %c0_10 = arith.constant 0 : index
    %9 = vector.load %arg2[%8, %c0_9, %c0_10] : memref<8x128x128xf32, #tpu.memory_space<vmem>>, vector<1x128x128xf32>
    %10 = vector.shape_cast %9 : vector<1x128x128xf32> to vector<128x128xf32>
    %cst = arith.constant dense<0.000000e+00> : vector<128x128xf32>
    %11 = tpu.matmul %6, %3, %cst {dimension_numbers = #tpu.dot_dimension_numbers<[1], [0], [0], [1], [0, 0, 1, 1], [], []>} : vector<128x128xf32>, vector<128x128xf32>, vector<128x128xf32> -> vector<128x128xf32>
    %12 = arith.addf %10, %11 : vector<128x128xf32>
    %cst_11 = arith.constant 0.000000e+00 : f32
    %13 = vector.broadcast %cst_11 : f32 to vector<128x128xf32>
    %14 = arith.maximumf %12, %13 : vector<128x128xf32>
    %15 = arith.addi %5, %c0_i32_8 : i32
    %16 = vector.broadcast %15 : i32 to vector<128x1xi32>
    %17 = arith.cmpi eq, %4, %16 : vector<128x1xi32>
    %18 = arith.extui %17 : vector<128x1xi1> to vector<128x1xi32>
    %19 = arith.sitofp %18 : vector<128x1xi32> to vector<128x1xf32>
    %20 = vector.broadcast %19 : vector<128x1xf32> to vector<128x128xf32>
    %21 = arith.mulf %20, %14 : vector<128x128xf32>
    %22 = arith.addf %7, %21 : vector<128x128xf32>
    %c1_i32 = arith.constant 1 : i32
    %23 = arith.index_cast %c1_i32 : i32 to index
    %c0_12 = arith.constant 0 : index
    %c0_13 = arith.constant 0 : index
    %24 = vector.load %arg2[%23, %c0_12, %c0_13] : memref<8x128x128xf32, #tpu.memory_space<vmem>>, vector<1x128x128xf32>
    %25 = vector.shape_cast %24 : vector<1x128x128xf32> to vector<128x128xf32>
    %cst_14 = arith.constant dense<0.000000e+00> : vector<128x128xf32>
    %26 = tpu.matmul %14, %3, %cst_14 {dimension_numbers = #tpu.dot_dimension_numbers<[1], [0], [0], [1], [0, 0, 1, 1], [], []>} : vector<128x128xf32>, vector<128x128xf32>, vector<128x128xf32> -> vector<128x128xf32>
    %27 = arith.addf %25, %26 : vector<128x128xf32>
    %cst_15 = arith.constant 0.000000e+00 : f32
    %28 = vector.broadcast %cst_15 : f32 to vector<128x128xf32>
    %29 = arith.maximumf %27, %28 : vector<128x128xf32>
    %30 = arith.addi %5, %c1_i32 : i32
    %31 = vector.broadcast %30 : i32 to vector<128x1xi32>
    %32 = arith.cmpi eq, %4, %31 : vector<128x1xi32>
    %33 = arith.extui %32 : vector<128x1xi1> to vector<128x1xi32>
    %34 = arith.sitofp %33 : vector<128x1xi32> to vector<128x1xf32>
    %35 = vector.broadcast %34 : vector<128x1xf32> to vector<128x128xf32>
    %36 = arith.mulf %35, %29 : vector<128x128xf32>
    %37 = arith.addf %22, %36 : vector<128x128xf32>
    %c2_i32 = arith.constant 2 : i32
    %38 = arith.index_cast %c2_i32 : i32 to index
    %c0_16 = arith.constant 0 : index
    %c0_17 = arith.constant 0 : index
    %39 = vector.load %arg2[%38, %c0_16, %c0_17] : memref<8x128x128xf32, #tpu.memory_space<vmem>>, vector<1x128x128xf32>
    %40 = vector.shape_cast %39 : vector<1x128x128xf32> to vector<128x128xf32>
    %cst_18 = arith.constant dense<0.000000e+00> : vector<128x128xf32>
    %41 = tpu.matmul %29, %3, %cst_18 {dimension_numbers = #tpu.dot_dimension_numbers<[1], [0], [0], [1], [0, 0, 1, 1], [], []>} : vector<128x128xf32>, vector<128x128xf32>, vector<128x128xf32> -> vector<128x128xf32>
    %42 = arith.addf %40, %41 : vector<128x128xf32>
    %cst_19 = arith.constant 0.000000e+00 : f32
    %43 = vector.broadcast %cst_19 : f32 to vector<128x128xf32>
    %44 = arith.maximumf %42, %43 : vector<128x128xf32>
    %45 = arith.addi %5, %c2_i32 : i32
    %46 = vector.broadcast %45 : i32 to vector<128x1xi32>
    %47 = arith.cmpi eq, %4, %46 : vector<128x1xi32>
    %48 = arith.extui %47 : vector<128x1xi1> to vector<128x1xi32>
    %49 = arith.sitofp %48 : vector<128x1xi32> to vector<128x1xf32>
    %50 = vector.broadcast %49 : vector<128x1xf32> to vector<128x128xf32>
    %51 = arith.mulf %50, %44 : vector<128x128xf32>
    %52 = arith.addf %37, %51 : vector<128x128xf32>
    %c3_i32 = arith.constant 3 : i32
    %53 = arith.index_cast %c3_i32 : i32 to index
    %c0_20 = arith.constant 0 : index
    %c0_21 = arith.constant 0 : index
    %54 = vector.load %arg2[%53, %c0_20, %c0_21] : memref<8x128x128xf32, #tpu.memory_space<vmem>>, vector<1x128x128xf32>
    %55 = vector.shape_cast %54 : vector<1x128x128xf32> to vector<128x128xf32>
    %cst_22 = arith.constant dense<0.000000e+00> : vector<128x128xf32>
    %56 = tpu.matmul %44, %3, %cst_22 {dimension_numbers = #tpu.dot_dimension_numbers<[1], [0], [0], [1], [0, 0, 1, 1], [], []>} : vector<128x128xf32>, vector<128x128xf32>, vector<128x128xf32> -> vector<128x128xf32>
    %57 = arith.addf %55, %56 : vector<128x128xf32>
    %cst_23 = arith.constant 0.000000e+00 : f32
    %58 = vector.broadcast %cst_23 : f32 to vector<128x128xf32>
    %59 = arith.maximumf %57, %58 : vector<128x128xf32>
    %60 = arith.addi %5, %c3_i32 : i32
    %61 = vector.broadcast %60 : i32 to vector<128x1xi32>
    %62 = arith.cmpi eq, %4, %61 : vector<128x1xi32>
    %63 = arith.extui %62 : vector<128x1xi1> to vector<128x1xi32>
    %64 = arith.sitofp %63 : vector<128x1xi32> to vector<128x1xf32>
    %65 = vector.broadcast %64 : vector<128x1xf32> to vector<128x128xf32>
    %66 = arith.mulf %65, %59 : vector<128x128xf32>
    %67 = arith.addf %52, %66 : vector<128x128xf32>
    %c4_i32 = arith.constant 4 : i32
    %68 = arith.index_cast %c4_i32 : i32 to index
    %c0_24 = arith.constant 0 : index
    %c0_25 = arith.constant 0 : index
    %69 = vector.load %arg2[%68, %c0_24, %c0_25] : memref<8x128x128xf32, #tpu.memory_space<vmem>>, vector<1x128x128xf32>
    %70 = vector.shape_cast %69 : vector<1x128x128xf32> to vector<128x128xf32>
    %cst_26 = arith.constant dense<0.000000e+00> : vector<128x128xf32>
    %71 = tpu.matmul %59, %3, %cst_26 {dimension_numbers = #tpu.dot_dimension_numbers<[1], [0], [0], [1], [0, 0, 1, 1], [], []>} : vector<128x128xf32>, vector<128x128xf32>, vector<128x128xf32> -> vector<128x128xf32>
    %72 = arith.addf %70, %71 : vector<128x128xf32>
    %cst_27 = arith.constant 0.000000e+00 : f32
    %73 = vector.broadcast %cst_27 : f32 to vector<128x128xf32>
    %74 = arith.maximumf %72, %73 : vector<128x128xf32>
    %75 = arith.addi %5, %c4_i32 : i32
    %76 = vector.broadcast %75 : i32 to vector<128x1xi32>
    %77 = arith.cmpi eq, %4, %76 : vector<128x1xi32>
    %78 = arith.extui %77 : vector<128x1xi1> to vector<128x1xi32>
    %79 = arith.sitofp %78 : vector<128x1xi32> to vector<128x1xf32>
    %80 = vector.broadcast %79 : vector<128x1xf32> to vector<128x128xf32>
    %81 = arith.mulf %80, %74 : vector<128x128xf32>
    %82 = arith.addf %67, %81 : vector<128x128xf32>
    %c5_i32 = arith.constant 5 : i32
    %83 = arith.index_cast %c5_i32 : i32 to index
    %c0_28 = arith.constant 0 : index
    %c0_29 = arith.constant 0 : index
    %84 = vector.load %arg2[%83, %c0_28, %c0_29] : memref<8x128x128xf32, #tpu.memory_space<vmem>>, vector<1x128x128xf32>
    %85 = vector.shape_cast %84 : vector<1x128x128xf32> to vector<128x128xf32>
    %cst_30 = arith.constant dense<0.000000e+00> : vector<128x128xf32>
    %86 = tpu.matmul %74, %3, %cst_30 {dimension_numbers = #tpu.dot_dimension_numbers<[1], [0], [0], [1], [0, 0, 1, 1], [], []>} : vector<128x128xf32>, vector<128x128xf32>, vector<128x128xf32> -> vector<128x128xf32>
    %87 = arith.addf %85, %86 : vector<128x128xf32>
    %cst_31 = arith.constant 0.000000e+00 : f32
    %88 = vector.broadcast %cst_31 : f32 to vector<128x128xf32>
    %89 = arith.maximumf %87, %88 : vector<128x128xf32>
    %90 = arith.addi %5, %c5_i32 : i32
    %91 = vector.broadcast %90 : i32 to vector<128x1xi32>
    %92 = arith.cmpi eq, %4, %91 : vector<128x1xi32>
    %93 = arith.extui %92 : vector<128x1xi1> to vector<128x1xi32>
    %94 = arith.sitofp %93 : vector<128x1xi32> to vector<128x1xf32>
    %95 = vector.broadcast %94 : vector<128x1xf32> to vector<128x128xf32>
    %96 = arith.mulf %95, %89 : vector<128x128xf32>
    %97 = arith.addf %82, %96 : vector<128x128xf32>
    %c6_i32 = arith.constant 6 : i32
    %98 = arith.index_cast %c6_i32 : i32 to index
    %c0_32 = arith.constant 0 : index
    %c0_33 = arith.constant 0 : index
    %99 = vector.load %arg2[%98, %c0_32, %c0_33] : memref<8x128x128xf32, #tpu.memory_space<vmem>>, vector<1x128x128xf32>
    %100 = vector.shape_cast %99 : vector<1x128x128xf32> to vector<128x128xf32>
    %cst_34 = arith.constant dense<0.000000e+00> : vector<128x128xf32>
    %101 = tpu.matmul %89, %3, %cst_34 {dimension_numbers = #tpu.dot_dimension_numbers<[1], [0], [0], [1], [0, 0, 1, 1], [], []>} : vector<128x128xf32>, vector<128x128xf32>, vector<128x128xf32> -> vector<128x128xf32>
    %102 = arith.addf %100, %101 : vector<128x128xf32>
    %cst_35 = arith.constant 0.000000e+00 : f32
    %103 = vector.broadcast %cst_35 : f32 to vector<128x128xf32>
    %104 = arith.maximumf %102, %103 : vector<128x128xf32>
    %105 = arith.addi %5, %c6_i32 : i32
    %106 = vector.broadcast %105 : i32 to vector<128x1xi32>
    %107 = arith.cmpi eq, %4, %106 : vector<128x1xi32>
    %108 = arith.extui %107 : vector<128x1xi1> to vector<128x1xi32>
    %109 = arith.sitofp %108 : vector<128x1xi32> to vector<128x1xf32>
    %110 = vector.broadcast %109 : vector<128x1xf32> to vector<128x128xf32>
    %111 = arith.mulf %110, %104 : vector<128x128xf32>
    %112 = arith.addf %97, %111 : vector<128x128xf32>
    %c7_i32 = arith.constant 7 : i32
    %113 = arith.index_cast %c7_i32 : i32 to index
    %c0_36 = arith.constant 0 : index
    %c0_37 = arith.constant 0 : index
    %114 = vector.load %arg2[%113, %c0_36, %c0_37] : memref<8x128x128xf32, #tpu.memory_space<vmem>>, vector<1x128x128xf32>
    %115 = vector.shape_cast %114 : vector<1x128x128xf32> to vector<128x128xf32>
    %cst_38 = arith.constant dense<0.000000e+00> : vector<128x128xf32>
    %116 = tpu.matmul %104, %3, %cst_38 {dimension_numbers = #tpu.dot_dimension_numbers<[1], [0], [0], [1], [0, 0, 1, 1], [], []>} : vector<128x128xf32>, vector<128x128xf32>, vector<128x128xf32> -> vector<128x128xf32>
    %117 = arith.addf %115, %116 : vector<128x128xf32>
    %cst_39 = arith.constant 0.000000e+00 : f32
    %118 = vector.broadcast %cst_39 : f32 to vector<128x128xf32>
    %119 = arith.maximumf %117, %118 : vector<128x128xf32>
    %120 = arith.addi %5, %c7_i32 : i32
    %121 = vector.broadcast %120 : i32 to vector<128x1xi32>
    %122 = arith.cmpi eq, %4, %121 : vector<128x1xi32>
    %123 = arith.extui %122 : vector<128x1xi1> to vector<128x1xi32>
    %124 = arith.sitofp %123 : vector<128x1xi32> to vector<128x1xf32>
    %125 = vector.broadcast %124 : vector<128x1xf32> to vector<128x128xf32>
    %126 = arith.mulf %125, %119 : vector<128x128xf32>
    %127 = arith.addf %112, %126 : vector<128x128xf32>
    %c8_i32_40 = arith.constant 8 : i32
    %c0_41 = arith.constant 0 : index
    %c0_42 = arith.constant 0 : index
    %128 = vector.load %arg6[%c0_41, %c0_42] : memref<128x128xf32, #tpu.memory_space<vmem>>, vector<128x128xf32>
    tpu.vector_store %arg6[%c0_41, %c0_42], %119 {strides = array<i32>} : memref<128x128xf32, #tpu.memory_space<vmem>>, vector<128x128xf32>,
    %c0_43 = arith.constant 0 : index
    %c0_44 = arith.constant 0 : index
    %129 = vector.load %arg5[%c0_43, %c0_44] : memref<128x128xf32, #tpu.memory_space<vmem>>, vector<128x128xf32>
    tpu.vector_store %arg5[%c0_43, %c0_44], %127 {strides = array<i32>} : memref<128x128xf32, #tpu.memory_space<vmem>>, vector<128x128xf32>,
    return
  }
  func.func @transform_0(%arg0: i32, %arg1: i32) -> (i32, i32, i32) {
    %c0_i32 = arith.constant 0 : i32
    %c0_i32_0 = arith.constant 0 : i32
    return %arg1, %arg0, %c0_i32 : i32, i32, i32
  }
  func.func @transform_1(%arg0: i32, %arg1: i32) -> (i32, i32) {
    %c0_i32 = arith.constant 0 : i32
    %c0_i32_0 = arith.constant 0 : i32
    %c0_i32_1 = arith.constant 0 : i32
    return %c0_i32, %c0_i32_0 : i32, i32
  }
  func.func @transform_2(%arg0: i32, %arg1: i32) -> (i32, i32) {
    %c0_i32 = arith.constant 0 : i32
    %c0_i32_0 = arith.constant 0 : i32
    return %arg0, %c0_i32 : i32, i32
  }
  func.func @transform_3(%arg0: i32, %arg1: i32) -> (i32, i32) {
    %c0_i32 = arith.constant 0 : i32
    %c0_i32_0 = arith.constant 0 : i32
    return %arg0, %c0_i32 : i32, i32
  }
}

</mosaic_0001>

<bundles_post_ra>
// kernel: tpu_custom_call.1
= control target key start
LH: loop header
LB: loop body
LE: loop exit
PB: predicated region body
PF: predicated region fallthrough
CT: control target
= control target key end

     0   :  { %8 = vsyncpa [#allocation4], 0  ;;  %s3996_s0 = inlined_call_operand.hbm [shape: f32[8,128,128], index: 0, kind: input, shape index: {}]   ;;  %s3997_s1 = inlined_call_operand.vmem [shape: f32[128,128], index: 1, kind: input, shape index: {}]   ;;  %s3998_s2 = inlined_call_operand.vmem [shape: s32[128,1], index: 2, kind: input, shape index: {}]   ;;  %s3999_s3 = inlined_call_operand.hbm [shape: f32[128,128], index: 3, kind: output, shape index: {}]  }
   0x1   :  { %9 = vsyncpa [#allocation5], 0  ;;  %s14_s14 = sshll.u32 %s3996_s0, 4  ;;  %s2926_s15 = smov [#allocation3]   ;;  %s15_s14 = int_to_ptr.hbm [resolvable:$true] %s14_s14 }
   0x2   :  { %s16_s16 = sshll.u32 %s2926_s15, 4  ;;  %s2927_s17 = smov 128   ;;  %s17_s16 = int_to_ptr.vmem [resolvable:$true] %s16_s16 }
   0x3   :  { %s2928_s18 = smov 8  }
   0x4   :  { %22 = dma.hbm_to_vmem [thread:$0]  %s15_s14, 16384, %s17_s16, [#allocation4], %s2927_s17, %s2927_s17, %s2928_s18  }
   0x5   :  { %2922 = dma.done.wait [#allocation4], 16384  }
   0x6   :  { %2923 = vsyncadd [#allocation4], 4294950912  ;;  %v2961_v0 = vld [vmem:[%s3997_s1 + $0x78] sm:$0xff]  ;;  %v2966_v1 = vld [vmem:[%s3997_s1 + $0x70] sm:$0xff]  ;;  %v2929_v8 = vmov 0   ;;  %v2930_v10 = vmov 0.0  }
   0x7   :  { %148 = vmatpush.msra.mxu0 %v2961_v0  ;;  %423 = vmatpush.msra.mxu1 %v2961_v0  ;;  %v2973_v2 = vld [vmem:[%s3997_s1 + $0x68] sm:$0xff]  ;;  %v2982_v3 = vld [vmem:[%s3997_s1 + $0x60] sm:$0xff]  ;;  %v2991_v4 = vld [vmem:[%s3997_s1 + $0x58] sm:$0xff]  ;;  %s2376_s6 = sshll.u32 %s3999_s3, 4  ;;  %s2377_s6 = int_to_ptr.hbm [resolvable:$true] %s2376_s6 }
   0x8   :  { %699 = vmatpush.msra.mxu2 %v2961_v0  ;;  %975 = vmatpush.msra.mxu3 %v2961_v0  ;;  %v3000_v5 = vld [vmem:[%s3997_s1 + $0x50] sm:$0xff]  ;;  %v3005_v6 = vld [vmem:[%s3998_s2] sm:$0xff]  ;;  %v3010_v7 = vld [vmem:[%s3998_s2 + $0x8] sm:$0xff] }
   0x9   :  { %149 = vmatpush.msra.mxu0 %v2966_v1  ;;  %424 = vmatpush.msra.mxu1 %v2966_v1  ;;  %vm246_vm0 = vcmp.eq.s32.totalorder %v3005_v6, 0  ;;  %vm247_vm1 = vcmp.eq.s32.totalorder %v3010_v7, 0  ;;  %v3020_v9 = vld [vmem:[%s3997_s1 + $0x48] sm:$0xff]  ;;  %v3029_v14 = vld [vmem:[%s3997_s1 + $0x40] sm:$0xff]  ;;  %v3037_v15 = vld [vmem:[%s3997_s1 + $0x38] sm:$0xff] }
   0xa   :  { %700 = vmatpush.msra.mxu2 %v2966_v1  ;;  %976 = vmatpush.msra.mxu3 %v2966_v1  ;;  %v2389_v11 = vsel %vm246_vm0, 1.0, %v2930_v10  ;;  %v2390_v12 = vsel %vm247_vm1, 1.0, %v2930_v10  ;;  %v3046_v16 = vld [vmem:[%s3997_s1 + $0x30] sm:$0xff]  ;;  %v3055_v17 = vld [vmem:[%s3997_s1 + $0x28] sm:$0xff]  ;;  %v3064_v18 = vld [vmem:[%s3997_s1 + $0x20] sm:$0xff] }
   0xb   :  { %150 = vmatpush.msra.mxu0 %v2973_v2  ;;  %425 = vmatpush.msra.mxu1 %v2973_v2  ;;  %v2524_v13 = vpack.i.bf16 %v2390_v12, %v2389_v11  ;;  %v3073_v19 = vld [vmem:[%s3997_s1 + $0x18] sm:$0xff]  ;;  %v3082_v20 = vld [vmem:[%s3997_s1 + $0x10] sm:$0xff]  ;;  %v3103_v23 = vld [vmem:[%s3997_s1 + $0x8] sm:$0xff] }
   0xc   :  { %701 = vmatpush.msra.mxu2 %v2973_v2  ;;  %977 = vmatpush.msra.mxu3 %v2973_v2  ;;  %v3087_v21 = vld [vmem:[%s3998_s2 + $0x10] sm:$0xff]  ;;  %v3092_v22 = vld [vmem:[%s3998_s2 + $0x18] sm:$0xff]  ;;  %v3114_v27 = vld [vmem:[%s3997_s1] sm:$0xff] }
   0xd   :  { %151 = vmatpush.msra.mxu0 %v2982_v3  ;;  %426 = vmatpush.msra.mxu1 %v2982_v3  ;;  %vm248_vm2 = vcmp.eq.s32.totalorder %v3087_v21, 0  ;;  %vm249_vm3 = vcmp.eq.s32.totalorder %v3092_v22, 0  ;;  %v3143_v28 = vld [vmem:[%s3998_s2 + $0x20] sm:$0xff]  ;;  %v3148_v29 = vld [vmem:[%s3998_s2 + $0x28] sm:$0xff]  ;;  %v3188_v33 = vld [vmem:[%s3998_s2 + $0x30] sm:$0xff]  ;;  %vm524_vm0 = vcmp.eq.s32.totalorder %v3087_v21, 1 }
   0xe   :  { %702 = vmatpush.msra.mxu2 %v2982_v3  ;;  %978 = vmatpush.msra.mxu3 %v2982_v3  ;;  %v2391_v24 = vsel %vm248_vm2, 1.0, %v2930_v10  ;;  %v2392_v25 = vsel %vm249_vm3, 1.0, %v2930_v10  ;;  %vm250_vm4 = vcmp.eq.s32.totalorder %v3143_v28, 0  ;;  %vm251_vm5 = vcmp.eq.s32.totalorder %v3148_v29, 0  ;;  %v3193_v34 = vld [vmem:[%s3998_s2 + $0x38] sm:$0xff]  ;;  %v3234_v38 = vld [vmem:[%s3998_s2 + $0x40] sm:$0xff] }
   0xf   :  { %152 = vmatpush.msra.mxu0 %v2991_v4  ;;  %2523 = vset.pattern.permute.xlu0 %v2929_v8  ;;  %v2529_v26 = vpack.i.bf16 %v2392_v25, %v2391_v24  ;;  %v2393_v30 = vsel %vm250_vm4, 1.0, %v2930_v10  ;;  %v2394_v31 = vsel %vm251_vm5, 1.0, %v2930_v10  ;;  %vm252_vm6 = vcmp.eq.s32.totalorder %v3188_v33, 0  ;;  %v3239_v39 = vld [vmem:[%s3998_s2 + $0x48] sm:$0xff]  ;;  %v3249_v43 = vld [vmem:[%s3998_s2 + $0x60] sm:$0xff]  ;;  %v3264_v48 = vld [vmem:[%s3998_s2 + $0x50] sm:$0xff] }
  0x10   :  { %2534 = vset.pattern.permute.xlu1 %v2929_v8  ;;  %2545 = vset.pattern.permute.xlu2 %v2929_v8  ;;  %v2535_v32 = vpack.i.bf16 %v2394_v31, %v2393_v30  ;;  %vm253_vm7 = vcmp.eq.s32.totalorder %v3193_v34, 0  ;;  %v2395_v35 = vsel %vm252_vm6, 1.0, %v2930_v10  ;;  %vm254_vm8 = vcmp.eq.s32.totalorder %v3234_v38, 0  ;;  %v3254_v44 = vld [vmem:[%s3998_s2 + $0x68] sm:$0xff]  ;;  %v3269_v49 = vld [vmem:[%s3998_s2 + $0x58] sm:$0xff]  ;;  %v3279_v53 = vld [vmem:[%s3998_s2 + $0x70] sm:$0xff] }
  0x11   :  { %153 = vmatpush.msra.mxu0 %v3000_v5  ;;  %427 = vmatpush.msra.mxu1 %v2991_v4  ;;  %v2396_v36 = vsel %vm253_vm7, 1.0, %v2930_v10  ;;  %vm255_vm9 = vcmp.eq.s32.totalorder %v3239_v39, 0  ;;  %v2397_v40 = vsel %vm254_vm8, 1.0, %v2930_v10  ;;  %vm258_vm10 = vcmp.eq.s32.totalorder %v3249_v43, 0  ;;  %v3284_v54 = vld [vmem:[%s3998_s2 + $0x78] sm:$0xff]  ;;  %v132_v58 = vld [vmem:[#allocation3] sm:$0xff] }
  0x12   :  { %703 = vmatpush.msra.mxu2 %v2991_v4  ;;  %979 = vmatpush.msra.mxu3 %v2991_v4  ;;  %v2540_v37 = vpack.i.bf16 %v2396_v36, %v2395_v35  ;;  %v2398_v41 = vsel %vm255_vm9, 1.0, %v2930_v10  ;;  %vm259_vm11 = vcmp.eq.s32.totalorder %v3254_v44, 0  ;;  %v2401_v45 = vsel %vm258_vm10, 1.0, %v2930_v10  ;;  %v135_v25 = vld [vmem:[#allocation3 + $0x18] sm:$0xff]  ;;  %v136_v31 = vld [vmem:[#allocation3 + $0x20] sm:$0xff] }
  0x13   :  { %154 = vmatpush.msra.mxu0 %v3020_v9  ;;  %2525 = vperm.xlu0 %2523, %v2524_v13   ;;  %v2546_v42 = vpack.i.bf16 %v2398_v41, %v2397_v40  ;;  %v2402_v46 = vsel %vm259_vm11, 1.0, %v2930_v10  ;;  %vm256_vm12 = vcmp.eq.s32.totalorder %v3264_v48, 0  ;;  %vm257_vm13 = vcmp.eq.s32.totalorder %v3269_v49, 0 }
  0x14   :  { %428 = vmatpush.msra.mxu1 %v3000_v5  ;;  %704 = vmatpush.msra.mxu2 %v3000_v5  ;;  %v2556_v47 = vpack.i.bf16 %v2402_v46, %v2401_v45  ;;  %v2399_v50 = vsel %vm256_vm12, 1.0, %v2930_v10  ;;  %v2400_v51 = vsel %vm257_vm13, 1.0, %v2930_v10  ;;  %vm260_vm14 = vcmp.eq.s32.totalorder %v3279_v53, 0 }
  0x15   :  { %155 = vmatpush.msra.mxu0 %v3029_v14  ;;  %980 = vmatpush.msra.mxu3 %v3000_v5  ;;  %v2551_v52 = vpack.i.bf16 %v2400_v51, %v2399_v50  ;;  %vm261_vm15 = vcmp.eq.s32.totalorder %v3284_v54, 0  ;;  %v2403_v55 = vsel %vm260_vm14, 1.0, %v2930_v10  ;;  %vm525_vm1 = vcmp.eq.s32.totalorder %v3092_v22, 1 }
  0x16   :  { %429 = vmatpush.msra.mxu1 %v3020_v9  ;;  %705 = vmatpush.msra.mxu2 %v3020_v9  ;;  %v2404_v56 = vsel %vm261_vm15, 1.0, %v2930_v10  ;;  %v2407_v60 = vsel %vm524_vm0, 1.0, %v2930_v10  ;;  %v2408_v61 = vsel %vm525_vm1, 1.0, %v2930_v10  ;;  %vm522_vm2 = vcmp.eq.s32.totalorder %v3005_v6, 1 }
  0x17   :  { %156 = vmatpush.msra.mxu0 %v3037_v15  ;;  %981 = vmatpush.msra.mxu3 %v3020_v9  ;;  %v2561_v57 = vpack.i.bf16 %v2404_v56, %v2403_v55  ;;  %v2571_v63 = vpack.i.bf16 %v2408_v61, %v2407_v60  ;;  %vm523_vm3 = vcmp.eq.s32.totalorder %v3010_v7, 1  ;;  %vm526_vm4 = vcmp.eq.s32.totalorder %v3143_v28, 1 }
  0x18   :  { %430 = vmatpush.msra.mxu1 %v3029_v14  ;;  %706 = vmatpush.msra.mxu2 %v3029_v14  ;;  %v2406_v8 = vsel %vm523_vm3, 1.0, %v2930_v10  ;;  %vm527_vm5 = vcmp.eq.s32.totalorder %v3148_v29, 1  ;;  %vm530_vm6 = vcmp.eq.s32.totalorder %v3234_v38, 1  ;;  %vm531_vm7 = vcmp.eq.s32.totalorder %v3239_v39, 1 }
  0x19   :  { %157 = vmatpush.msra.mxu0 %v3046_v16  ;;  %982 = vmatpush.msra.mxu3 %v3029_v14  ;;  %v2413_v56 = vsel %vm530_vm6, 1.0, %v2930_v10  ;;  %vm528_vm8 = vcmp.eq.s32.totalorder %v3188_v33, 1  ;;  %vm529_vm9 = vcmp.eq.s32.totalorder %v3193_v34, 1  ;;  %vm532_vm10 = vcmp.eq.s32.totalorder %v3264_v48, 1 }
  0x1a   :  { %431 = vmatpush.msra.mxu1 %v3037_v15  ;;  %707 = vmatpush.msra.mxu2 %v3037_v15  ;;  %vm533_vm11 = vcmp.eq.s32.totalorder %v3269_v49, 1  ;;  %vm536_vm12 = vcmp.eq.s32.totalorder %v3279_v53, 1  ;;  %vm537_vm13 = vcmp.eq.s32.totalorder %v3284_v54, 1  ;;  %vm534_vm14 = vcmp.eq.s32.totalorder %v3249_v43, 1 }
  0x1b   :  { %158 = vmatpush.msra.mxu0 %v3055_v17  ;;  %983 = vmatpush.msra.mxu3 %v3037_v15  ;;  %vm535_vm15 = vcmp.eq.s32.totalorder %v3254_v44, 1  ;;  %vm798_vm0 = vcmp.eq.s32.totalorder %v3005_v6, 2  ;;  %vm799_vm1 = vcmp.eq.s32.totalorder %v3010_v7, 2  ;;  %vm803_vm3 = vcmp.eq.s32.totalorder %v3148_v29, 2 }
  0x1c   :  { %432 = vmatpush.msra.mxu1 %v3046_v16  ;;  %708 = vmatpush.msra.mxu2 %v3046_v16  ;;  %vm804_vm6 = vcmp.eq.s32.totalorder %v3188_v33, 2 }
  0x1d   :  { %159 = vmatpush.msra.mxu0 %v3064_v18  ;;  %984 = vmatpush.msra.mxu3 %v3046_v16 }
  0x1e   :  { %433 = vmatpush.msra.mxu1 %v3055_v17  ;;  %709 = vmatpush.msra.mxu2 %v3055_v17 }
  0x1f   :  { %160 = vmatpush.msra.mxu0 %v3073_v19  ;;  %985 = vmatpush.msra.mxu3 %v3055_v17 }
  0x20   :  { %434 = vmatpush.msra.mxu1 %v3064_v18  ;;  %710 = vmatpush.msra.mxu2 %v3064_v18 }
  0x21   :  { %161 = vmatpush.msra.mxu0 %v3082_v20  ;;  %986 = vmatpush.msra.mxu3 %v3064_v18 }
  0x22   :  { %435 = vmatpush.msra.mxu1 %v3073_v19  ;;  %711 = vmatpush.msra.mxu2 %v3073_v19 }
  0x23   :  { %162 = vmatpush.msra.mxu0 %v3103_v23  ;;  %2530 = vperm.xlu0 %2523, %v2529_v26  }
  0x24   :  { %436 = vmatpush.msra.mxu1 %v3082_v20  ;;  %712 = vmatpush.msra.mxu2 %v3082_v20 }
  0x25   :  { %163 = vmatpush.msra.mxu0 %v3114_v27  ;;  %987 = vmatpush.msra.mxu3 %v3073_v19 }
  0x26   :  { %164 = vmatmul.f32.vlgmr.msra.gmra.mxu0 %v2930_v10  ;;  %437 = vmatpush.msra.mxu1 %v3103_v23 }
  0x27   :  { %713 = vmatpush.msra.mxu2 %v3103_v23  ;;  %988 = vmatpush.msra.mxu3 %v3082_v20 }
  0x28   :  { %438 = vmatpush.msra.mxu1 %v3114_v27  ;;  %1251 = vmatpush.msrb.mxu0 %v2961_v0 }
  0x29   :  { %714 = vmatpush.msra.mxu2 %v3114_v27  ;;  %989 = vmatpush.msra.mxu3 %v3103_v23 }
  0x2a   :  { %1252 = vmatpush.msrb.mxu0 %v2966_v1  ;;  %1527 = vmatpush.msrb.mxu1 %v2961_v0 }
  0x2b   :  { %990 = vmatpush.msra.mxu3 %v3114_v27  ;;  %1803 = vmatpush.msrb.mxu2 %v2961_v0 }
  0x2c   :  { %1253 = vmatpush.msrb.mxu0 %v2973_v2  ;;  %1528 = vmatpush.msrb.mxu1 %v2966_v1 }
  0x2d   :  { %1804 = vmatpush.msrb.mxu2 %v2966_v1  ;;  %2079 = vmatpush.msrb.mxu3 %v2961_v0 }
  0x2e   :  { %167 = vmatmul.f32.gmra.mxu0 %v2930_v10  ;;  %1529 = vmatpush.msrb.mxu1 %v2973_v2 }
  0x2f   :  { %1254 = vmatpush.msrb.mxu0 %v2982_v3  ;;  %1805 = vmatpush.msrb.mxu2 %v2973_v2 }
  0x30   :  { %1530 = vmatpush.msrb.mxu1 %v2982_v3  ;;  %2080 = vmatpush.msrb.mxu3 %v2966_v1 }
  0x31   :  { %1255 = vmatpush.msrb.mxu0 %v2991_v4  ;;  %1806 = vmatpush.msrb.mxu2 %v2982_v3 }
  0x32   :  { %1531 = vmatpush.msrb.mxu1 %v2991_v4  ;;  %2081 = vmatpush.msrb.mxu3 %v2973_v2 }
  0x33   :  { %2536 = vperm.xlu1 %2534, %v2535_v32   ;;  %1256 = vmatpush.msrb.mxu0 %v3000_v5 }
  0x34   :  { %1532 = vmatpush.msrb.mxu1 %v3000_v5  ;;  %1807 = vmatpush.msrb.mxu2 %v2991_v4 }
  0x35   :  { %1257 = vmatpush.msrb.mxu0 %v3020_v9  ;;  %2082 = vmatpush.msrb.mxu3 %v2982_v3 }
  0x36   :  { %170 = vmatmul.f32.gmra.mxu0 %v2930_v10  ;;  %1533 = vmatpush.msrb.mxu1 %v3020_v9 }
  0x37   :  { %1258 = vmatpush.msrb.mxu0 %v3029_v14  ;;  %1808 = vmatpush.msrb.mxu2 %v3000_v5 }
  0x38   :  { %1534 = vmatpush.msrb.mxu1 %v3029_v14  ;;  %2083 = vmatpush.msrb.mxu3 %v2991_v4  ;;  %v133_v4 = vld [vmem:[#allocation3 + $0x8] sm:$0xff] }
  0x39   :  { %1259 = vmatpush.msrb.mxu0 %v3037_v15  ;;  %1809 = vmatpush.msrb.mxu2 %v3020_v9 }
  0x3a   :  { %1535 = vmatpush.msrb.mxu1 %v3037_v15  ;;  %2084 = vmatpush.msrb.mxu3 %v3000_v5  ;;  %v2405_v5 = vsel %vm522_vm2, 1.0, %v2930_v10  ;;  %vm802_vm2 = vcmp.eq.s32.totalorder %v3143_v28, 2 }
  0x3b   :  { %1260 = vmatpush.msrb.mxu0 %v3046_v16  ;;  %1810 = vmatpush.msrb.mxu2 %v3029_v14  ;;  %v2566_v11 = vpack.i.bf16 %v2406_v8, %v2405_v5 }
  0x3c   :  { %1536 = vmatpush.msrb.mxu1 %v3046_v16  ;;  %2085 = vmatpush.msrb.mxu3 %v3020_v9 }
  0x3d   :  { %1261 = vmatpush.msrb.mxu0 %v3055_v17  ;;  %1811 = vmatpush.msrb.mxu2 %v3037_v15 }
  0x3e   :  { %173 = vmatmul.f32.gmra.mxu0 %v2930_v10  ;;  %1537 = vmatpush.msrb.mxu1 %v3055_v17 }
  0x3f   :  { %1262 = vmatpush.msrb.mxu0 %v3064_v18  ;;  %1812 = vmatpush.msrb.mxu2 %v3046_v16 }
  0x40   :  { %1538 = vmatpush.msrb.mxu1 %v3064_v18  ;;  %2086 = vmatpush.msrb.mxu3 %v3029_v14 }
  0x41   :  { %1263 = vmatpush.msrb.mxu0 %v3073_v19  ;;  %1813 = vmatpush.msrb.mxu2 %v3055_v17 }
  0x42   :  { %1539 = vmatpush.msrb.mxu1 %v3073_v19  ;;  %2087 = vmatpush.msrb.mxu3 %v3037_v15 }
  0x43   :  { %2541 = vperm.xlu1 %2534, %v2540_v37   ;;  %1264 = vmatpush.msrb.mxu0 %v3082_v20 }
  0x44   :  { %1540 = vmatpush.msrb.mxu1 %v3082_v20  ;;  %1814 = vmatpush.msrb.mxu2 %v3064_v18 }
  0x45   :  { %1265 = vmatpush.msrb.mxu0 %v3103_v23  ;;  %2088 = vmatpush.msrb.mxu3 %v3046_v16  ;;  %v134_v16 = vld [vmem:[#allocation3 + $0x10] sm:$0xff] }
  0x46   :  { %176 = vmatmul.f32.gmra.mxu0 %v2930_v10  ;;  %1541 = vmatpush.msrb.mxu1 %v3103_v23 }
  0x47   :  { %1266 = vmatpush.msrb.mxu0 %v3114_v27  ;;  %1815 = vmatpush.msrb.mxu2 %v3073_v19 }
  0x48   :  { %1542 = vmatpush.msrb.mxu1 %v3114_v27  ;;  %2089 = vmatpush.msrb.mxu3 %v3055_v17  ;;  %v2409_v17 = vsel %vm526_vm4, 1.0, %v2930_v10  ;;  %vm800_vm4 = vcmp.eq.s32.totalorder %v3087_v21, 2 }
  0x49   :  { %1816 = vmatpush.msrb.mxu2 %v3082_v20  ;;  %2547 = vperm.xlu2 %2545, %v2546_v42   ;;  %v137_v42 = vld [vmem:[#allocation3 + $0x28] sm:$0xff] }
  0x4a   :  { %2090 = vmatpush.msrb.mxu3 %v3064_v18  ;;  %2557 = vperm.xlu0 %2523, %v2556_v47   ;;  %v2410_v18 = vsel %vm527_vm5, 1.0, %v2930_v10  ;;  %vm801_vm5 = vcmp.eq.s32.totalorder %v3092_v22, 2  ;;  %v2427_v22 = vsel %vm804_vm6, 1.0, %v2930_v10 }
  0x4b   :  { %1817 = vmatpush.msrb.mxu2 %v3103_v23  ;;  %2562 = vperm.xlu1 %2534, %v2561_v57   ;;  %v2414_v57 = vsel %vm531_vm7, 1.0, %v2930_v10  ;;  %vm805_vm7 = vcmp.eq.s32.totalorder %v3193_v34, 2 }
  0x4c   :  { %2091 = vmatpush.msrb.mxu3 %v3073_v19 }
  0x4d   :  { %1818 = vmatpush.msrb.mxu2 %v3114_v27 }
  0x4e   :  { %179 = vmatmul.f32.gmra.mxu0 %v2930_v10  ;;  %2092 = vmatpush.msrb.mxu3 %v3082_v20  ;;  %v2576_v20 = vpack.i.bf16 %v2410_v18, %v2409_v17  ;;  %v2416_v17 = vsel %vm533_vm11, 1.0, %v2930_v10  ;;  %vm807_vm11 = vcmp.eq.s32.totalorder %v3239_v39, 2 }
  0x50   :  { %2093 = vmatpush.msrb.mxu3 %v3103_v23 }
  0x51   :  { %2552 = vperm.xlu2 %2545, %v2551_v52   ;;  %v138_v52 = vld [vmem:[#allocation3 + $0x30] sm:$0xff] }
  0x52   :  { %2094 = vmatpush.msrb.mxu3 %v3114_v27  ;;  %2572 = vperm.xlu0 %2523, %v2571_v63  }
  0x53   :  { %2577 = vperm.xlu1 %2534, %v2576_v20  }
  0x56   :  { %182 = vmatmul.f32.gmra.mxu0 %v2930_v10 }
  0x59   :  { %2567 = vperm.xlu2 %2545, %v2566_v11  }
  0x5e   :  { %185 = vmatmul.f32.gmra.mxu0 %v2930_v10 }
  0x66   :  { %188 = vmatmul.f32.gmra.mxu0 %v2930_v10 }
  0x6e   :  { %191 = vmatmul.f32.gmra.mxu0 %v2930_v10 }
  0x76   :  { %194 = vmatmul.f32.gmra.mxu0 %v2930_v10 }
  0x7e   :  { %197 = vmatmul.f32.gmra.mxu0 %v2930_v10 }
  0x85   :  { %v2526_v59 = vpop.permute.xlu0 %2525 }
  0x86   :  { %200 = vmatmul.f32.gmra.mxu0 %v2930_v10  ;;  %v2527_v1 = vunpack.i.l.bf16 %v2526_v59  ;;  %v2528_v12 = vunpack.i.h.bf16 %v2526_v59  ;;  %v2586_v59 = vpack.i.bf16 %v2414_v57, %v2413_v56 }
  0x88   :  { %2587 = vperm.xlu0 %2523, %v2586_v59  }
  0x8e   :  { %203 = vmatmul.f32.gmra.mxu0 %v2930_v10 }
  0x95   :  { %v3346_v57 = vpop.permute.xlu0 %2530 }
  0x96   :  { %206 = vmatmul.f32.gmra.mxu0 %v2930_v10 }
  0x9e   :  { %209 = vmatmul.f32.gmra.mxu0 %v2930_v10 }
  0xa3   :  { %v165_v62 = vpop.f32.mrf.mxu0 }
  0xa4   :  { %v213_v0 = vadd.f32 %v165_v62, %v132_v58 }
  0xa5   :  { %v2537_v32 = vpop.permute.xlu1 %2536 }
  0xa6   :  { %v229_v2 = vmax.f32 %v213_v0, 0.0  ;;  %v2538_v37 = vunpack.i.l.bf16 %v2537_v32  ;;  %v2539_v46 = vunpack.i.h.bf16 %v2537_v32  ;;  %v139_v0 = vld [vmem:[#allocation3 + $0x38] sm:$0xff]  ;;  %v141_v32 = vld [vmem:[#allocation3 + $0x48] sm:$0xff] }
  0xa8   :  { %v3298_v3 = vmul.f32 %v2527_v1, %v229_v2  ;;  %439 = vmatmul.f32.vlgmr.msra.gmra.mxu1 %v229_v2  ;;  %v2411_v1 = vsel %vm528_vm8, 1.0, %v2930_v10  ;;  %v2412_v2 = vsel %vm529_vm9, 1.0, %v2930_v10  ;;  %vm808_vm8 = vcmp.eq.s32.totalorder %v3264_v48, 2 }
  0xa9   :  { %v2581_v5 = vpack.i.bf16 %v2412_v2, %v2411_v1  ;;  %v144_v1 = vld [vmem:[#allocation3 + $0x60] sm:$0xff]  ;;  %vm809_vm9 = vcmp.eq.s32.totalorder %v3269_v49, 2 }
  0xab   :  { %v168_v9 = vpop.f32.mrf.mxu0  ;;  %2582 = vperm.xlu2 %2545, %v2581_v5   ;;  %v2420_v5 = vsel %vm537_vm13, 1.0, %v2930_v10  ;;  %vm811_vm13 = vcmp.eq.s32.totalorder %v3254_v44, 2 }
  0xac   :  { %v214_v13 = vadd.f32 %v168_v9, %v133_v4 }
  0xae   :  { %v230_v14 = vmax.f32 %v214_v13, 0.0  ;;  %v140_v13 = vld [vmem:[#allocation3 + $0x40] sm:$0xff] }
  0xb0   :  { %v3304_v15 = vmul.f32 %v2528_v12, %v230_v14  ;;  %442 = vmatmul.f32.gmra.mxu1 %v230_v14  ;;  %v2548_v14 = vpop.permute.xlu2 %2547 }
  0xb3   :  { %v171_v19 = vpop.f32.mrf.mxu0 }
  0xb4   :  { %v3310_v23 = vadd.f32 %v171_v19, %v134_v16  ;;  %v2415_v16 = vsel %vm532_vm10, 1.0, %v2930_v10  ;;  %vm806_vm10 = vcmp.eq.s32.totalorder %v3234_v38, 2 }
  0xb5   :  { %v2542_v55 = vpop.permute.xlu1 %2541  ;;  %v2591_v19 = vpack.i.bf16 %v2416_v17, %v2415_v16  ;;  %v145_v17 = vld [vmem:[#allocation3 + $0x68] sm:$0xff]  ;;  %v2429_v49 = vsel %vm806_vm10, 1.0, %v2930_v10 }
  0xb6   :  { %v231_v24 = vmax.f32 %v3310_v23, 0.0  ;;  %v2543_v61 = vunpack.i.l.bf16 %v2542_v55  ;;  %v2544_v8 = vunpack.i.h.bf16 %v2542_v55 }
  0xb7   :  { %2592 = vperm.xlu1 %2534, %v2591_v19   ;;  %v2418_v19 = vsel %vm535_vm15, 1.0, %v2930_v10  ;;  %vm813_vm15 = vcmp.eq.s32.totalorder %v3284_v54, 2 }
  0xb8   :  { %445 = vmatmul.f32.gmra.mxu1 %v231_v24  ;;  %v2436_v54 = vsel %vm813_vm15, 1.0, %v2930_v10 }
  0xbb   :  { %v174_v26 = vpop.f32.mrf.mxu0 }
  0xbc   :  { %v3315_v27 = vadd.f32 %v174_v26, %v135_v25  ;;  %v2549_v25 = vunpack.i.l.bf16 %v2548_v14  ;;  %v2558_v2 = vpop.permute.xlu0 %2557 }
  0xbe   :  { %v232_v30 = vmax.f32 %v3315_v27, 0.0 }
  0xc0   :  { %448 = vmatmul.f32.gmra.mxu1 %v232_v30 }
  0xc3   :  { %v177_v35 = vpop.f32.mrf.mxu0 }
  0xc4   :  { %v217_v36 = vadd.f32 %v177_v35, %v136_v31 }
  0xc6   :  { %v233_v40 = vmax.f32 %v217_v36, 0.0  ;;  %v2550_v36 = vunpack.i.h.bf16 %v2548_v14 }
  0xc8   :  { %v3320_v41 = vmul.f32 %v2538_v37, %v233_v40  ;;  %451 = vmatmul.f32.gmra.mxu1 %v233_v40 }
  0xcb   :  { %v180_v45 = vpop.f32.mrf.mxu0 }
  0xcc   :  { %v218_v47 = vadd.f32 %v180_v45, %v137_v42  ;;  %v142_v45 = vld [vmem:[#allocation3 + $0x50] sm:$0xff] }
  0xce   :  { %v234_v50 = vmax.f32 %v218_v47, 0.0 }
  0xd0   :  { %v3322_v51 = vmul.f32 %v2539_v46, %v234_v50  ;;  %454 = vmatmul.f32.gmra.mxu1 %v234_v50  ;;  %v2553_v46 = vpop.permute.xlu2 %2552 }
  0xd3   :  { %v183_v58 = vpop.f32.mrf.mxu0 }
  0xd4   :  { %v219_v60 = vadd.f32 %v183_v58, %v138_v52  ;;  %v2554_v52 = vunpack.i.l.bf16 %v2553_v46  ;;  %v143_v58 = vld [vmem:[#allocation3 + $0x58] sm:$0xff] }
  0xd6   :  { %v235_v62 = vmax.f32 %v219_v60, 0.0  ;;  %v2555_v60 = vunpack.i.h.bf16 %v2553_v46 }
  0xd8   :  { %v3328_v63 = vmul.f32 %v2543_v61, %v235_v62  ;;  %457 = vmatmul.f32.gmra.mxu1 %v235_v62 }
  0xdb   :  { %v186_v4 = vpop.f32.mrf.mxu0 }
  0xdc   :  { %v220_v9 = vadd.f32 %v186_v4, %v139_v0  ;;  %v2419_v4 = vsel %vm536_vm12, 1.0, %v2930_v10  ;;  %vm810_vm12 = vcmp.eq.s32.totalorder %v3249_v43, 2  ;;  %v419_v43 = vld [vmem:[#allocation3 + $0xe0] sm:$0xff] }
  0xde   :  { %v236_v11 = vmax.f32 %v220_v9, 0.0  ;;  %v2601_v9 = vpack.i.bf16 %v2420_v5, %v2419_v4  ;;  %v407_v5 = vld [vmem:[#allocation3 + $0x80] sm:$0xff] }
  0xe0   :  { %v3334_v12 = vmul.f32 %v2544_v8, %v236_v11  ;;  %460 = vmatmul.f32.gmra.mxu1 %v236_v11  ;;  %2602 = vperm.xlu0 %2523, %v2601_v9  }
  0xe3   :  { %v189_v18 = vpop.f32.mrf.mxu0 }
  0xe4   :  { %v221_v20 = vadd.f32 %v189_v18, %v140_v13  ;;  %v2559_v13 = vunpack.i.l.bf16 %v2558_v2  ;;  %v2417_v18 = vsel %vm534_vm14, 1.0, %v2930_v10  ;;  %vm812_vm14 = vcmp.eq.s32.totalorder %v3279_v53, 2 }
  0xe5   :  { %v2435_v53 = vsel %vm812_vm14, 1.0, %v2930_v10 }
  0xe6   :  { %v237_v26 = vmax.f32 %v221_v20, 0.0 }
  0xe8   :  { %v3340_v31 = vmul.f32 %v2549_v25, %v237_v26  ;;  %463 = vmatmul.f32.gmra.mxu1 %v237_v26  ;;  %v2596_v25 = vpack.i.bf16 %v2418_v19, %v2417_v18  ;;  %v2560_v26 = vunpack.i.h.bf16 %v2558_v2 }
  0xea   :  { %2597 = vperm.xlu2 %2545, %v2596_v25  }
  0xeb   :  { %v192_v35 = vpop.f32.mrf.mxu0 }
  0xec   :  { %v222_v37 = vadd.f32 %v192_v35, %v141_v32 }
  0xee   :  { %v238_v40 = vmax.f32 %v222_v37, 0.0  ;;  %v146_v37 = vld [vmem:[#allocation3 + $0x70] sm:$0xff] }
  0xf0   :  { %v3342_v42 = vmul.f32 %v2550_v36, %v238_v40  ;;  %466 = vmatmul.f32.gmra.mxu1 %v238_v40  ;;  %v2563_v40 = vpop.permute.xlu1 %2562 }
  0xf3   :  { %v195_v47 = vpop.f32.mrf.mxu0 }
  0xf4   :  { %v223_v50 = vadd.f32 %v195_v47, %v142_v45  ;;  %v2564_v47 = vunpack.i.l.bf16 %v2563_v40 }
  0xf6   :  { %v239_v55 = vmax.f32 %v223_v50, 0.0 }
  0xf8   :  { %v3344_v56 = vmul.f32 %v2554_v52, %v239_v55  ;;  %469 = vmatmul.f32.gmra.mxu1 %v239_v55  ;;  %v147_v55 = vld [vmem:[#allocation3 + $0x78] sm:$0xff] }
  0xfb   :  { %v198_v59 = vpop.f32.mrf.mxu0 }
  0xfc   :  { %v224_v61 = vadd.f32 %v198_v59, %v143_v58  ;;  %v2421_v58 = vsel %vm798_vm0, 1.0, %v2930_v10  ;;  %v2422_v59 = vsel %vm799_vm1, 1.0, %v2930_v10 }
  0xfe   :  { %v240_v62 = vmax.f32 %v224_v61, 0.0  ;;  %v2606_v61 = vpack.i.bf16 %v2422_v59, %v2421_v58  ;;  %v2425_v59 = vsel %vm802_vm2, 1.0, %v2930_v10 }
 0x100   :  { %v3348_v0 = vmul.f32 %v2555_v60, %v240_v62  ;;  %472 = vmatmul.f32.gmra.mxu1 %v240_v62  ;;  %v2565_v62 = vunpack.i.h.bf16 %v2563_v40  ;;  %2607 = vperm.xlu1 %2534, %v2606_v61  }
 0x103   :  { %v201_v8 = vpop.f32.mrf.mxu0 }
 0x104   :  { %v225_v11 = vadd.f32 %v201_v8, %v144_v1  ;;  %v2568_v8 = vpop.permute.xlu2 %2567 }
 0x105   :  { %v2569_v6 = vunpack.i.l.bf16 %v2568_v8  ;;  %v2570_v19 = vunpack.i.h.bf16 %v2568_v8  ;;  %v411_v8 = vld [vmem:[#allocation3 + $0xa0] sm:$0xff] }
 0x106   :  { %v241_v14 = vmax.f32 %v225_v11, 0.0 }
 0x108   :  { %v3354_v16 = vmul.f32 %v2559_v13, %v241_v14  ;;  %475 = vmatmul.f32.gmra.mxu1 %v241_v14  ;;  %v408_v14 = vld [vmem:[#allocation3 + $0x88] sm:$0xff] }
 0x10b   :  { %v204_v20 = vpop.f32.mrf.mxu0 }
 0x10c   :  { %v226_v32 = vadd.f32 %v204_v20, %v145_v17 }
 0x10e   :  { %v242_v35 = vmax.f32 %v226_v32, 0.0 }
 0x110   :  { %v3360_v36 = vmul.f32 %v2560_v26, %v242_v35  ;;  %478 = vmatmul.f32.gmra.mxu1 %v242_v35  ;;  %v2532_v26 = vunpack.i.l.bf16 %v3346_v57  ;;  %v409_v35 = vld [vmem:[#allocation3 + $0x90] sm:$0xff] }
 0x113   :  { %v207_v45 = vpop.f32.mrf.mxu0 }
 0x114   :  { %v227_v46 = vadd.f32 %v207_v45, %v146_v37  ;;  %v2573_v37 = vpop.permute.xlu0 %2572 }
 0x116   :  { %v243_v50 = vmax.f32 %v227_v46, 0.0  ;;  %v376_v46 = vmul.f32 %v2532_v26, %v231_v24 }
 0x118   :  { %v3362_v52 = vmul.f32 %v2564_v47, %v243_v50  ;;  %481 = vmatmul.f32.gmra.mxu1 %v243_v50 }
 0x11b   :  { %v210_v60 = vpop.f32.mrf.mxu0 }
 0x11c   :  { %v228_v1 = vadd.f32 %v210_v60, %v147_v55  ;;  %v2533_v55 = vunpack.i.h.bf16 %v3346_v57  ;;  %v410_v60 = vld [vmem:[#allocation3 + $0x98] sm:$0xff]  ;;  %v2575_v57 = vunpack.i.h.bf16 %v2573_v37 }
 0x11e   :  { %v244_v2 = vmax.f32 %v228_v1, 0.0  ;;  %v377_v24 = vmul.f32 %v2533_v55, %v232_v30 }
 0x120   :  { %v3368_v4 = vmul.f32 %v2565_v62, %v244_v2  ;;  %484 = vmatmul.f32.gmra.mxu1 %v244_v2  ;;  %v2423_v2 = vsel %vm800_vm4, 1.0, %v2930_v10  ;;  %vm1080_vm4 = vcmp.eq.s32.totalorder %v3188_v33, 3  ;;  %v3500_v33 = vld [vmem:[%s3998_s2 + $0x20] sm:$0xff] }
 0x121   :  { %vm1078_vm6 = vcmp.eq.s32.totalorder %v3500_v33, 3 }
 0x125   :  { %v440_v9 = vpop.f32.mrf.mxu1 }
 0x126   :  { %v488_v11 = vadd.f32 %v440_v9, %v407_v5  ;;  %v2424_v5 = vsel %vm801_vm5, 1.0, %v2930_v10  ;;  %v2578_v9 = vpop.permute.xlu1 %2577  ;;  %vm1081_vm5 = vcmp.eq.s32.totalorder %v3193_v34, 3  ;;  %v3506_v34 = vld [vmem:[%s3998_s2 + $0x28] sm:$0xff] }
 0x127   :  { %v2580_v26 = vunpack.i.h.bf16 %v2578_v9 }
 0x128   :  { %v504_v13 = vmax.f32 %v488_v11, 0.0  ;;  %v2611_v11 = vpack.i.bf16 %v2424_v5, %v2423_v2 }
 0x12a   :  { %v650_v7 = vmul.f32 %v2569_v6, %v504_v13  ;;  %715 = vmatmul.f32.vlgmr.msra.gmra.mxu2 %v504_v13  ;;  %2612 = vperm.xlu2 %2545, %v2611_v11   ;;  %v2579_v13 = vunpack.i.l.bf16 %v2578_v9  ;;  %v2431_v9 = vsel %vm808_vm8, 1.0, %v2930_v10  ;;  %v2432_v11 = vsel %vm809_vm9, 1.0, %v2930_v10 }
 0x12b   :  { %vm1082_vm8 = vcmp.eq.s32.totalorder %v3234_v38, 3  ;;  %vm1083_vm9 = vcmp.eq.s32.totalorder %v3239_v39, 3  ;;  %v691_v38 = vld [vmem:[#allocation3 + $0x140] sm:$0xff] }
 0x12c   :  { %v3371_v17 = vadd.f32 %v650_v7, %v3298_v3  ;;  %v2574_v3 = vunpack.i.l.bf16 %v2573_v37 }
 0x12d   :  { %v443_v18 = vpop.f32.mrf.mxu1 }
 0x12e   :  { %v489_v20 = vadd.f32 %v443_v18, %v408_v14  ;;  %v2428_v14 = vsel %vm805_vm7, 1.0, %v2930_v10  ;;  %v412_v18 = vld [vmem:[#allocation3 + $0xa8] sm:$0xff]  ;;  %vm1079_vm7 = vcmp.eq.s32.totalorder %v3506_v34, 3 }
 0x130   :  { %v505_v25 = vmax.f32 %v489_v20, 0.0 }
 0x132   :  { %v651_v32 = vmul.f32 %v2570_v19, %v505_v25  ;;  %718 = vmatmul.f32.gmra.mxu2 %v505_v25  ;;  %v2621_v19 = vpack.i.bf16 %v2428_v14, %v2427_v22  ;;  %v2430_v14 = vsel %vm807_vm11, 1.0, %v2930_v10 }
 0x134   :  { %v3375_v40 = vadd.f32 %v651_v32, %v3304_v15  ;;  %v2426_v15 = vsel %vm803_vm3, 1.0, %v2930_v10  ;;  %2622 = vperm.xlu1 %2534, %v2621_v19   ;;  %v2593_v19 = vpop.permute.xlu1 %2592 }
 0x135   :  { %v446_v45 = vpop.f32.mrf.mxu1  ;;  %v2616_v61 = vpack.i.bf16 %v2426_v15, %v2425_v59 }
 0x136   :  { %v490_v47 = vadd.f32 %v446_v45, %v409_v35  ;;  %v413_v45 = vld [vmem:[#allocation3 + $0xb0] sm:$0xff] }
 0x137   :  { %2617 = vperm.xlu0 %2523, %v2616_v61  }
 0x138   :  { %v506_v50 = vmax.f32 %v490_v47, 0.0 }
 0x13a   :  { %v652_v58 = vmul.f32 %v2574_v3, %v506_v50  ;;  %721 = vmatmul.f32.gmra.mxu2 %v506_v50 }
 0x13c   :  { %v3384_v62 = vadd.f32 %v652_v58, %v376_v46  ;;  %v2583_v46 = vpop.permute.xlu2 %2582 }
 0x13d   :  { %v449_v23 = vpop.f32.mrf.mxu1  ;;  %v2584_v55 = vunpack.i.l.bf16 %v2583_v46  ;;  %v2585_v61 = vunpack.i.h.bf16 %v2583_v46  ;;  %v2433_v46 = vsel %vm810_vm12, 1.0, %v2930_v10 }
 0x13e   :  { %v491_v1 = vadd.f32 %v449_v23, %v410_v60 }
 0x140   :  { %v507_v28 = vmax.f32 %v491_v1, 0.0  ;;  %v415_v1 = vld [vmem:[#allocation3 + $0xc0] sm:$0xff] }
 0x142   :  { %v653_v29 = vmul.f32 %v2575_v57, %v507_v28  ;;  %724 = vmatmul.f32.gmra.mxu2 %v507_v28  ;;  %v2588_v28 = vpop.permute.xlu0 %2587 }
 0x143   :  { %v2589_v5 = vunpack.i.l.bf16 %v2588_v28 }
 0x144   :  { %v3392_v6 = vadd.f32 %v653_v29, %v377_v24  ;;  %v2598_v44 = vpop.permute.xlu2 %2597 }
 0x145   :  { %v452_v27 = vpop.f32.mrf.mxu1 }
 0x146   :  { %v492_v30 = vadd.f32 %v452_v27, %v411_v8  ;;  %v416_v27 = vld [vmem:[#allocation3 + $0xc8] sm:$0xff] }
 0x148   :  { %v508_v7 = vmax.f32 %v492_v30, 0.0  ;;  %v2631_v30 = vpack.i.bf16 %v2432_v11, %v2431_v9 }
 0x14a   :  { %v654_v21 = vmul.f32 %v2579_v13, %v508_v7  ;;  %727 = vmatmul.f32.gmra.mxu2 %v508_v7  ;;  %2632 = vperm.xlu0 %2523, %v2631_v30   ;;  %v2590_v7 = vunpack.i.h.bf16 %v2588_v28 }
 0x14c   :  { %v3399_v20 = vadd.f32 %v654_v21, %v3320_v41  ;;  %v414_v41 = vld [vmem:[#allocation3 + $0xb8] sm:$0xff] }
 0x14d   :  { %v455_v25 = vpop.f32.mrf.mxu1 }
 0x14e   :  { %v493_v32 = vadd.f32 %v455_v25, %v412_v18  ;;  %v417_v18 = vld [vmem:[#allocation3 + $0xd0] sm:$0xff]  ;;  %v2626_v25 = vpack.i.bf16 %v2430_v14, %v2429_v49  ;;  %v422_v49 = vld [vmem:[#allocation3 + $0xf8] sm:$0xff] }
 0x150   :  { %v509_v35 = vmax.f32 %v493_v32, 0.0  ;;  %2627 = vperm.xlu2 %2545, %v2626_v25  }
 0x152   :  { %v655_v37 = vmul.f32 %v2580_v26, %v509_v35  ;;  %730 = vmatmul.f32.gmra.mxu2 %v509_v35  ;;  %v2594_v35 = vunpack.i.l.bf16 %v2593_v19  ;;  %v2603_v30 = vpop.permute.xlu0 %2602 }
 0x154   :  { %v3402_v47 = vadd.f32 %v655_v37, %v3322_v51 }
 0x155   :  { %v458_v3 = vpop.f32.mrf.mxu1 }
 0x156   :  { %v494_v50 = vadd.f32 %v458_v3, %v413_v45  ;;  %v2434_v3 = vsel %vm811_vm13, 1.0, %v2930_v10 }
 0x158   :  { %v510_v58 = vmax.f32 %v494_v50, 0.0  ;;  %v418_v50 = vld [vmem:[#allocation3 + $0xd8] sm:$0xff] }
 0x15a   :  { %v656_v59 = vmul.f32 %v2584_v55, %v510_v58  ;;  %733 = vmatmul.f32.gmra.mxu2 %v510_v58  ;;  %v2636_v55 = vpack.i.bf16 %v2434_v3, %v2433_v46  ;;  %v683_v3 = vld [vmem:[#allocation3 + $0x100] sm:$0xff] }
 0x15c   :  { %v3405_v15 = vadd.f32 %v656_v59, %v3328_v63  ;;  %2637 = vperm.xlu1 %2534, %v2636_v55   ;;  %v2595_v59 = vunpack.i.h.bf16 %v2593_v19 }
 0x15d   :  { %v461_v60 = vpop.f32.mrf.mxu1 }
 0x15e   :  { %v495_v23 = vadd.f32 %v461_v60, %v414_v41 }
 0x160   :  { %v511_v24 = vmax.f32 %v495_v23, 0.0 }
 0x162   :  { %v657_v57 = vmul.f32 %v2585_v61, %v511_v24  ;;  %736 = vmatmul.f32.gmra.mxu2 %v511_v24 }
 0x164   :  { %v3408_v51 = vadd.f32 %v657_v57, %v3334_v12 }
 0x165   :  { %v464_v29 = vpop.f32.mrf.mxu1 }
 0x166   :  { %v496_v2 = vadd.f32 %v464_v29, %v415_v1  ;;  %v2599_v1 = vunpack.i.l.bf16 %v2598_v44 }
 0x168   :  { %v512_v8 = vmax.f32 %v496_v2, 0.0 }
 0x16a   :  { %v658_v63 = vmul.f32 %v2589_v5, %v512_v8  ;;  %739 = vmatmul.f32.gmra.mxu2 %v512_v8  ;;  %v2600_v8 = vunpack.i.h.bf16 %v2598_v44 }
 0x16c   :  { %v3415_v13 = vadd.f32 %v658_v63, %v3340_v31 }
 0x16d   :  { %v467_v12 = vpop.f32.mrf.mxu1 }
 0x16e   :  { %v497_v21 = vadd.f32 %v467_v12, %v416_v27  ;;  %v421_v27 = vld [vmem:[#allocation3 + $0xf0] sm:$0xff] }
 0x170   :  { %v513_v22 = vmax.f32 %v497_v21, 0.0  ;;  %v2604_v21 = vunpack.i.l.bf16 %v2603_v30 }
 0x172   :  { %v659_v48 = vmul.f32 %v2590_v7, %v513_v22  ;;  %742 = vmatmul.f32.gmra.mxu2 %v513_v22 }
 0x174   :  { %v3422_v31 = vadd.f32 %v659_v48, %v3342_v42 }
 0x175   :  { %v470_v26 = vpop.f32.mrf.mxu1 }
 0x176   :  { %v498_v32 = vadd.f32 %v470_v26, %v417_v18  ;;  %v2605_v18 = vunpack.i.h.bf16 %v2603_v30 }
 0x178   :  { %v514_v37 = vmax.f32 %v498_v32, 0.0 }
 0x17a   :  { %v660_v45 = vmul.f32 %v2594_v35, %v514_v37  ;;  %745 = vmatmul.f32.gmra.mxu2 %v514_v37  ;;  %v2641_v35 = vpack.i.bf16 %v2436_v54, %v2435_v53 }
 0x17c   :  { %v3429_v42 = vadd.f32 %v660_v45, %v3344_v56  ;;  %v420_v56 = vld [vmem:[#allocation3 + $0xe8] sm:$0xff]  ;;  %2642 = vperm.xlu2 %2545, %v2641_v35  }
 0x17d   :  { %v473_v58 = vpop.f32.mrf.mxu1 }
 0x17e   :  { %v499_v41 = vadd.f32 %v473_v58, %v418_v50  ;;  %v2608_v50 = vpop.permute.xlu1 %2607 }
 0x180   :  { %v515_v60 = vmax.f32 %v499_v41, 0.0 }
 0x182   :  { %v661_v61 = vmul.f32 %v2595_v59, %v515_v60  ;;  %748 = vmatmul.f32.gmra.mxu2 %v515_v60  ;;  %v2609_v59 = vunpack.i.l.bf16 %v2608_v50  ;;  %v3467_v60 = vld [vmem:[%s3998_s2 + $0x10] sm:$0xff] }
 0x183   :  { %vm1076_vm2 = vcmp.eq.s32.totalorder %v3467_v60, 3 }
 0x184   :  { %v3432_v23 = vadd.f32 %v661_v61, %v3348_v0 }
 0x185   :  { %v476_v24 = vpop.f32.mrf.mxu1 }
 0x186   :  { %v500_v57 = vadd.f32 %v476_v24, %v419_v43  ;;  %v2439_v43 = vsel %vm1076_vm2, 1.0, %v2930_v10  ;;  %v684_v24 = vld [vmem:[#allocation3 + $0x108] sm:$0xff] }
 0x188   :  { %v516_v28 = vmax.f32 %v500_v57, 0.0 }
 0x18a   :  { %v662_v29 = vmul.f32 %v2599_v1, %v516_v28  ;;  %751 = vmatmul.f32.gmra.mxu2 %v516_v28 }
 0x18c   :  { %v3435_v2 = vadd.f32 %v662_v29, %v3354_v16  ;;  %v2610_v29 = vunpack.i.h.bf16 %v2608_v50 }
 0x18d   :  { %v479_v5 = vpop.f32.mrf.mxu1 }
 0x18e   :  { %v501_v63 = vadd.f32 %v479_v5, %v420_v56 }
 0x190   :  { %v517_v9 = vmax.f32 %v501_v63, 0.0  ;;  %v685_v63 = vld [vmem:[#allocation3 + $0x110] sm:$0xff] }
 0x192   :  { %v663_v11 = vmul.f32 %v2600_v8, %v517_v9  ;;  %754 = vmatmul.f32.gmra.mxu2 %v517_v9  ;;  %v2613_v9 = vpop.permute.xlu2 %2612 }
 0x194   :  { %v3438_v0 = vadd.f32 %v663_v11, %v3360_v36  ;;  %v3448_v36 = vld [vmem:[%s3998_s2] sm:$0xff] }
 0x195   :  { %v482_v12 = vpop.f32.mrf.mxu1  ;;  %vm1074_vm0 = vcmp.eq.s32.totalorder %v3448_v36, 3  ;;  %vm1350_vm2 = vcmp.eq.s32.totalorder %v3448_v36, 4 }
 0x196   :  { %v502_v7 = vadd.f32 %v482_v12, %v421_v27  ;;  %v2437_v32 = vsel %vm1074_vm0, 1.0, %v2930_v10  ;;  %v2614_v12 = vunpack.i.l.bf16 %v2613_v9  ;;  %vm1352_vm0 = vcmp.eq.s32.totalorder %v3467_v60, 4 }
 0x198   :  { %v518_v22 = vmax.f32 %v502_v7, 0.0 }
 0x19a   :  { %v664_v48 = vmul.f32 %v2604_v21, %v518_v22  ;;  %757 = vmatmul.f32.gmra.mxu2 %v518_v22 }
 0x19c   :  { %v3441_v16 = vadd.f32 %v664_v48, %v3362_v52  ;;  %v3454_v52 = vld [vmem:[%s3998_s2 + $0x8] sm:$0xff] }
 0x19d   :  { %v485_v14 = vpop.f32.mrf.mxu1  ;;  %vm1075_vm1 = vcmp.eq.s32.totalorder %v3454_v52, 3 }
 0x19e   :  { %v503_v19 = vadd.f32 %v485_v14, %v422_v49  ;;  %v2438_v37 = vsel %vm1075_vm1, 1.0, %v2930_v10  ;;  %v2615_v49 = vunpack.i.h.bf16 %v2613_v9  ;;  %v2445_v9 = vsel %vm1082_vm8, 1.0, %v2930_v10 }
 0x19f   :  { %v2646_v46 = vpack.i.bf16 %v2438_v37, %v2437_v32  ;;  %v2443_v37 = vsel %vm1080_vm4, 1.0, %v2930_v10  ;;  %vm1354_vm4 = vcmp.eq.s32.totalorder %v3500_v33, 4 }
 0x1a0   :  { %v519_v25 = vmax.f32 %v503_v19, 0.0 }
 0x1a1   :  { %2647 = vperm.xlu0 %2523, %v2646_v46   ;;  %v2444_v46 = vsel %vm1081_vm5, 1.0, %v2930_v10  ;;  %vm1355_vm5 = vcmp.eq.s32.totalorder %v3506_v34, 4 }
 0x1a2   :  { %v665_v26 = vmul.f32 %v2605_v18, %v519_v25  ;;  %760 = vmatmul.f32.gmra.mxu2 %v519_v25  ;;  %v687_v25 = vld [vmem:[#allocation3 + $0x120] sm:$0xff]  ;;  %v2661_v50 = vpack.i.bf16 %v2444_v46, %v2443_v37 }
 0x1a4   :  { %v3462_v45 = vadd.f32 %v665_v26, %v3368_v4  ;;  %v3473_v4 = vld [vmem:[%s3998_s2 + $0x18] sm:$0xff] }
 0x1a5   :  { %vm1077_vm3 = vcmp.eq.s32.totalorder %v3473_v4, 3  ;;  %vm1353_vm1 = vcmp.eq.s32.totalorder %v3473_v4, 4 }
 0x1a6   :  { %v2440_v44 = vsel %vm1077_vm3, 1.0, %v2930_v10  ;;  %vm1351_vm3 = vcmp.eq.s32.totalorder %v3454_v52, 4 }
 0x1a7   :  { %v2651_v57 = vpack.i.bf16 %v2440_v44, %v2439_v43  ;;  %v2442_v43 = vsel %vm1079_vm7, 1.0, %v2930_v10  ;;  %v689_v44 = vld [vmem:[#allocation3 + $0x130] sm:$0xff] }
 0x1a9   :  { %2652 = vperm.xlu1 %2534, %v2651_v57   ;;  %v2618_v26 = vpop.permute.xlu0 %2617  ;;  %2662 = vperm.xlu0 %2523, %v2661_v50  }
 0x1aa   :  { %v2619_v32 = vunpack.i.l.bf16 %v2618_v26  ;;  %v2628_v39 = vpop.permute.xlu2 %2627 }
 0x1ad   :  { %v716_v55 = vpop.f32.mrf.mxu2 }
 0x1ae   :  { %v764_v58 = vadd.f32 %v716_v55, %v683_v3  ;;  %v688_v3 = vld [vmem:[#allocation3 + $0x128] sm:$0xff] }
 0x1b0   :  { %v780_v41 = vmax.f32 %v764_v58, 0.0  ;;  %v2620_v58 = vunpack.i.h.bf16 %v2618_v26 }
 0x1b2   :  { %v926_v61 = vmul.f32 %v2609_v59, %v780_v41  ;;  %991 = vmatmul.f32.vlgmr.msra.gmra.mxu3 %v780_v41 }
 0x1b4   :  { %v3479_v1 = vadd.f32 %v926_v61, %v3371_v17  ;;  %v686_v17 = vld [vmem:[#allocation3 + $0x118] sm:$0xff]  ;;  %v2441_v61 = vsel %vm1078_vm6, 1.0, %v2930_v10 }
 0x1b5   :  { %v719_v28 = vpop.f32.mrf.mxu2  ;;  %v2656_v57 = vpack.i.bf16 %v2442_v43, %v2441_v61 }
 0x1b6   :  { %v765_v56 = vadd.f32 %v719_v28, %v684_v24  ;;  %v2623_v24 = vpop.permute.xlu1 %2622 }
 0x1b7   :  { %2657 = vperm.xlu2 %2545, %v2656_v57  }
 0x1b8   :  { %v781_v5 = vmax.f32 %v765_v56, 0.0 }
 0x1ba   :  { %v927_v8 = vmul.f32 %v2610_v29, %v781_v5  ;;  %994 = vmatmul.f32.gmra.mxu3 %v781_v5  ;;  %v2624_v5 = vunpack.i.l.bf16 %v2623_v24 }
 0x1bc   :  { %v3482_v11 = vadd.f32 %v927_v8, %v3375_v40  ;;  %v2633_v50 = vpop.permute.xlu0 %2632 }
 0x1bd   :  { %v722_v27 = vpop.f32.mrf.mxu2 }
 0x1be   :  { %v766_v30 = vadd.f32 %v722_v27, %v685_v63  ;;  %v2446_v27 = vsel %vm1083_vm9, 1.0, %v2930_v10 }
 0x1c0   :  { %v782_v7 = vmax.f32 %v766_v30, 0.0  ;;  %v690_v30 = vld [vmem:[#allocation3 + $0x138] sm:$0xff] }
 0x1c2   :  { %v928_v21 = vmul.f32 %v2614_v12, %v782_v7  ;;  %997 = vmatmul.f32.gmra.mxu3 %v782_v7  ;;  %v2666_v12 = vpack.i.bf16 %v2446_v27, %v2445_v9  ;;  %v3556_v9 = vld [vmem:[%s3998_s2 + $0x58] sm:$0xff] }
 0x1c3   :  { %vm1085_vm13 = vcmp.eq.s32.totalorder %v3556_v9, 3 }
 0x1c4   :  { %v3485_v22 = vadd.f32 %v928_v21, %v3384_v62  ;;  %2667 = vperm.xlu1 %2534, %v2666_v12   ;;  %v2625_v21 = vunpack.i.h.bf16 %v2623_v24  ;;  %v695_v12 = vld [vmem:[#allocation3 + $0x160] sm:$0xff] }
 0x1c5   :  { %v725_v48 = vpop.f32.mrf.mxu2 }
 0x1c6   :  { %v767_v14 = vadd.f32 %v725_v48, %v686_v17 }
 0x1c8   :  { %v783_v18 = vmax.f32 %v767_v14, 0.0 }
 0x1ca   :  { %v929_v19 = vmul.f32 %v2615_v49, %v783_v18  ;;  %1000 = vmatmul.f32.gmra.mxu3 %v783_v18 }
 0x1cc   :  { %v3488_v40 = vadd.f32 %v929_v19, %v3392_v6 }
 0x1cd   :  { %v728_v53 = vpop.f32.mrf.mxu2 }
 0x1ce   :  { %v768_v54 = vadd.f32 %v728_v53, %v687_v25  ;;  %v2629_v25 = vunpack.i.l.bf16 %v2628_v39 }
 0x1d0   :  { %v784_v35 = vmax.f32 %v768_v54, 0.0 }
 0x1d2   :  { %v930_v62 = vmul.f32 %v2619_v32, %v784_v35  ;;  %1003 = vmatmul.f32.gmra.mxu3 %v784_v35  ;;  %v2630_v35 = vunpack.i.h.bf16 %v2628_v39 }
 0x1d4   :  { %v3495_v55 = vadd.f32 %v930_v62, %v3399_v20 }
 0x1d5   :  { %v731_v6 = vpop.f32.mrf.mxu2 }
 0x1d6   :  { %v769_v59 = vadd.f32 %v731_v6, %v688_v3  ;;  %v693_v3 = vld [vmem:[#allocation3 + $0x150] sm:$0xff] }
 0x1d8   :  { %v785_v41 = vmax.f32 %v769_v59, 0.0  ;;  %v2634_v59 = vunpack.i.l.bf16 %v2633_v50 }
 0x1da   :  { %v931_v20 = vmul.f32 %v2620_v58, %v785_v41  ;;  %1006 = vmatmul.f32.gmra.mxu3 %v785_v41 }
 0x1dc   :  { %v3512_v28 = vadd.f32 %v931_v20, %v3402_v47  ;;  %v3539_v20 = vld [vmem:[%s3998_s2 + $0x68] sm:$0xff] }
 0x1dd   :  { %v734_v29 = vpop.f32.mrf.mxu2  ;;  %vm1087_vm11 = vcmp.eq.s32.totalorder %v3539_v20, 3 }
 0x1de   :  { %v770_v56 = vadd.f32 %v734_v29, %v689_v44  ;;  %v2450_v43 = vsel %vm1087_vm11, 1.0, %v2930_v10  ;;  %v694_v44 = vld [vmem:[#allocation3 + $0x158] sm:$0xff]  ;;  %vm1361_vm11 = vcmp.eq.s32.totalorder %v3556_v9, 4 }
 0x1e0   :  { %v786_v8 = vmax.f32 %v770_v56, 0.0  ;;  %v2635_v56 = vunpack.i.h.bf16 %v2633_v50  ;;  %v697_v50 = vld [vmem:[#allocation3 + $0x170] sm:$0xff] }
 0x1e2   :  { %v932_v63 = vmul.f32 %v2624_v5, %v786_v8  ;;  %1009 = vmatmul.f32.gmra.mxu3 %v786_v8 }
 0x1e4   :  { %v3519_v47 = vadd.f32 %v932_v63, %v3405_v15  ;;  %v692_v15 = vld [vmem:[#allocation3 + $0x148] sm:$0xff]  ;;  %v3550_v63 = vld [vmem:[%s3998_s2 + $0x50] sm:$0xff] }
 0x1e5   :  { %v737_v7 = vpop.f32.mrf.mxu2  ;;  %vm1084_vm12 = vcmp.eq.s32.totalorder %v3550_v63, 3 }
 0x1e6   :  { %v771_v17 = vadd.f32 %v737_v7, %v690_v30  ;;  %v2447_v27 = vsel %vm1084_vm12, 1.0, %v2930_v10  ;;  %v2448_v30 = vsel %vm1085_vm13, 1.0, %v2930_v10  ;;  %v2638_v7 = vpop.permute.xlu1 %2637 }
 0x1e8   :  { %v787_v48 = vmax.f32 %v771_v17, 0.0 }
 0x1ea   :  { %v933_v49 = vmul.f32 %v2625_v21, %v787_v48  ;;  %1012 = vmatmul.f32.gmra.mxu3 %v787_v48  ;;  %v2671_v21 = vpack.i.bf16 %v2448_v30, %v2447_v27  ;;  %v3567_v48 = vld [vmem:[%s3998_s2 + $0x70] sm:$0xff]  ;;  %v2455_v30 = vsel %vm1352_vm0, 1.0, %v2930_v10  ;;  %vm1626_vm0 = vcmp.eq.s32.totalorder %v3448_v36, 5 }
 0x1eb   :  { %vm1088_vm14 = vcmp.eq.s32.totalorder %v3567_v48, 3  ;;  %vm1364_vm12 = vcmp.eq.s32.totalorder %v3567_v48, 4 }
 0x1ec   :  { %v3522_v14 = vadd.f32 %v933_v49, %v3408_v51  ;;  %v3573_v49 = vld [vmem:[%s3998_s2 + $0x78] sm:$0xff]  ;;  %2672 = vperm.xlu2 %2545, %v2671_v21   ;;  %v2451_v39 = vsel %vm1088_vm14, 1.0, %v2930_v10 }
 0x1ed   :  { %v740_v18 = vpop.f32.mrf.mxu2  ;;  %vm1089_vm15 = vcmp.eq.s32.totalorder %v3573_v49, 3  ;;  %vm1365_vm13 = vcmp.eq.s32.totalorder %v3573_v49, 4 }
 0x1ee   :  { %v772_v19 = vadd.f32 %v740_v18, %v691_v38 }
 0x1f0   :  { %v788_v26 = vmax.f32 %v772_v19, 0.0  ;;  %v2639_v19 = vunpack.i.l.bf16 %v2638_v7 }
 0x1f2   :  { %v934_v53 = vmul.f32 %v2629_v25, %v788_v26  ;;  %1015 = vmatmul.f32.gmra.mxu3 %v788_v26 }
 0x1f4   :  { %v3525_v54 = vadd.f32 %v934_v53, %v3415_v13  ;;  %v3533_v13 = vld [vmem:[%s3998_s2 + $0x60] sm:$0xff] }
 0x1f5   :  { %v743_v32 = vpop.f32.mrf.mxu2  ;;  %vm1086_vm10 = vcmp.eq.s32.totalorder %v3533_v13, 3  ;;  %vm1362_vm14 = vcmp.eq.s32.totalorder %v3533_v13, 4 }
 0x1f6   :  { %v773_v62 = vadd.f32 %v743_v32, %v692_v15  ;;  %v2449_v61 = vsel %vm1086_vm10, 1.0, %v2930_v10  ;;  %v696_v15 = vld [vmem:[#allocation3 + $0x168] sm:$0xff]  ;;  %vm1360_vm10 = vcmp.eq.s32.totalorder %v3550_v63, 4 }
 0x1f7   :  { %v2676_v24 = vpack.i.bf16 %v2450_v43, %v2449_v61 }
 0x1f8   :  { %v789_v37 = vmax.f32 %v773_v62, 0.0  ;;  %v2640_v62 = vunpack.i.h.bf16 %v2638_v7 }
 0x1f9   :  { %2677 = vperm.xlu0 %2523, %v2676_v24  }
 0x1fa   :  { %v935_v46 = vmul.f32 %v2630_v35, %v789_v37  ;;  %1018 = vmatmul.f32.gmra.mxu3 %v789_v37 }
 0x1fc   :  { %v3528_v51 = vadd.f32 %v935_v46, %v3422_v31 }
 0x1fd   :  { %v746_v6 = vpop.f32.mrf.mxu2 }
 0x1fe   :  { %v774_v58 = vadd.f32 %v746_v6, %v693_v3  ;;  %v2643_v6 = vpop.permute.xlu2 %2642 }
 0x200   :  { %v790_v41 = vmax.f32 %v774_v58, 0.0 }
 0x202   :  { %v936_v31 = vmul.f32 %v2634_v59, %v790_v41  ;;  %1021 = vmatmul.f32.gmra.mxu3 %v790_v41 }
 0x204   :  { %v3545_v57 = vadd.f32 %v936_v31, %v3429_v42  ;;  %v2644_v31 = vunpack.i.l.bf16 %v2643_v6 }
 0x205   :  { %v749_v29 = vpop.f32.mrf.mxu2 }
 0x206   :  { %v775_v5 = vadd.f32 %v749_v29, %v694_v44  ;;  %v698_v44 = vld [vmem:[#allocation3 + $0x178] sm:$0xff]  ;;  %v2645_v29 = vunpack.i.h.bf16 %v2643_v6  ;;  %v2458_v6 = vsel %vm1355_vm5, 1.0, %v2930_v10  ;;  %vm1629_vm5 = vcmp.eq.s32.totalorder %v3473_v4, 5 }
 0x208   :  { %v791_v8 = vmax.f32 %v775_v5, 0.0 }
 0x20a   :  { %v937_v42 = vmul.f32 %v2635_v56, %v791_v8  ;;  %1024 = vmatmul.f32.gmra.mxu3 %v791_v8 }
 0x20c   :  { %v3562_v17 = vadd.f32 %v937_v42, %v3432_v23  ;;  %v2452_v23 = vsel %vm1089_vm15, 1.0, %v2930_v10  ;;  %vm1363_vm15 = vcmp.eq.s32.totalorder %v3539_v20, 4 }
 0x20d   :  { %v752_v38 = vpop.f32.mrf.mxu2  ;;  %v2681_v25 = vpack.i.bf16 %v2452_v23, %v2451_v39 }
 0x20e   :  { %v776_v18 = vadd.f32 %v752_v38, %v695_v12 }
 0x20f   :  { %2682 = vperm.xlu1 %2534, %v2681_v25   ;;  %v2454_v25 = vsel %vm1351_vm3, 1.0, %v2930_v10  ;;  %vm1631_vm3 = vcmp.eq.s32.totalorder %v3506_v34, 5 }
 0x210   :  { %v792_v26 = vmax.f32 %v776_v18, 0.0 }
 0x212   :  { %v938_v53 = vmul.f32 %v2639_v19, %v792_v26  ;;  %1027 = vmatmul.f32.gmra.mxu3 %v792_v26  ;;  %v2453_v19 = vsel %vm1350_vm2, 1.0, %v2930_v10  ;;  %vm1630_vm2 = vcmp.eq.s32.totalorder %v3500_v33, 5 }
 0x213   :  { %v2648_v27 = vpop.permute.xlu0 %2647 }
 0x214   :  { %v3579_v32 = vadd.f32 %v938_v53, %v3435_v2  ;;  %v2649_v38 = vunpack.i.l.bf16 %v2648_v27  ;;  %v2686_v53 = vpack.i.bf16 %v2454_v25, %v2453_v19 }
 0x215   :  { %v755_v35 = vpop.f32.mrf.mxu2 }
 0x216   :  { %v777_v37 = vadd.f32 %v755_v35, %v696_v15  ;;  %v2650_v15 = vunpack.i.h.bf16 %v2648_v27  ;;  %2687 = vperm.xlu2 %2545, %v2686_v53   ;;  %v963_v27 = vld [vmem:[#allocation3 + $0x1a0] sm:$0xff] }
 0x218   :  { %v793_v46 = vmax.f32 %v777_v37, 0.0 }
 0x21a   :  { %v939_v3 = vmul.f32 %v2640_v62, %v793_v46  ;;  %1030 = vmatmul.f32.gmra.mxu3 %v793_v46  ;;  %v961_v46 = vld [vmem:[#allocation3 + $0x190] sm:$0xff] }
 0x21c   :  { %v3582_v58 = vadd.f32 %v939_v3, %v3438_v0  ;;  %v959_v0 = vld [vmem:[#allocation3 + $0x180] sm:$0xff]  ;;  %v2653_v3 = vpop.permute.xlu1 %2652 }
 0x21d   :  { %v758_v59 = vpop.f32.mrf.mxu2 }
 0x21e   :  { %v778_v41 = vadd.f32 %v758_v59, %v697_v50  ;;  %v2457_v50 = vsel %vm1354_vm4, 1.0, %v2930_v10  ;;  %vm1628_vm4 = vcmp.eq.s32.totalorder %v3467_v60, 5 }
 0x21f   :  { %v2471_v34 = vsel %vm1628_vm4, 1.0, %v2930_v10 }
 0x220   :  { %v794_v61 = vmax.f32 %v778_v41, 0.0  ;;  %v2696_v41 = vpack.i.bf16 %v2458_v6, %v2457_v50 }
 0x222   :  { %v940_v43 = vmul.f32 %v2644_v31, %v794_v61  ;;  %1033 = vmatmul.f32.gmra.mxu3 %v794_v61  ;;  %v2654_v61 = vunpack.i.l.bf16 %v2653_v3  ;;  %2697 = vperm.xlu1 %2534, %v2696_v41  }
 0x224   :  { %v3585_v2 = vadd.f32 %v940_v43, %v3441_v16  ;;  %v2456_v16 = vsel %vm1353_vm1, 1.0, %v2930_v10  ;;  %vm1627_vm1 = vcmp.eq.s32.totalorder %v3454_v52, 5 }
 0x225   :  { %v761_v24 = vpop.f32.mrf.mxu2  ;;  %v2691_v7 = vpack.i.bf16 %v2456_v16, %v2455_v30  ;;  %v2658_v30 = vpop.permute.xlu2 %2657 }
 0x226   :  { %v779_v56 = vadd.f32 %v761_v24, %v698_v44  ;;  %v962_v24 = vld [vmem:[#allocation3 + $0x198] sm:$0xff]  ;;  %v2660_v19 = vunpack.i.h.bf16 %v2658_v30 }
 0x227   :  { %2692 = vperm.xlu0 %2523, %v2691_v7  }
 0x228   :  { %v795_v5 = vmax.f32 %v779_v56, 0.0 }
 0x22a   :  { %v941_v8 = vmul.f32 %v2645_v29, %v795_v5  ;;  %1036 = vmatmul.f32.gmra.mxu3 %v795_v5  ;;  %v2655_v5 = vunpack.i.h.bf16 %v2653_v3 }
 0x22c   :  { %v3588_v42 = vadd.f32 %v941_v8, %v3462_v45  ;;  %v960_v45 = vld [vmem:[#allocation3 + $0x188] sm:$0xff] }
 0x235   :  { %v992_v12 = vpop.f32.mrf.mxu3 }
 0x236   :  { %v1040_v21 = vadd.f32 %v992_v12, %v959_v0 }
 0x238   :  { %v1056_v39 = vmax.f32 %v1040_v21, 0.0  ;;  %v2659_v21 = vunpack.i.l.bf16 %v2658_v30 }
 0x23a   :  { %v1202_v23 = vmul.f32 %v2649_v38, %v1056_v39  ;;  %1267 = vmatmul.f32.vlgmr.msrb.gmra.mxu0 %v1056_v39 }
 0x23c   :  { %v3597_v18 = vadd.f32 %v1202_v23, %v3479_v1  ;;  %v964_v23 = vld [vmem:[#allocation3 + $0x1a8] sm:$0xff] }
 0x23d   :  { %v995_v26 = vpop.f32.mrf.mxu3 }
 0x23e   :  { %v1041_v35 = vadd.f32 %v995_v26, %v960_v45 }
 0x240   :  { %v1057_v62 = vmax.f32 %v1041_v35, 0.0  ;;  %v2663_v35 = vpop.permute.xlu0 %2662 }
 0x242   :  { %v1203_v37 = vmul.f32 %v2650_v15, %v1057_v62  ;;  %1270 = vmatmul.f32.gmra.mxu0 %v1057_v62  ;;  %v965_v15 = vld [vmem:[#allocation3 + $0x1b0] sm:$0xff] }
 0x244   :  { %v3604_v1 = vadd.f32 %v1203_v37, %v3482_v11 }
 0x245   :  { %v998_v59 = vpop.f32.mrf.mxu3 }
 0x246   :  { %v1042_v31 = vadd.f32 %v998_v59, %v961_v46  ;;  %v2664_v59 = vunpack.i.l.bf16 %v2663_v35 }
 0x248   :  { %v1058_v43 = vmax.f32 %v1042_v31, 0.0 }
 0x24a   :  { %v1204_v44 = vmul.f32 %v2654_v61, %v1058_v43  ;;  %1273 = vmatmul.f32.gmra.mxu0 %v1058_v43  ;;  %v966_v61 = vld [vmem:[#allocation3 + $0x1b8] sm:$0xff]  ;;  %v3637_v43 = vld [vmem:[%s3998_s2 + $0x30] sm:$0xff] }
 0x24b   :  { %vm1356_vm8 = vcmp.eq.s32.totalorder %v3637_v43, 4  ;;  %vm1908_vm4 = vcmp.eq.s32.totalorder %v3637_v43, 6 }
 0x24c   :  { %v3609_v29 = vadd.f32 %v1204_v44, %v3485_v22 }
 0x24d   :  { %v1001_v56 = vpop.f32.mrf.mxu3 }
 0x24e   :  { %v1043_v11 = vadd.f32 %v1001_v56, %v962_v24  ;;  %v2459_v24 = vsel %vm1356_vm8, 1.0, %v2930_v10  ;;  %vm1636_vm8 = vcmp.eq.s32.totalorder %v3550_v63, 5 }
 0x250   :  { %v1059_v8 = vmax.f32 %v1043_v11, 0.0 }
 0x252   :  { %v1205_v0 = vmul.f32 %v2655_v5, %v1059_v8  ;;  %1276 = vmatmul.f32.gmra.mxu0 %v1059_v8  ;;  %v2665_v8 = vunpack.i.h.bf16 %v2663_v35 }
 0x254   :  { %v3612_v16 = vadd.f32 %v1205_v0, %v3488_v40  ;;  %v3620_v40 = vld [vmem:[%s3998_s2 + $0x40] sm:$0xff] }
 0x255   :  { %v1004_v12 = vpop.f32.mrf.mxu3  ;;  %vm1358_vm6 = vcmp.eq.s32.totalorder %v3620_v40, 4 }
 0x256   :  { %v1044_v7 = vadd.f32 %v1004_v12, %v963_v27  ;;  %v2461_v37 = vsel %vm1358_vm6, 1.0, %v2930_v10  ;;  %v967_v12 = vld [vmem:[#allocation3 + $0x1c0] sm:$0xff]  ;;  %vm1632_vm6 = vcmp.eq.s32.totalorder %v3637_v43, 5 }
 0x257   :  { %v2475_v4 = vsel %vm1632_vm6, 1.0, %v2930_v10 }
 0x258   :  { %v1060_v38 = vmax.f32 %v1044_v7, 0.0  ;;  %v2668_v7 = vpop.permute.xlu1 %2667 }
 0x25a   :  { %v1206_v39 = vmul.f32 %v2659_v21, %v1060_v38  ;;  %1279 = vmatmul.f32.gmra.mxu0 %v1060_v38  ;;  %v2463_v21 = vsel %vm1360_vm10, 1.0, %v2930_v10  ;;  %v2464_v38 = vsel %vm1361_vm11, 1.0, %v2930_v10  ;;  %vm1634_vm10 = vcmp.eq.s32.totalorder %v3620_v40, 5 }
 0x25c   :  { %v3615_v22 = vadd.f32 %v1206_v39, %v3495_v55  ;;  %v3626_v55 = vld [vmem:[%s3998_s2 + $0x48] sm:$0xff] }
 0x25d   :  { %v1007_v45 = vpop.f32.mrf.mxu3  ;;  %vm1359_vm7 = vcmp.eq.s32.totalorder %v3626_v55, 4  ;;  %vm1635_vm11 = vcmp.eq.s32.totalorder %v3626_v55, 5 }
 0x25e   :  { %v1045_v25 = vadd.f32 %v1007_v45, %v964_v23  ;;  %v2462_v46 = vsel %vm1359_vm7, 1.0, %v2930_v10  ;;  %v2711_v23 = vpack.i.bf16 %v2464_v38, %v2463_v21  ;;  %v2467_v21 = vsel %vm1364_vm12, 1.0, %v2930_v10 }
 0x25f   :  { %v2706_v50 = vpack.i.bf16 %v2462_v46, %v2461_v37  ;;  %v2670_v37 = vunpack.i.h.bf16 %v2668_v7  ;;  %vm1638_vm12 = vcmp.eq.s32.totalorder %v3533_v13, 5 }
 0x260   :  { %v1061_v26 = vmax.f32 %v1045_v25, 0.0  ;;  %2712 = vperm.xlu1 %2534, %v2711_v23  }
 0x261   :  { %2707 = vperm.xlu0 %2523, %v2706_v50   ;;  %v969_v50 = vld [vmem:[#allocation3 + $0x1d0] sm:$0xff] }
 0x262   :  { %v1207_v53 = vmul.f32 %v2660_v19, %v1061_v26  ;;  %1282 = vmatmul.f32.gmra.mxu0 %v1061_v26  ;;  %v2669_v19 = vunpack.i.l.bf16 %v2668_v7 }
 0x264   :  { %v3630_v62 = vadd.f32 %v1207_v53, %v3512_v28  ;;  %v3643_v28 = vld [vmem:[%s3998_s2 + $0x38] sm:$0xff]  ;;  %v968_v53 = vld [vmem:[#allocation3 + $0x1c8] sm:$0xff] }
 0x265   :  { %v1010_v3 = vpop.f32.mrf.mxu3  ;;  %vm1357_vm9 = vcmp.eq.s32.totalorder %v3643_v28, 4  ;;  %vm1633_vm7 = vcmp.eq.s32.totalorder %v3643_v28, 5 }
 0x266   :  { %v1046_v6 = vadd.f32 %v1010_v3, %v965_v15  ;;  %v2460_v56 = vsel %vm1357_vm9, 1.0, %v2930_v10  ;;  %vm1637_vm9 = vcmp.eq.s32.totalorder %v3556_v9, 5  ;;  %v2477_v9 = vsel %vm1634_vm10, 1.0, %v2930_v10 }
 0x267   :  { %v2701_v11 = vpack.i.bf16 %v2460_v56, %v2459_v24 }
 0x268   :  { %v1062_v41 = vmax.f32 %v1046_v6, 0.0  ;;  %v2673_v6 = vpop.permute.xlu2 %2672 }
 0x269   :  { %2702 = vperm.xlu2 %2545, %v2701_v11  }
 0x26a   :  { %v1208_v31 = vmul.f32 %v2664_v59, %v1062_v41  ;;  %1285 = vmatmul.f32.gmra.mxu0 %v1062_v41 }
 0x26b   :  { %v2678_v7 = vpop.permute.xlu0 %2677 }
 0x26c   :  { %v3647_v44 = vadd.f32 %v1208_v31, %v3519_v47 }
 0x26d   :  { %v1013_v5 = vpop.f32.mrf.mxu3 }
 0x26e   :  { %v1047_v0 = vadd.f32 %v1013_v5, %v966_v61  ;;  %v2674_v61 = vunpack.i.l.bf16 %v2673_v6  ;;  %v970_v5 = vld [vmem:[#allocation3 + $0x1d8] sm:$0xff] }
 0x270   :  { %v1063_v27 = vmax.f32 %v1047_v0, 0.0 }
 0x272   :  { %v1209_v30 = vmul.f32 %v2665_v8, %v1063_v27  ;;  %1288 = vmatmul.f32.gmra.mxu0 %v1063_v27  ;;  %v2675_v8 = vunpack.i.h.bf16 %v2673_v6 }
 0x274   :  { %v3654_v47 = vadd.f32 %v1209_v30, %v3522_v14 }
 0x275   :  { %v1016_v39 = vpop.f32.mrf.mxu3 }
 0x276   :  { %v1048_v45 = vadd.f32 %v1016_v39, %v967_v12  ;;  %v971_v12 = vld [vmem:[#allocation3 + $0x1e0] sm:$0xff] }
 0x278   :  { %v1064_v25 = vmax.f32 %v1048_v45, 0.0  ;;  %v2679_v45 = vunpack.i.l.bf16 %v2678_v7 }
 0x27a   :  { %v1210_v26 = vmul.f32 %v2669_v19, %v1064_v25  ;;  %1291 = vmatmul.f32.gmra.mxu0 %v1064_v25 }
 0x27c   :  { %v3659_v15 = vadd.f32 %v1210_v26, %v3525_v54  ;;  %v972_v26 = vld [vmem:[#allocation3 + $0x1e8] sm:$0xff] }
 0x27d   :  { %v1019_v35 = vpop.f32.mrf.mxu3 }
 0x27e   :  { %v1049_v14 = vadd.f32 %v1019_v35, %v968_v53  ;;  %v2465_v53 = vsel %vm1362_vm14, 1.0, %v2930_v10  ;;  %v2466_v35 = vsel %vm1363_vm15, 1.0, %v2930_v10  ;;  %vm1640_vm14 = vcmp.eq.s32.totalorder %v3567_v48, 5 }
 0x27f   :  { %vm1641_vm15 = vcmp.eq.s32.totalorder %v3573_v49, 5  ;;  %v2483_v48 = vsel %vm1640_vm14, 1.0, %v2930_v10 }
 0x280   :  { %v1065_v46 = vmax.f32 %v1049_v14, 0.0  ;;  %v2716_v14 = vpack.i.bf16 %v2466_v35, %v2465_v53  ;;  %v1236_v53 = vld [vmem:[#allocation3 + $0x208] sm:$0xff]  ;;  %v2484_v49 = vsel %vm1641_vm15, 1.0, %v2930_v10 }
 0x282   :  { %v1211_v3 = vmul.f32 %v2670_v37, %v1065_v46  ;;  %1294 = vmatmul.f32.gmra.mxu0 %v1065_v46  ;;  %v2680_v46 = vunpack.i.h.bf16 %v2678_v7  ;;  %2717 = vperm.xlu2 %2545, %v2716_v14  }
 0x284   :  { %v3662_v59 = vadd.f32 %v1211_v3, %v3528_v51 }
 0x285   :  { %v1022_v41 = vpop.f32.mrf.mxu3 }
 0x286   :  { %v1050_v31 = vadd.f32 %v1022_v41, %v969_v50  ;;  %v973_v41 = vld [vmem:[#allocation3 + $0x1f0] sm:$0xff] }
 0x288   :  { %v1066_v24 = vmax.f32 %v1050_v31, 0.0  ;;  %v2683_v31 = vpop.permute.xlu1 %2682 }
 0x289   :  { %v2685_v7 = vunpack.i.h.bf16 %v2683_v31 }
 0x28a   :  { %v1212_v56 = vmul.f32 %v2674_v61, %v1066_v24  ;;  %1297 = vmatmul.f32.gmra.mxu0 %v1066_v24 }
 0x28c   :  { %v3665_v54 = vadd.f32 %v1212_v56, %v3545_v57  ;;  %v2468_v57 = vsel %vm1365_vm13, 1.0, %v2930_v10  ;;  %v2684_v56 = vunpack.i.l.bf16 %v2683_v31  ;;  %vm1639_vm13 = vcmp.eq.s32.totalorder %v3539_v20, 5 }
 0x28d   :  { %v1025_v11 = vpop.f32.mrf.mxu3  ;;  %v2721_v39 = vpack.i.bf16 %v2468_v57, %v2467_v21 }
 0x28e   :  { %v1051_v0 = vadd.f32 %v1025_v11, %v970_v5  ;;  %v2469_v5 = vsel %vm1626_vm0, 1.0, %v2930_v10  ;;  %v2470_v11 = vsel %vm1627_vm1, 1.0, %v2930_v10 }
 0x28f   :  { %2722 = vperm.xlu0 %2523, %v2721_v39   ;;  %v2688_v39 = vpop.permute.xlu2 %2687 }
 0x290   :  { %v1067_v27 = vmax.f32 %v1051_v0, 0.0 }
 0x292   :  { %v1213_v30 = vmul.f32 %v2675_v8, %v1067_v27  ;;  %1300 = vmatmul.f32.gmra.mxu0 %v1067_v27  ;;  %v2726_v8 = vpack.i.bf16 %v2470_v11, %v2469_v5 }
 0x294   :  { %v3670_v51 = vadd.f32 %v1213_v30, %v3562_v17  ;;  %2727 = vperm.xlu1 %2534, %v2726_v8   ;;  %v974_v30 = vld [vmem:[#allocation3 + $0x1f8] sm:$0xff] }
 0x295   :  { %v1028_v38 = vpop.f32.mrf.mxu3  ;;  %v1238_v8 = vld [vmem:[#allocation3 + $0x218] sm:$0xff] }
 0x296   :  { %v1052_v23 = vadd.f32 %v1028_v38, %v971_v12  ;;  %v1235_v38 = vld [vmem:[#allocation3 + $0x200] sm:$0xff] }
 0x298   :  { %v1068_v19 = vmax.f32 %v1052_v23, 0.0 }
 0x29a   :  { %v1214_v25 = vmul.f32 %v2679_v45, %v1068_v19  ;;  %1303 = vmatmul.f32.gmra.mxu0 %v1068_v19  ;;  %v2689_v19 = vunpack.i.l.bf16 %v2688_v39 }
 0x29c   :  { %v3677_v17 = vadd.f32 %v1214_v25, %v3579_v32 }
 0x29d   :  { %v1031_v37 = vpop.f32.mrf.mxu3 }
 0x29e   :  { %v1053_v3 = vadd.f32 %v1031_v37, %v972_v26  ;;  %v2690_v37 = vunpack.i.h.bf16 %v2688_v39 }
 0x2a0   :  { %v1069_v50 = vmax.f32 %v1053_v3, 0.0 }
 0x2a2   :  { %v1215_v6 = vmul.f32 %v2680_v46, %v1069_v50  ;;  %1306 = vmatmul.f32.gmra.mxu0 %v1069_v50  ;;  %v2693_v50 = vpop.permute.xlu0 %2692 }
 0x2a4   :  { %v3682_v61 = vadd.f32 %v1215_v6, %v3582_v58 }
 0x2a5   :  { %v1034_v24 = vpop.f32.mrf.mxu3 }
 0x2a6   :  { %v1054_v32 = vadd.f32 %v1034_v24, %v973_v41  ;;  %v2473_v41 = vsel %vm1630_vm2, 1.0, %v2930_v10 }
 0x2a8   :  { %v1070_v0 = vmax.f32 %v1054_v32, 0.0 }
 0x2aa   :  { %v1216_v27 = vmul.f32 %v2684_v56, %v1070_v0  ;;  %1309 = vmatmul.f32.gmra.mxu0 %v1070_v0  ;;  %v2694_v56 = vunpack.i.l.bf16 %v2693_v50 }
 0x2ac   :  { %v3689_v58 = vadd.f32 %v1216_v27, %v3585_v2 }
 0x2ad   :  { %v1037_v12 = vpop.f32.mrf.mxu3 }
 0x2ae   :  { %v1055_v36 = vadd.f32 %v1037_v12, %v974_v30  ;;  %v2695_v30 = vunpack.i.h.bf16 %v2693_v50 }
 0x2b0   :  { %v1071_v21 = vmax.f32 %v1055_v36, 0.0 }
 0x2b2   :  { %v1217_v52 = vmul.f32 %v2685_v7, %v1071_v21  ;;  %1312 = vmatmul.f32.gmra.mxu0 %v1071_v21  ;;  %v1239_v21 = vld [vmem:[#allocation3 + $0x220] sm:$0xff] }
 0x2b4   :  { %v3692_v57 = vadd.f32 %v1217_v52, %v3588_v42  ;;  %v1237_v42 = vld [vmem:[#allocation3 + $0x210] sm:$0xff]  ;;  %v2698_v52 = vpop.permute.xlu1 %2697 }
 0x2b7   :  { %v1268_v23 = vpop.f32.mrf.mxu0 }
 0x2b8   :  { %v1316_v45 = vadd.f32 %v1268_v23, %v1235_v38 }
 0x2ba   :  { %v1332_v25 = vmax.f32 %v1316_v45, 0.0  ;;  %v2699_v45 = vunpack.i.l.bf16 %v2698_v52 }
 0x2bc   :  { %v1478_v26 = vmul.f32 %v2689_v19, %v1332_v25  ;;  %1543 = vmatmul.f32.vlgmr.msrb.gmra.mxu1 %v1332_v25 }
 0x2be   :  { %v3695_v2 = vadd.f32 %v1478_v26, %v3597_v18  ;;  %v2474_v18 = vsel %vm1631_vm3, 1.0, %v2930_v10  ;;  %v1240_v26 = vld [vmem:[#allocation3 + $0x228] sm:$0xff] }
 0x2bf   :  { %v1271_v35 = vpop.f32.mrf.mxu0  ;;  %v2736_v24 = vpack.i.bf16 %v2474_v18, %v2473_v41 }
 0x2c0   :  { %v1317_v14 = vadd.f32 %v1271_v35, %v1236_v53 }
 0x2c1   :  { %2737 = vperm.xlu0 %2523, %v2736_v24  }
 0x2c2   :  { %v1333_v46 = vmax.f32 %v1317_v14, 0.0 }
 0x2c4   :  { %v1479_v3 = vmul.f32 %v2690_v37, %v1333_v46  ;;  %1546 = vmatmul.f32.gmra.mxu1 %v1333_v46  ;;  %v2700_v37 = vunpack.i.h.bf16 %v2698_v52 }
 0x2c6   :  { %v3700_v6 = vadd.f32 %v1479_v3, %v3604_v1  ;;  %v2472_v1 = vsel %vm1629_vm5, 1.0, %v2930_v10  ;;  %v1241_v3 = vld [vmem:[#allocation3 + $0x230] sm:$0xff]  ;;  %vm1909_vm5 = vcmp.eq.s32.totalorder %v3643_v28, 6 }
 0x2c7   :  { %v1274_v31 = vpop.f32.mrf.mxu0  ;;  %v2731_v27 = vpack.i.bf16 %v2472_v1, %v2471_v34 }
 0x2c8   :  { %v1318_v32 = vadd.f32 %v1274_v31, %v1237_v42  ;;  %v2703_v42 = vpop.permute.xlu2 %2702 }
 0x2c9   :  { %2732 = vperm.xlu2 %2545, %v2731_v27   ;;  %v2704_v31 = vunpack.i.l.bf16 %v2703_v42 }
 0x2ca   :  { %v1334_v5 = vmax.f32 %v1318_v32, 0.0 }
 0x2cc   :  { %v1480_v11 = vmul.f32 %v2694_v56, %v1334_v5  ;;  %1549 = vmatmul.f32.gmra.mxu1 %v1334_v5  ;;  %v1242_v56 = vld [vmem:[#allocation3 + $0x238] sm:$0xff] }
 0x2ce   :  { %v3707_v33 = vadd.f32 %v1480_v11, %v3609_v29  ;;  %v2476_v29 = vsel %vm1633_vm7, 1.0, %v2930_v10  ;;  %v2705_v11 = vunpack.i.h.bf16 %v2703_v42 }
 0x2cf   :  { %v1277_v0 = vpop.f32.mrf.mxu0  ;;  %v2741_v39 = vpack.i.bf16 %v2476_v29, %v2475_v4  ;;  %v1244_v29 = vld [vmem:[#allocation3 + $0x248] sm:$0xff] }
 0x2d0   :  { %v1319_v12 = vadd.f32 %v1277_v0, %v1238_v8  ;;  %v1243_v0 = vld [vmem:[#allocation3 + $0x240] sm:$0xff] }
 0x2d1   :  { %2742 = vperm.xlu1 %2534, %v2741_v39  }
 0x2d2   :  { %v1335_v7 = vmax.f32 %v1319_v12, 0.0 }
 0x2d3   :  { %v2708_v27 = vpop.permute.xlu0 %2707 }
 0x2d4   :  { %v1481_v36 = vmul.f32 %v2695_v30, %v1335_v7  ;;  %1552 = vmatmul.f32.gmra.mxu1 %v1335_v7  ;;  %v2479_v30 = vsel %vm1636_vm8, 1.0, %v2930_v10  ;;  %vm1910_vm8 = vcmp.eq.s32.totalorder %v3620_v40, 6 }
 0x2d6   :  { %v3714_v60 = vadd.f32 %v1481_v36, %v3612_v16 }
 0x2d7   :  { %v1280_v38 = vpop.f32.mrf.mxu0 }
 0x2d8   :  { %v1320_v23 = vadd.f32 %v1280_v38, %v1239_v21  ;;  %v2709_v21 = vunpack.i.l.bf16 %v2708_v27 }
 0x2da   :  { %v1336_v19 = vmax.f32 %v1320_v23, 0.0  ;;  %v2710_v23 = vunpack.i.h.bf16 %v2708_v27 }
 0x2dc   :  { %v1482_v25 = vmul.f32 %v2699_v45, %v1336_v19  ;;  %1555 = vmatmul.f32.gmra.mxu1 %v1336_v19 }
 0x2de   :  { %v3719_v53 = vadd.f32 %v1482_v25, %v3615_v22 }
 0x2df   :  { %v1283_v35 = vpop.f32.mrf.mxu0 }
 0x2e0   :  { %v1321_v16 = vadd.f32 %v1283_v35, %v1240_v26  ;;  %v1245_v26 = vld [vmem:[#allocation3 + $0x250] sm:$0xff]  ;;  %v2713_v35 = vpop.permute.xlu1 %2712 }
 0x2e1   :  { %v2714_v42 = vunpack.i.l.bf16 %v2713_v35 }
 0x2e2   :  { %v1337_v14 = vmax.f32 %v1321_v16, 0.0  ;;  %v2482_v16 = vsel %vm1639_vm13, 1.0, %v2930_v10 }
 0x2e4   :  { %v1483_v46 = vmul.f32 %v2700_v37, %v1337_v14  ;;  %1558 = vmatmul.f32.gmra.mxu1 %v1337_v14  ;;  %v2481_v37 = vsel %vm1638_vm12, 1.0, %v2930_v10 }
 0x2e6   :  { %v3722_v50 = vadd.f32 %v1483_v46, %v3630_v62  ;;  %v2756_v46 = vpack.i.bf16 %v2482_v16, %v2481_v37 }
 0x2e7   :  { %v1286_v41 = vpop.f32.mrf.mxu0 }
 0x2e8   :  { %v1322_v18 = vadd.f32 %v1286_v41, %v1241_v3  ;;  %2757 = vperm.xlu1 %2534, %v2756_v46  }
 0x2ea   :  { %v1338_v24 = vmax.f32 %v1322_v18, 0.0 }
 0x2ec   :  { %v1484_v32 = vmul.f32 %v2704_v31, %v1338_v24  ;;  %1561 = vmatmul.f32.gmra.mxu1 %v1338_v24  ;;  %v1246_v31 = vld [vmem:[#allocation3 + $0x258] sm:$0xff]  ;;  %v2715_v24 = vunpack.i.h.bf16 %v2713_v35  ;;  %v2761_v35 = vpack.i.bf16 %v2484_v49, %v2483_v48 }
 0x2ee   :  { %v3725_v22 = vadd.f32 %v1484_v32, %v3647_v44  ;;  %v2480_v44 = vsel %vm1637_vm9, 1.0, %v2930_v10  ;;  %vm1911_vm9 = vcmp.eq.s32.totalorder %v3626_v55, 6 }
 0x2ef   :  { %v1289_v5 = vpop.f32.mrf.mxu0  ;;  %v2751_v7 = vpack.i.bf16 %v2480_v44, %v2479_v30  ;;  %v1248_v44 = vld [vmem:[#allocation3 + $0x268] sm:$0xff] }
 0x2f0   :  { %v1323_v8 = vadd.f32 %v1289_v5, %v1242_v56  ;;  %v1247_v5 = vld [vmem:[#allocation3 + $0x260] sm:$0xff] }
 0x2f1   :  { %2752 = vperm.xlu0 %2523, %v2751_v7  }
 0x2f2   :  { %v1339_v34 = vmax.f32 %v1323_v8, 0.0 }
 0x2f4   :  { %v1485_v1 = vmul.f32 %v2705_v11, %v1339_v34  ;;  %1564 = vmatmul.f32.gmra.mxu1 %v1339_v34  ;;  %v2718_v11 = vpop.permute.xlu2 %2717 }
 0x2f5   :  { %v2720_v7 = vunpack.i.h.bf16 %v2718_v11 }
 0x2f6   :  { %v3730_v62 = vadd.f32 %v1485_v1, %v3654_v47  ;;  %v2478_v47 = vsel %vm1635_vm11, 1.0, %v2930_v10 }
 0x2f7   :  { %v1292_v12 = vpop.f32.mrf.mxu0  ;;  %v2746_v39 = vpack.i.bf16 %v2478_v47, %v2477_v9 }
 0x2f8   :  { %v1324_v36 = vadd.f32 %v1292_v12, %v1243_v0  ;;  %v2719_v0 = vunpack.i.l.bf16 %v2718_v11 }
 0x2f9   :  { %2747 = vperm.xlu2 %2545, %v2746_v39  }
 0x2fa   :  { %v1340_v52 = vmax.f32 %v1324_v36, 0.0 }
 0x2fc   :  { %v1486_v4 = vmul.f32 %v2709_v21, %v1340_v52  ;;  %1567 = vmatmul.f32.gmra.mxu1 %v1340_v52 }
 0x2fe   :  { %v3737_v63 = vadd.f32 %v1486_v4, %v3659_v15  ;;  %v1249_v4 = vld [vmem:[#allocation3 + $0x270] sm:$0xff] }
 0x2ff   :  { %v1295_v38 = vpop.f32.mrf.mxu0 }
 0x300   :  { %v1325_v45 = vadd.f32 %v1295_v38, %v1244_v29 }
 0x301   :  { %v2723_v29 = vpop.permute.xlu0 %2722  ;;  %2762 = vperm.xlu2 %2545, %v2761_v35  }
 0x302   :  { %v1341_v19 = vmax.f32 %v1325_v45, 0.0  ;;  %v2724_v38 = vunpack.i.l.bf16 %v2723_v29  ;;  %v1250_v45 = vld [vmem:[#allocation3 + $0x278] sm:$0xff]  ;;  %v2725_v16 = vunpack.i.h.bf16 %v2723_v29 }
 0x304   :  { %v1487_v25 = vmul.f32 %v2710_v23, %v1341_v19  ;;  %1570 = vmatmul.f32.gmra.mxu1 %v1341_v19 }
 0x306   :  { %v3744_v15 = vadd.f32 %v1487_v25, %v3662_v59 }
 0x307   :  { %v1298_v14 = vpop.f32.mrf.mxu0 }
 0x308   :  { %v1326_v3 = vadd.f32 %v1298_v14, %v1245_v26 }
 0x30a   :  { %v1342_v41 = vmax.f32 %v1326_v3, 0.0 }
 0x30c   :  { %v1488_v18 = vmul.f32 %v2714_v42, %v1342_v41  ;;  %1573 = vmatmul.f32.gmra.mxu1 %v1342_v41  ;;  %v1511_v41 = vld [vmem:[#allocation3 + $0x280] sm:$0xff] }
 0x30e   :  { %v3749_v13 = vadd.f32 %v1488_v18, %v3665_v54  ;;  %v2728_v18 = vpop.permute.xlu1 %2727 }
 0x30f   :  { %v1301_v20 = vpop.f32.mrf.mxu0 }
 0x310   :  { %v1327_v59 = vadd.f32 %v1301_v20, %v1246_v31 }
 0x312   :  { %v1343_v32 = vmax.f32 %v1327_v59, 0.0 }
 0x314   :  { %v1489_v56 = vmul.f32 %v2715_v24, %v1343_v32  ;;  %1576 = vmatmul.f32.gmra.mxu1 %v1343_v32  ;;  %v2729_v24 = vunpack.i.l.bf16 %v2728_v18  ;;  %v3787_v32 = vld [vmem:[%s3998_s2 + $0x10] sm:$0xff] }
 0x315   :  { %vm1904_vm2 = vcmp.eq.s32.totalorder %v3787_v32, 6  ;;  %vm2180_vm12 = vcmp.eq.s32.totalorder %v3787_v32, 7  ;;  %v2870_v32 = vld [vmem:[%s3998_s2 + $0x70] sm:$0xff] }
 0x316   :  { %v3752_v8 = vadd.f32 %v1489_v56, %v3670_v51  ;;  %v3793_v56 = vld [vmem:[%s3998_s2 + $0x18] sm:$0xff]  ;;  %vm1916_vm14 = vcmp.eq.s32.totalorder %v2870_v32, 6 }
 0x317   :  { %v1304_v34 = vpop.f32.mrf.mxu0  ;;  %vm1905_vm3 = vcmp.eq.s32.totalorder %v3793_v56, 6  ;;  %vm2181_vm13 = vcmp.eq.s32.totalorder %v3793_v56, 7  ;;  %v2871_v56 = vld [vmem:[%s3998_s2 + $0x78] sm:$0xff] }
 0x318   :  { %v1328_v1 = vadd.f32 %v1304_v34, %v1247_v5  ;;  %v2487_v5 = vsel %vm1904_vm2, 1.0, %v2930_v10  ;;  %v2488_v11 = vsel %vm1905_vm3, 1.0, %v2930_v10  ;;  %v1512_v34 = vld [vmem:[#allocation3 + $0x288] sm:$0xff]  ;;  %vm1917_vm15 = vcmp.eq.s32.totalorder %v2871_v56, 6 }
 0x31a   :  { %v1344_v27 = vmax.f32 %v1328_v1, 0.0  ;;  %v2771_v1 = vpack.i.bf16 %v2488_v11, %v2487_v5  ;;  %v3826_v5 = vld [vmem:[%s3998_s2 + $0x28] sm:$0xff] }
 0x31b   :  { %vm1907_vm7 = vcmp.eq.s32.totalorder %v3826_v5, 6  ;;  %vm2183_vm3 = vcmp.eq.s32.totalorder %v3826_v5, 7 }
 0x31c   :  { %v1490_v30 = vmul.f32 %v2719_v0, %v1344_v27  ;;  %1579 = vmatmul.f32.gmra.mxu1 %v1344_v27  ;;  %2772 = vperm.xlu1 %2534, %v2771_v1   ;;  %v1517_v1 = vld [vmem:[#allocation3 + $0x2b0] sm:$0xff] }
 0x31e   :  { %v3755_v54 = vadd.f32 %v1490_v30, %v3677_v17  ;;  %v3765_v17 = vld [vmem:[%s3998_s2] sm:$0xff]  ;;  %v2730_v30 = vunpack.i.h.bf16 %v2728_v18 }
 0x31f   :  { %v1307_v12 = vpop.f32.mrf.mxu0  ;;  %vm1902_vm0 = vcmp.eq.s32.totalorder %v3765_v17, 6 }
 0x320   :  { %v1329_v36 = vadd.f32 %v1307_v12, %v1248_v44  ;;  %v2485_v25 = vsel %vm1902_vm0, 1.0, %v2930_v10  ;;  %vm2186_vm0 = vcmp.eq.s32.totalorder %v3620_v40, 7 }
 0x322   :  { %v1345_v21 = vmax.f32 %v1329_v36, 0.0  ;;  %v1513_v36 = vld [vmem:[#allocation3 + $0x290] sm:$0xff] }
 0x324   :  { %v1491_v52 = vmul.f32 %v2720_v7, %v1345_v21  ;;  %1582 = vmatmul.f32.gmra.mxu1 %v1345_v21  ;;  %v2733_v21 = vpop.permute.xlu2 %2732 }
 0x326   :  { %v3758_v51 = vadd.f32 %v1491_v52, %v3682_v61  ;;  %v3771_v61 = vld [vmem:[%s3998_s2 + $0x8] sm:$0xff] }
 0x327   :  { %v1310_v9 = vpop.f32.mrf.mxu0  ;;  %vm1903_vm1 = vcmp.eq.s32.totalorder %v3771_v61, 6 }
 0x328   :  { %v1330_v47 = vadd.f32 %v1310_v9, %v1249_v4  ;;  %v2486_v37 = vsel %vm1903_vm1, 1.0, %v2930_v10  ;;  %v2734_v9 = vunpack.i.l.bf16 %v2733_v21  ;;  %vm2187_vm1 = vcmp.eq.s32.totalorder %v3626_v55, 7 }
 0x329   :  { %v2766_v46 = vpack.i.bf16 %v2486_v37, %v2485_v25 }
 0x32a   :  { %v1346_v39 = vmax.f32 %v1330_v47, 0.0 }
 0x32b   :  { %2767 = vperm.xlu0 %2523, %v2766_v46  }
 0x32c   :  { %v1492_v23 = vmul.f32 %v2724_v38, %v1346_v39  ;;  %1585 = vmatmul.f32.gmra.mxu1 %v1346_v39 }
 0x32e   :  { %v3775_v19 = vadd.f32 %v1492_v23, %v3689_v58 }
 0x32f   :  { %v1313_v26 = vpop.f32.mrf.mxu0 }
 0x330   :  { %v1331_v14 = vadd.f32 %v1313_v26, %v1250_v45  ;;  %v2735_v45 = vunpack.i.h.bf16 %v2733_v21  ;;  %v1515_v26 = vld [vmem:[#allocation3 + $0x2a0] sm:$0xff] }
 0x332   :  { %v1347_v3 = vmax.f32 %v1331_v14, 0.0 }
 0x333   :  { %v2738_v35 = vpop.permute.xlu0 %2737 }
 0x334   :  { %v1493_v42 = vmul.f32 %v2725_v16, %v1347_v3  ;;  %1588 = vmatmul.f32.gmra.mxu1 %v1347_v3  ;;  %v2739_v14 = vunpack.i.l.bf16 %v2738_v35  ;;  %v2491_v3 = vsel %vm1908_vm4, 1.0, %v2930_v10  ;;  %vm2192_vm4 = vcmp.eq.s32.totalorder %v2870_v32, 7 }
 0x336   :  { %v3782_v58 = vadd.f32 %v1493_v42, %v3692_v57  ;;  %v2492_v42 = vsel %vm1909_vm5, 1.0, %v2930_v10  ;;  %vm2193_vm5 = vcmp.eq.s32.totalorder %v2871_v56, 7 }
 0x337   :  { %v2781_v18 = vpack.i.bf16 %v2492_v42, %v2491_v3 }
 0x339   :  { %v1544_v31 = vpop.f32.mrf.mxu1  ;;  %2782 = vperm.xlu0 %2523, %v2781_v18  }
 0x33a   :  { %v1592_v20 = vadd.f32 %v1544_v31, %v1511_v41  ;;  %v1516_v41 = vld [vmem:[#allocation3 + $0x2a8] sm:$0xff] }
 0x33c   :  { %v1608_v59 = vmax.f32 %v1592_v20, 0.0  ;;  %v2740_v20 = vunpack.i.h.bf16 %v2738_v35 }
 0x33e   :  { %v1754_v57 = vmul.f32 %v2729_v24, %v1608_v59  ;;  %1819 = vmatmul.f32.vlgmr.msrb.gmra.mxu2 %v1608_v59 }
 0x340   :  { %v3799_v0 = vadd.f32 %v1754_v57, %v3695_v2  ;;  %v1514_v2 = vld [vmem:[#allocation3 + $0x298] sm:$0xff]  ;;  %v3820_v57 = vld [vmem:[%s3998_s2 + $0x20] sm:$0xff] }
 0x341   :  { %v1547_v27 = vpop.f32.mrf.mxu1  ;;  %vm1906_vm6 = vcmp.eq.s32.totalorder %v3820_v57, 6  ;;  %vm2182_vm2 = vcmp.eq.s32.totalorder %v3820_v57, 7 }
 0x342   :  { %v1593_v44 = vadd.f32 %v1547_v27, %v1512_v34  ;;  %v2489_v11 = vsel %vm1906_vm6, 1.0, %v2930_v10  ;;  %v2490_v34 = vsel %vm1907_vm7, 1.0, %v2930_v10 }
 0x343   :  { %v2743_v27 = vpop.permute.xlu1 %2742 }
 0x344   :  { %v1609_v12 = vmax.f32 %v1593_v44, 0.0 }
 0x346   :  { %v1755_v7 = vmul.f32 %v2730_v30, %v1609_v12  ;;  %1822 = vmatmul.f32.gmra.mxu2 %v1609_v12  ;;  %v2776_v30 = vpack.i.bf16 %v2490_v34, %v2489_v11  ;;  %v1520_v11 = vld [vmem:[#allocation3 + $0x2c8] sm:$0xff] }
 0x348   :  { %v3802_v52 = vadd.f32 %v1755_v7, %v3700_v6  ;;  %2777 = vperm.xlu2 %2545, %v2776_v30  }
 0x349   :  { %v1550_v4 = vpop.f32.mrf.mxu1 }
 0x34a   :  { %v1594_v29 = vadd.f32 %v1550_v4, %v1513_v36  ;;  %v2744_v36 = vunpack.i.l.bf16 %v2743_v27  ;;  %v3839_v4 = vld [vmem:[%s3998_s2 + $0x60] sm:$0xff] }
 0x34b   :  { %vm1914_vm10 = vcmp.eq.s32.totalorder %v3839_v4, 6 }
 0x34c   :  { %v1610_v47 = vmax.f32 %v1594_v29, 0.0 }
 0x34e   :  { %v1756_v38 = vmul.f32 %v2734_v9, %v1610_v47  ;;  %1825 = vmatmul.f32.gmra.mxu2 %v1610_v47  ;;  %v2493_v9 = vsel %vm1910_vm8, 1.0, %v2930_v10  ;;  %v2494_v47 = vsel %vm1911_vm9, 1.0, %v2930_v10 }
 0x350   :  { %v3805_v39 = vadd.f32 %v1756_v38, %v3707_v33  ;;  %v2497_v38 = vsel %vm1914_vm10, 1.0, %v2930_v10  ;;  %vm2178_vm10 = vcmp.eq.s32.totalorder %v3765_v17, 7 }
 0x351   :  { %v1553_v23 = vpop.f32.mrf.mxu1 }
 0x352   :  { %v1595_v48 = vadd.f32 %v1553_v23, %v1514_v2  ;;  %v1518_v2 = vld [vmem:[#allocation3 + $0x2b8] sm:$0xff]  ;;  %v2786_v23 = vpack.i.bf16 %v2494_v47, %v2493_v9  ;;  %v1521_v9 = vld [vmem:[#allocation3 + $0x2d0] sm:$0xff] }
 0x354   :  { %v1611_v49 = vmax.f32 %v1595_v48, 0.0  ;;  %2787 = vperm.xlu1 %2534, %v2786_v23  }
 0x356   :  { %v1757_v25 = vmul.f32 %v2735_v45, %v1611_v49  ;;  %1828 = vmatmul.f32.gmra.mxu2 %v1611_v49 }
 0x358   :  { %v3808_v6 = vadd.f32 %v1757_v25, %v3714_v60 }
 0x359   :  { %v1556_v37 = vpop.f32.mrf.mxu1 }
 0x35a   :  { %v1596_v16 = vadd.f32 %v1556_v37, %v1515_v26  ;;  %v2745_v26 = vunpack.i.h.bf16 %v2743_v27 }
 0x35c   :  { %v1612_v46 = vmax.f32 %v1596_v16, 0.0 }
 0x35e   :  { %v1758_v33 = vmul.f32 %v2739_v14, %v1612_v46  ;;  %1831 = vmatmul.f32.gmra.mxu2 %v1612_v46  ;;  %v2503_v14 = vsel %vm2180_vm12, 1.0, %v2930_v10  ;;  %v2504_v46 = vsel %vm2181_vm13, 1.0, %v2930_v10  ;;  %vm2184_vm12 = vcmp.eq.s32.totalorder %v3637_v43, 7 }
 0x35f   :  { %v2811_v3 = vpack.i.bf16 %v2504_v46, %v2503_v14  ;;  %v1522_v46 = vld [vmem:[#allocation3 + $0x2d8] sm:$0xff]  ;;  %vm2185_vm13 = vcmp.eq.s32.totalorder %v3643_v28, 7 }
 0x360   :  { %v3815_v31 = vadd.f32 %v1758_v33, %v3719_v53  ;;  %v1519_v33 = vld [vmem:[#allocation3 + $0x2c0] sm:$0xff] }
 0x361   :  { %v1559_v60 = vpop.f32.mrf.mxu1 }
 0x362   :  { %v1597_v24 = vadd.f32 %v1559_v60, %v1516_v41 }
 0x363   :  { %v2753_v47 = vpop.permute.xlu0 %2752 }
 0x364   :  { %v1613_v59 = vmax.f32 %v1597_v24, 0.0  ;;  %v2499_v24 = vsel %vm1916_vm14, 1.0, %v2930_v10  ;;  %vm2190_vm14 = vcmp.eq.s32.totalorder %v3839_v4, 7 }
 0x366   :  { %v1759_v53 = vmul.f32 %v2740_v20, %v1613_v59  ;;  %1834 = vmatmul.f32.gmra.mxu2 %v1613_v59  ;;  %v2500_v59 = vsel %vm1917_vm15, 1.0, %v2930_v10 }
 0x367   :  { %v2801_v34 = vpack.i.bf16 %v2500_v59, %v2499_v24  ;;  %v1523_v59 = vld [vmem:[#allocation3 + $0x2e0] sm:$0xff] }
 0x368   :  { %v3832_v44 = vadd.f32 %v1759_v53, %v3722_v50  ;;  %v3845_v50 = vld [vmem:[%s3998_s2 + $0x68] sm:$0xff]  ;;  %v2509_v53 = vsel %vm2186_vm0, 1.0, %v2930_v10 }
 0x369   :  { %v1562_v12 = vpop.f32.mrf.mxu1  ;;  %vm1915_vm11 = vcmp.eq.s32.totalorder %v3845_v50, 6  ;;  %2802 = vperm.xlu1 %2534, %v2801_v34   ;;  %vm2191_vm15 = vcmp.eq.s32.totalorder %v3845_v50, 7  ;;  %v1526_v50 = vld [vmem:[#allocation3 + $0x2f8] sm:$0xff] }
 0x36a   :  { %v1598_v7 = vadd.f32 %v1562_v12, %v1517_v1  ;;  %v2498_v45 = vsel %vm1915_vm11, 1.0, %v2930_v10  ;;  %v2510_v1 = vsel %vm2187_vm1, 1.0, %v2930_v10  ;;  %vm2179_vm11 = vcmp.eq.s32.totalorder %v3771_v61, 7 }
 0x36b   :  { %v2796_v49 = vpack.i.bf16 %v2498_v45, %v2497_v38  ;;  %v2826_v30 = vpack.i.bf16 %v2510_v1, %v2509_v53  ;;  %v2502_v24 = vsel %vm2179_vm11, 1.0, %v2930_v10  ;;  %v2507_v61 = vsel %vm2184_vm12, 1.0, %v2930_v10 }
 0x36c   :  { %v1614_v21 = vmax.f32 %v1598_v7, 0.0 }
 0x36d   :  { %2797 = vperm.xlu0 %2523, %v2796_v49   ;;  %v2754_v49 = vunpack.i.l.bf16 %v2753_v47 }
 0x36e   :  { %v1760_v29 = vmul.f32 %v2744_v36, %v1614_v21  ;;  %1837 = vmatmul.f32.gmra.mxu2 %v1614_v21  ;;  %v2505_v21 = vsel %vm2182_vm2, 1.0, %v2930_v10 }
 0x370   :  { %v3853_v48 = vadd.f32 %v1760_v29, %v3725_v22  ;;  %v2748_v22 = vpop.permute.xlu2 %2747  ;;  %v2515_v29 = vsel %vm2192_vm4, 1.0, %v2930_v10 }
 0x371   :  { %v1565_v25 = vpop.f32.mrf.mxu1  ;;  %v2749_v60 = vunpack.i.l.bf16 %v2748_v22  ;;  %v2750_v40 = vunpack.i.h.bf16 %v2748_v22 }
 0x372   :  { %v1599_v35 = vadd.f32 %v1565_v25, %v1518_v2  ;;  %v2516_v2 = vsel %vm2193_vm5, 1.0, %v2930_v10 }
 0x373   :  { %v2841_v57 = vpack.i.bf16 %v2516_v2, %v2515_v29  ;;  %v2513_v29 = vsel %vm2190_vm14, 1.0, %v2930_v10 }
 0x374   :  { %v1615_v37 = vmax.f32 %v1599_v35, 0.0  ;;  %v2873_v35 = vld [vmem:[%s3998_s2 + $0x58] sm:$0xff] }
 0x375   :  { %2812 = vperm.xlu0 %2523, %v2811_v3   ;;  %vm2189_vm7 = vcmp.eq.s32.totalorder %v2873_v35, 7  ;;  %vm1913_vm9 = vcmp.eq.s32.totalorder %v2873_v35, 6 }
 0x376   :  { %v1761_v16 = vmul.f32 %v2745_v26, %v1615_v37  ;;  %1840 = vmatmul.f32.gmra.mxu2 %v1615_v37  ;;  %v2872_v26 = vld [vmem:[%s3998_s2 + $0x50] sm:$0xff]  ;;  %v2496_v22 = vsel %vm1913_vm9, 1.0, %v2930_v10  ;;  %s2931_s2 = smov [#allocation6]  }
 0x377   :  { %vm2188_vm6 = vcmp.eq.s32.totalorder %v2872_v26, 7  ;;  %vm1912_vm8 = vcmp.eq.s32.totalorder %v2872_v26, 6  ;;  %s2374_s4 = sshll.u32 %s2931_s2, 4  ;;  %s2375_s4 = int_to_ptr.vmem [resolvable:$true] %s2374_s4 }
 0x378   :  { %v3860_v42 = vadd.f32 %v1761_v16, %v3730_v62  ;;  %v2511_v37 = vsel %vm2188_vm6, 1.0, %v2930_v10  ;;  %v2512_v16 = vsel %vm2189_vm7, 1.0, %v2930_v10  ;;  %v2495_v14 = vsel %vm1912_vm8, 1.0, %v2930_v10 }
 0x379   :  { %v1568_v41 = vpop.f32.mrf.mxu1 }
 0x37a   :  { %v1600_v18 = vadd.f32 %v1568_v41, %v1519_v33  ;;  %v2831_v33 = vpack.i.bf16 %v2512_v16, %v2511_v37  ;;  %v2791_v41 = vpack.i.bf16 %v2496_v22, %v2495_v14  ;;  %v1787_v16 = vld [vmem:[#allocation3 + $0x300] sm:$0xff] }
 0x37c   :  { %v1616_v20 = vmax.f32 %v1600_v18, 0.0  ;;  %2792 = vperm.xlu2 %2545, %v2791_v41  }
 0x37d   :  { %2827 = vperm.xlu0 %2523, %v2826_v30   ;;  %v2508_v30 = vsel %vm2185_vm13, 1.0, %v2930_v10 }
 0x37e   :  { %v1762_v62 = vmul.f32 %v2749_v60, %v1616_v20  ;;  %1843 = vmatmul.f32.gmra.mxu2 %v1616_v20  ;;  %v2755_v60 = vunpack.i.h.bf16 %v2753_v47  ;;  %v1525_v47 = vld [vmem:[#allocation3 + $0x2f0] sm:$0xff] }
 0x380   :  { %v3875_v27 = vadd.f32 %v1762_v62, %v3737_v63  ;;  %v2506_v63 = vsel %vm2183_vm3, 1.0, %v2930_v10  ;;  %v2501_v62 = vsel %vm2178_vm10, 1.0, %v2930_v10 }
 0x381   :  { %v1571_v12 = vpop.f32.mrf.mxu1  ;;  %v2816_v38 = vpack.i.bf16 %v2506_v63, %v2505_v21  ;;  %v2806_v53 = vpack.i.bf16 %v2502_v24, %v2501_v62 }
 0x382   :  { %v1601_v55 = vadd.f32 %v1571_v12, %v1520_v11 }
 0x383   :  { %2817 = vperm.xlu1 %2534, %v2816_v38   ;;  %v2763_v38 = vpop.permute.xlu2 %2762 }
 0x384   :  { %v1617_v7 = vmax.f32 %v1601_v55, 0.0  ;;  %2807 = vperm.xlu2 %2545, %v2806_v53   ;;  %v2821_v55 = vpack.i.bf16 %v2508_v30, %v2507_v61  ;;  %v2765_v35 = vunpack.i.h.bf16 %v2763_v38  ;;  %v1790_v30 = vld [vmem:[#allocation3 + $0x318] sm:$0xff] }
 0x385   :  { %2842 = vperm.xlu0 %2523, %v2841_v57  }
 0x386   :  { %v1763_v36 = vmul.f32 %v2750_v40, %v1617_v7  ;;  %1846 = vmatmul.f32.gmra.mxu2 %v1617_v7  ;;  %v1524_v7 = vld [vmem:[#allocation3 + $0x2e8] sm:$0xff] }
 0x388   :  { %v3884_v23 = vadd.f32 %v1763_v36, %v3744_v15 }
 0x389   :  { %v1574_v5 = vpop.f32.mrf.mxu1 }
 0x38a   :  { %v1602_v45 = vadd.f32 %v1574_v5, %v1521_v9  ;;  %v2514_v9 = vsel %vm2191_vm15, 1.0, %v2930_v10 }
 0x38b   :  { %2832 = vperm.xlu1 %2534, %v2831_v33   ;;  %v2836_v2 = vpack.i.bf16 %v2514_v9, %v2513_v29 }
 0x38c   :  { %v1618_v25 = vmax.f32 %v1602_v45, 0.0  ;;  %2822 = vperm.xlu2 %2545, %v2821_v55   ;;  %v2764_v45 = vunpack.i.l.bf16 %v2763_v38  ;;  %v1792_v38 = vld [vmem:[#allocation3 + $0x328] sm:$0xff] }
 0x38e   :  { %v1764_v15 = vmul.f32 %v2754_v49, %v1618_v25  ;;  %1849 = vmatmul.f32.gmra.mxu2 %v1618_v25 }
 0x390   :  { %v3897_v3 = vadd.f32 %v1764_v15, %v3749_v13  ;;  %v2758_v13 = vpop.permute.xlu1 %2757 }
 0x391   :  { %v1577_v18 = vpop.f32.mrf.mxu1  ;;  %v2759_v1 = vunpack.i.l.bf16 %v2758_v13  ;;  %v2760_v43 = vunpack.i.h.bf16 %v2758_v13 }
 0x392   :  { %v1603_v20 = vadd.f32 %v1577_v18, %v1522_v46 }
 0x394   :  { %v1619_v32 = vmax.f32 %v1603_v20, 0.0  ;;  %2837 = vperm.xlu2 %2545, %v2836_v2  }
 0x396   :  { %v1765_v56 = vmul.f32 %v2755_v60, %v1619_v32  ;;  %1852 = vmatmul.f32.gmra.mxu2 %v1619_v32  ;;  %v1788_v60 = vld [vmem:[#allocation3 + $0x308] sm:$0xff] }
 0x398   :  { %v3904_v11 = vadd.f32 %v1765_v56, %v3752_v8 }
 0x399   :  { %v1580_v34 = vpop.f32.mrf.mxu1 }
 0x39a   :  { %v1604_v17 = vadd.f32 %v1580_v34, %v1523_v59  ;;  %v2773_v59 = vpop.permute.xlu1 %2772 }
 0x39c   :  { %v1620_v12 = vmax.f32 %v1604_v17, 0.0  ;;  %v2774_v17 = vunpack.i.l.bf16 %v2773_v59 }
 0x39d   :  { %v2768_v14 = vpop.permute.xlu0 %2767 }
 0x39e   :  { %v1766_v40 = vmul.f32 %v2759_v1, %v1620_v12  ;;  %1855 = vmatmul.f32.gmra.mxu2 %v1620_v12  ;;  %v2769_v22 = vunpack.i.l.bf16 %v2768_v14  ;;  %v2770_v32 = vunpack.i.h.bf16 %v2768_v14 }
 0x3a0   :  { %v3911_v8 = vadd.f32 %v1766_v40, %v3755_v54  ;;  %v2775_v40 = vunpack.i.h.bf16 %v2773_v59 }
 0x3a1   :  { %v1583_v36 = vpop.f32.mrf.mxu1 }
 0x3a2   :  { %v1605_v21 = vadd.f32 %v1583_v36, %v1524_v7 }
 0x3a4   :  { %v1621_v28 = vmax.f32 %v1605_v21, 0.0  ;;  %v2778_v21 = vpop.permute.xlu2 %2777 }
 0x3a5   :  { %v2779_v29 = vunpack.i.l.bf16 %v2778_v21 }
 0x3a6   :  { %v1767_v63 = vmul.f32 %v2760_v43, %v1621_v28  ;;  %1858 = vmatmul.f32.gmra.mxu2 %v1621_v28  ;;  %v1791_v43 = vld [vmem:[#allocation3 + $0x320] sm:$0xff] }
 0x3a8   :  { %v3918_v54 = vadd.f32 %v1767_v63, %v3758_v51 }
 0x3a9   :  { %v1586_v57 = vpop.f32.mrf.mxu1 }
 0x3aa   :  { %v1606_v5 = vadd.f32 %v1586_v57, %v1525_v47  ;;  %v2780_v57 = vunpack.i.h.bf16 %v2778_v21 }
 0x3ac   :  { %v1622_v49 = vmax.f32 %v1606_v5, 0.0 }
 0x3ae   :  { %v1768_v4 = vmul.f32 %v2764_v45, %v1622_v49  ;;  %1861 = vmatmul.f32.gmra.mxu2 %v1622_v49 }
 0x3b0   :  { %v3921_v25 = vadd.f32 %v1768_v4, %v3775_v19  ;;  %v1793_v4 = vld [vmem:[#allocation3 + $0x330] sm:$0xff] }
 0x3b1   :  { %v1589_v26 = vpop.f32.mrf.mxu1 }
 0x3b2   :  { %v1607_v10 = vadd.f32 %v1589_v26, %v1526_v50  ;;  %v2783_v50 = vpop.permute.xlu0 %2782 }
 0x3b4   :  { %v1623_v15 = vmax.f32 %v1607_v10, 0.0  ;;  %v2784_v10 = vunpack.i.l.bf16 %v2783_v50 }
 0x3b6   :  { %v1769_v37 = vmul.f32 %v2765_v35, %v1623_v15  ;;  %1864 = vmatmul.f32.gmra.mxu2 %v1623_v15 }
 0x3b8   :  { %v3924_v51 = vadd.f32 %v1769_v37, %v3782_v58  ;;  %v1789_v58 = vld [vmem:[#allocation3 + $0x310] sm:$0xff] }
 0x3c1   :  { %v1820_v46 = vpop.f32.mrf.mxu2 }
 0x3c2   :  { %v1868_v33 = vadd.f32 %v1820_v46, %v1787_v16  ;;  %v1794_v16 = vld [vmem:[#allocation3 + $0x338] sm:$0xff]  ;;  %v2785_v46 = vunpack.i.h.bf16 %v2783_v50 }
 0x3c4   :  { %v1884_v41 = vmax.f32 %v1868_v33, 0.0 }
 0x3c6   :  { %v2030_v18 = vmul.f32 %v2769_v22, %v1884_v41  ;;  %2095 = vmatmul.f32.vlgmr.msrb.gmra.mxu3 %v1884_v41 }
 0x3c8   :  { %v3927_v19 = vadd.f32 %v2030_v18, %v3799_v0  ;;  %v1795_v18 = vld [vmem:[#allocation3 + $0x340] sm:$0xff] }
 0x3c9   :  { %v1823_v20 = vpop.f32.mrf.mxu2 }
 0x3ca   :  { %v1869_v56 = vadd.f32 %v1823_v20, %v1788_v60  ;;  %v2788_v60 = vpop.permute.xlu1 %2787 }
 0x3cc   :  { %v1885_v62 = vmax.f32 %v1869_v56, 0.0  ;;  %v2789_v56 = vunpack.i.l.bf16 %v2788_v60 }
 0x3ce   :  { %v2031_v24 = vmul.f32 %v2770_v32, %v1885_v62  ;;  %2098 = vmatmul.f32.gmra.mxu3 %v1885_v62 }
 0x3d0   :  { %v3930_v13 = vadd.f32 %v2031_v24, %v3802_v52 }
 0x3d1   :  { %v1826_v53 = vpop.f32.mrf.mxu2 }
 0x3d2   :  { %v1870_v34 = vadd.f32 %v1826_v53, %v1789_v58  ;;  %v1796_v58 = vld [vmem:[#allocation3 + $0x348] sm:$0xff]  ;;  %v2790_v53 = vunpack.i.h.bf16 %v2788_v60 }
 0x3d4   :  { %v1886_v1 = vmax.f32 %v1870_v34, 0.0 }
 0x3d6   :  { %v2032_v61 = vmul.f32 %v2774_v17, %v1886_v1  ;;  %2101 = vmatmul.f32.gmra.mxu3 %v1886_v1 }
 0x3d8   :  { %v3933_v0 = vadd.f32 %v2032_v61, %v3805_v39  ;;  %v1797_v61 = vld [vmem:[#allocation3 + $0x350] sm:$0xff] }
 0x3d9   :  { %v1829_v12 = vpop.f32.mrf.mxu2 }
 0x3da   :  { %v1871_v55 = vadd.f32 %v1829_v12, %v1790_v30  ;;  %v2793_v30 = vpop.permute.xlu2 %2792 }
 0x3dc   :  { %v1887_v7 = vmax.f32 %v1871_v55, 0.0 }
 0x3de   :  { %v2033_v36 = vmul.f32 %v2775_v40, %v1887_v7  ;;  %2104 = vmatmul.f32.gmra.mxu3 %v1887_v7  ;;  %v2794_v40 = vunpack.i.l.bf16 %v2793_v30 }
 0x3e0   :  { %v3936_v52 = vadd.f32 %v2033_v36, %v3808_v6 }
 0x3e1   :  { %v1832_v28 = vpop.f32.mrf.mxu2 }
 0x3e2   :  { %v1872_v63 = vadd.f32 %v1832_v28, %v1791_v43  ;;  %v1798_v43 = vld [vmem:[#allocation3 + $0x358] sm:$0xff]  ;;  %v2795_v28 = vunpack.i.h.bf16 %v2793_v30 }
 0x3e4   :  { %v1888_v9 = vmax.f32 %v1872_v63, 0.0 }
 0x3e6   :  { %v2034_v47 = vmul.f32 %v2779_v29, %v1888_v9  ;;  %2107 = vmatmul.f32.gmra.mxu3 %v1888_v9 }
 0x3e8   :  { %v3939_v39 = vadd.f32 %v2034_v47, %v3815_v31  ;;  %v1799_v47 = vld [vmem:[#allocation3 + $0x360] sm:$0xff] }
 0x3e9   :  { %v1835_v2 = vpop.f32.mrf.mxu2 }
 0x3ea   :  { %v1873_v5 = vadd.f32 %v1835_v2, %v1792_v38 }
 0x3ec   :  { %v1889_v45 = vmax.f32 %v1873_v5, 0.0 }
 0x3ee   :  { %v2035_v49 = vmul.f32 %v2780_v57, %v1889_v45  ;;  %2110 = vmatmul.f32.gmra.mxu3 %v1889_v45  ;;  %v2798_v57 = vpop.permute.xlu0 %2797 }
 0x3ef   :  { %v2799_v5 = vunpack.i.l.bf16 %v2798_v57 }
 0x3f0   :  { %v3942_v6 = vadd.f32 %v2035_v49, %v3832_v44 }
 0x3f1   :  { %v1838_v26 = vpop.f32.mrf.mxu2 }
 0x3f2   :  { %v1874_v35 = vadd.f32 %v1838_v26, %v1793_v4  ;;  %v1800_v4 = vld [vmem:[#allocation3 + $0x368] sm:$0xff] }
 0x3f4   :  { %v1890_v15 = vmax.f32 %v1874_v35, 0.0  ;;  %v2800_v35 = vunpack.i.h.bf16 %v2798_v57 }
 0x3f6   :  { %v2036_v37 = vmul.f32 %v2784_v10, %v1890_v15  ;;  %2113 = vmatmul.f32.gmra.mxu3 %v1890_v15 }
 0x3f8   :  { %v3945_v31 = vadd.f32 %v2036_v37, %v3853_v48  ;;  %v1801_v37 = vld [vmem:[#allocation3 + $0x370] sm:$0xff] }
 0x3f9   :  { %v1841_v14 = vpop.f32.mrf.mxu2 }
 0x3fa   :  { %v1875_v33 = vadd.f32 %v1841_v14, %v1794_v16 }
 0x3fc   :  { %v1891_v22 = vmax.f32 %v1875_v33, 0.0 }
 0x3fe   :  { %v2037_v41 = vmul.f32 %v2785_v46, %v1891_v22  ;;  %2116 = vmatmul.f32.gmra.mxu3 %v1891_v22  ;;  %v2803_v46 = vpop.permute.xlu1 %2802 }
 0x3ff   :  { %v2804_v33 = vunpack.i.l.bf16 %v2803_v46 }
 0x400   :  { %v3948_v44 = vadd.f32 %v2037_v41, %v3860_v42 }
 0x401   :  { %v1844_v20 = vpop.f32.mrf.mxu2 }
 0x402   :  { %v1876_v32 = vadd.f32 %v1844_v20, %v1795_v18  ;;  %v1802_v18 = vld [vmem:[#allocation3 + $0x378] sm:$0xff] }
 0x404   :  { %v1892_v62 = vmax.f32 %v1876_v32, 0.0  ;;  %v2805_v32 = vunpack.i.h.bf16 %v2803_v46 }
 0x406   :  { %v2038_v24 = vmul.f32 %v2789_v56, %v1892_v62  ;;  %2119 = vmatmul.f32.gmra.mxu3 %v1892_v62 }
 0x408   :  { %v3951_v48 = vadd.f32 %v2038_v24, %v3875_v27  ;;  %v2063_v24 = vld [vmem:[#allocation3 + $0x380] sm:$0xff] }
 0x409   :  { %v1847_v59 = vpop.f32.mrf.mxu2 }
 0x40a   :  { %v1877_v34 = vadd.f32 %v1847_v59, %v1796_v58 }
 0x40c   :  { %v1893_v17 = vmax.f32 %v1877_v34, 0.0 }
 0x40e   :  { %v2039_v1 = vmul.f32 %v2790_v53, %v1893_v17  ;;  %2122 = vmatmul.f32.gmra.mxu3 %v1893_v17  ;;  %v2808_v53 = vpop.permute.xlu2 %2807 }
 0x40f   :  { %v2809_v34 = vunpack.i.l.bf16 %v2808_v53 }
 0x410   :  { %v3954_v42 = vadd.f32 %v2039_v1, %v3884_v23 }
 0x411   :  { %v1850_v12 = vpop.f32.mrf.mxu2 }
 0x412   :  { %v1878_v55 = vadd.f32 %v1850_v12, %v1797_v61  ;;  %v2064_v61 = vld [vmem:[#allocation3 + $0x388] sm:$0xff] }
 0x414   :  { %v1894_v7 = vmax.f32 %v1878_v55, 0.0 }
 0x416   :  { %v2040_v36 = vmul.f32 %v2794_v40, %v1894_v7  ;;  %2125 = vmatmul.f32.gmra.mxu3 %v1894_v7  ;;  %v2810_v40 = vunpack.i.h.bf16 %v2808_v53 }
 0x418   :  { %v3957_v27 = vadd.f32 %v2040_v36, %v3897_v3  ;;  %v2065_v36 = vld [vmem:[#allocation3 + $0x390] sm:$0xff] }
 0x419   :  { %v1853_v21 = vpop.f32.mrf.mxu2 }
 0x41a   :  { %v1879_v63 = vadd.f32 %v1853_v21, %v1798_v43 }
 0x41c   :  { %v1895_v29 = vmax.f32 %v1879_v63, 0.0 }
 0x41e   :  { %v2041_v9 = vmul.f32 %v2795_v28, %v1895_v29  ;;  %2128 = vmatmul.f32.gmra.mxu3 %v1895_v29  ;;  %v2813_v28 = vpop.permute.xlu0 %2812 }
 0x41f   :  { %v2814_v63 = vunpack.i.l.bf16 %v2813_v28  ;;  %v2815_v57 = vunpack.i.h.bf16 %v2813_v28 }
 0x420   :  { %v3960_v23 = vadd.f32 %v2041_v9, %v3904_v11 }
 0x421   :  { %v1856_v38 = vpop.f32.mrf.mxu2 }
 0x422   :  { %v1880_v2 = vadd.f32 %v1856_v38, %v1799_v47  ;;  %v2066_v47 = vld [vmem:[#allocation3 + $0x398] sm:$0xff] }
 0x424   :  { %v1896_v45 = vmax.f32 %v1880_v2, 0.0 }
 0x426   :  { %v2042_v49 = vmul.f32 %v2799_v5, %v1896_v45  ;;  %2131 = vmatmul.f32.gmra.mxu3 %v1896_v45 }
 0x428   :  { %v3963_v3 = vadd.f32 %v2042_v49, %v3911_v8  ;;  %v2067_v49 = vld [vmem:[#allocation3 + $0x3a0] sm:$0xff] }
 0x429   :  { %v1859_v50 = vpop.f32.mrf.mxu2 }
 0x42a   :  { %v1881_v26 = vadd.f32 %v1859_v50, %v1800_v4 }
 0x42c   :  { %v1897_v10 = vmax.f32 %v1881_v26, 0.0  ;;  %v2818_v26 = vpop.permute.xlu1 %2817 }
 0x42d   :  { %v2820_v46 = vunpack.i.h.bf16 %v2818_v26 }
 0x42e   :  { %v2043_v15 = vmul.f32 %v2800_v35, %v1897_v10  ;;  %2134 = vmatmul.f32.gmra.mxu3 %v1897_v10  ;;  %v2819_v35 = vunpack.i.l.bf16 %v2818_v26 }
 0x430   :  { %v3966_v11 = vadd.f32 %v2043_v15, %v3918_v54 }
 0x431   :  { %v1862_v16 = vpop.f32.mrf.mxu2 }
 0x432   :  { %v1882_v14 = vadd.f32 %v1862_v16, %v1801_v37  ;;  %v2068_v37 = vld [vmem:[#allocation3 + $0x3a8] sm:$0xff] }
 0x434   :  { %v1898_v22 = vmax.f32 %v1882_v14, 0.0 }
 0x436   :  { %v2044_v41 = vmul.f32 %v2804_v33, %v1898_v22  ;;  %2137 = vmatmul.f32.gmra.mxu3 %v1898_v22 }
 0x438   :  { %v3969_v8 = vadd.f32 %v2044_v41, %v3921_v25  ;;  %v2069_v41 = vld [vmem:[#allocation3 + $0x3b0] sm:$0xff] }
 0x439   :  { %v1865_v60 = vpop.f32.mrf.mxu2 }
 0x43a   :  { %v1883_v20 = vadd.f32 %v1865_v60, %v1802_v18 }
 0x43c   :  { %v1899_v56 = vmax.f32 %v1883_v20, 0.0  ;;  %v2823_v20 = vpop.permute.xlu2 %2822 }
 0x43d   :  { %v2825_v53 = vunpack.i.h.bf16 %v2823_v20 }
 0x43e   :  { %v2045_v62 = vmul.f32 %v2805_v32, %v1899_v56  ;;  %2140 = vmatmul.f32.gmra.mxu3 %v1899_v56  ;;  %v2824_v32 = vunpack.i.l.bf16 %v2823_v20 }
 0x440   :  { %v3972_v54 = vadd.f32 %v2045_v62, %v3924_v51 }
 0x449   :  { %v2096_v58 = vpop.f32.mrf.mxu3 }
 0x44a   :  { %v2144_v59 = vadd.f32 %v2096_v58, %v2063_v24  ;;  %v2070_v24 = vld [vmem:[#allocation3 + $0x3b8] sm:$0xff] }
 0x44c   :  { %v2160_v17 = vmax.f32 %v2144_v59, 0.0 }
 0x44e   :  { %v2306_v1 = vmul.f32 %v2809_v34, %v2160_v17 }
 0x450   :  { %v2322_v25 = vadd.f32 %v2306_v1, %v3927_v19  ;;  %v2071_v1 = vld [vmem:[#allocation3 + $0x3c0] sm:$0xff] }
 0x451   :  { %v2099_v30 = vpop.f32.mrf.mxu3 }
 0x452   :  { %2354 = vst [vmem:[#allocation6] sm:$0xff] %v2322_v25  ;;  %v2145_v12 = vadd.f32 %v2099_v30, %v2064_v61  ;;  %v2828_v30 = vpop.permute.xlu0 %2827 }
 0x454   :  { %v2161_v55 = vmax.f32 %v2145_v12, 0.0  ;;  %v2829_v12 = vunpack.i.l.bf16 %v2828_v30 }
 0x456   :  { %v2307_v7 = vmul.f32 %v2810_v40, %v2161_v55 }
 0x458   :  { %v2323_v51 = vadd.f32 %v2307_v7, %v3930_v13  ;;  %v2072_v7 = vld [vmem:[#allocation3 + $0x3c8] sm:$0xff] }
 0x459   :  { %v2102_v43 = vpop.f32.mrf.mxu3 }
 0x45a   :  { %2355 = vst [vmem:[#allocation6 + $0x8] sm:$0xff] %v2323_v51  ;;  %v2146_v21 = vadd.f32 %v2102_v43, %v2065_v36  ;;  %v2830_v43 = vunpack.i.h.bf16 %v2828_v30 }
 0x45c   :  { %v2162_v29 = vmax.f32 %v2146_v21, 0.0 }
 0x45e   :  { %v2308_v9 = vmul.f32 %v2814_v63, %v2162_v29  ;;  %v2073_v63 = vld [vmem:[#allocation3 + $0x3d0] sm:$0xff] }
 0x460   :  { %v2324_v38 = vadd.f32 %v2308_v9, %v3933_v0 }
 0x461   :  { %v2105_v19 = vpop.f32.mrf.mxu3 }
 0x462   :  { %2356 = vst [vmem:[#allocation6 + $0x10] sm:$0xff] %v2324_v38  ;;  %v2147_v2 = vadd.f32 %v2105_v19, %v2066_v47 }
 0x464   :  { %v2163_v5 = vmax.f32 %v2147_v2, 0.0 }
 0x466   :  { %v2309_v45 = vmul.f32 %v2815_v57, %v2163_v5  ;;  %v2074_v57 = vld [vmem:[#allocation3 + $0x3d8] sm:$0xff] }
 0x468   :  { %v2325_v4 = vadd.f32 %v2309_v45, %v3936_v52 }
 0x469   :  { %v2108_v13 = vpop.f32.mrf.mxu3 }
 0x46a   :  { %2357 = vst [vmem:[#allocation6 + $0x18] sm:$0xff] %v2325_v4  ;;  %v2148_v50 = vadd.f32 %v2108_v13, %v2067_v49 }
 0x46c   :  { %v2164_v10 = vmax.f32 %v2148_v50, 0.0  ;;  %v2075_v50 = vld [vmem:[#allocation3 + $0x3e0] sm:$0xff] }
 0x46e   :  { %v2310_v15 = vmul.f32 %v2819_v35, %v2164_v10 }
 0x470   :  { %v2326_v16 = vadd.f32 %v2310_v15, %v3939_v39 }
 0x471   :  { %v2111_v0 = vpop.f32.mrf.mxu3 }
 0x472   :  { %2358 = vst [vmem:[#allocation6 + $0x20] sm:$0xff] %v2326_v16  ;;  %v2149_v14 = vadd.f32 %v2111_v0, %v2068_v37  ;;  %v2076_v0 = vld [vmem:[#allocation3 + $0x3e8] sm:$0xff] }
 0x474   :  { %v2165_v33 = vmax.f32 %v2149_v14, 0.0 }
 0x476   :  { %v2311_v22 = vmul.f32 %v2820_v46, %v2165_v33 }
 0x478   :  { %v2327_v18 = vadd.f32 %v2311_v22, %v3942_v6 }
 0x479   :  { %v2114_v52 = vpop.f32.mrf.mxu3 }
 0x47a   :  { %2359 = vst [vmem:[#allocation6 + $0x28] sm:$0xff] %v2327_v18  ;;  %v2150_v60 = vadd.f32 %v2114_v52, %v2069_v41  ;;  %v2077_v18 = vld [vmem:[#allocation3 + $0x3f0] sm:$0xff] }
 0x47c   :  { %v2166_v56 = vmax.f32 %v2150_v60, 0.0 }
 0x47e   :  { %v2312_v62 = vmul.f32 %v2824_v32, %v2166_v56 }
 0x480   :  { %v2328_v58 = vadd.f32 %v2312_v62, %v3945_v31 }
 0x481   :  { %v2117_v39 = vpop.f32.mrf.mxu3 }
 0x482   :  { %2360 = vst [vmem:[#allocation6 + $0x30] sm:$0xff] %v2328_v58  ;;  %v2151_v59 = vadd.f32 %v2117_v39, %v2070_v24  ;;  %v2078_v24 = vld [vmem:[#allocation3 + $0x3f8] sm:$0xff] }
 0x484   :  { %v2167_v34 = vmax.f32 %v2151_v59, 0.0 }
 0x486   :  { %v2313_v17 = vmul.f32 %v2825_v53, %v2167_v34 }
 0x488   :  { %v2329_v61 = vadd.f32 %v2313_v17, %v3948_v44  ;;  %v2833_v44 = vpop.permute.xlu1 %2832 }
 0x489   :  { %v2120_v6 = vpop.f32.mrf.mxu3  ;;  %v2834_v38 = vunpack.i.l.bf16 %v2833_v44  ;;  %v2835_v49 = vunpack.i.h.bf16 %v2833_v44 }
 0x48a   :  { %2361 = vst [vmem:[#allocation6 + $0x38] sm:$0xff] %v2329_v61  ;;  %v2152_v25 = vadd.f32 %v2120_v6, %v2071_v1 }
 0x48c   :  { %v2168_v40 = vmax.f32 %v2152_v25, 0.0 }
 0x48e   :  { %v2314_v55 = vmul.f32 %v2829_v12, %v2168_v40 }
 0x490   :  { %v2330_v36 = vadd.f32 %v2314_v55, %v3951_v48 }
 0x491   :  { %v2123_v31 = vpop.f32.mrf.mxu3 }
 0x492   :  { %2362 = vst [vmem:[#allocation6 + $0x40] sm:$0xff] %v2330_v36  ;;  %v2153_v51 = vadd.f32 %v2123_v31, %v2072_v7 }
 0x494   :  { %v2169_v21 = vmax.f32 %v2153_v51, 0.0 }
 0x496   :  { %v2315_v28 = vmul.f32 %v2830_v43, %v2169_v21 }
 0x498   :  { %v2331_v29 = vadd.f32 %v2315_v28, %v3954_v42  ;;  %v2838_v42 = vpop.permute.xlu2 %2837 }
 0x499   :  { %v2126_v9 = vpop.f32.mrf.mxu3  ;;  %v2839_v15 = vunpack.i.l.bf16 %v2838_v42  ;;  %v2840_v33 = vunpack.i.h.bf16 %v2838_v42 }
 0x49a   :  { %2363 = vst [vmem:[#allocation6 + $0x48] sm:$0xff] %v2331_v29  ;;  %v2154_v47 = vadd.f32 %v2126_v9, %v2073_v63 }
 0x49c   :  { %v2170_v19 = vmax.f32 %v2154_v47, 0.0 }
 0x49e   :  { %v2316_v2 = vmul.f32 %v2834_v38, %v2170_v19 }
 0x4a0   :  { %v2332_v5 = vadd.f32 %v2316_v2, %v3957_v27 }
 0x4a1   :  { %v2129_v48 = vpop.f32.mrf.mxu3 }
 0x4a2   :  { %2364 = vst [vmem:[#allocation6 + $0x50] sm:$0xff] %v2332_v5  ;;  %v2155_v45 = vadd.f32 %v2129_v48, %v2074_v57 }
 0x4a4   :  { %v2171_v4 = vmax.f32 %v2155_v45, 0.0 }
 0x4a6   :  { %v2317_v13 = vmul.f32 %v2835_v49, %v2171_v4 }
 0x4a8   :  { %v2333_v26 = vadd.f32 %v2317_v13, %v3960_v23  ;;  %v2843_v23 = vpop.permute.xlu0 %2842 }
 0x4a9   :  { %v2132_v35 = vpop.f32.mrf.mxu3  ;;  %v2844_v32 = vunpack.i.l.bf16 %v2843_v23  ;;  %v2845_v59 = vunpack.i.h.bf16 %v2843_v23 }
 0x4aa   :  { %2365 = vst [vmem:[#allocation6 + $0x58] sm:$0xff] %v2333_v26  ;;  %v2156_v10 = vadd.f32 %v2132_v35, %v2075_v50 }
 0x4ac   :  { %v2172_v37 = vmax.f32 %v2156_v10, 0.0 }
 0x4ae   :  { %v2318_v16 = vmul.f32 %v2839_v15, %v2172_v37 }
 0x4b0   :  { %v2334_v14 = vadd.f32 %v2318_v16, %v3963_v3 }
 0x4b1   :  { %v2135_v27 = vpop.f32.mrf.mxu3 }
 0x4b2   :  { %2366 = vst [vmem:[#allocation6 + $0x60] sm:$0xff] %v2334_v14  ;;  %v2157_v46 = vadd.f32 %v2135_v27, %v2076_v0 }
 0x4b4   :  { %v2173_v22 = vmax.f32 %v2157_v46, 0.0 }
 0x4b6   :  { %v2319_v41 = vmul.f32 %v2840_v33, %v2173_v22 }
 0x4b8   :  { %v2335_v52 = vadd.f32 %v2319_v41, %v3966_v11 }
 0x4b9   :  { %v2138_v60 = vpop.f32.mrf.mxu3 }
 0x4ba   :  { %2367 = vst [vmem:[#allocation6 + $0x68] sm:$0xff] %v2335_v52  ;;  %v2158_v20 = vadd.f32 %v2138_v60, %v2077_v18 }
 0x4bc   :  { %v2174_v56 = vmax.f32 %v2158_v20, 0.0 }
 0x4be   :  { %v2320_v62 = vmul.f32 %v2844_v32, %v2174_v56 }
 0x4c0   :  { %v2336_v58 = vadd.f32 %v2320_v62, %v3969_v8 }
 0x4c1   :  { %v2141_v3 = vpop.f32.mrf.mxu3 }
 0x4c2   :  { %2368 = vst [vmem:[#allocation6 + $0x70] sm:$0xff] %v2336_v58  ;;  %v2159_v39 = vadd.f32 %v2141_v3, %v2078_v24 }
 0x4c4   :  { %v2175_v53 = vmax.f32 %v2159_v39, 0.0 }
 0x4c6   :  { %v2321_v11 = vmul.f32 %v2845_v59, %v2175_v53 }
 0x4c8   :  { %v2337_v34 = vadd.f32 %v2321_v11, %v3972_v54 }
 0x4ca   :  { %2369 = vst [vmem:[#allocation6 + $0x78] sm:$0xff] %v2337_v34 }
 0x4cb   :  { %2382 = dma.vmem_to_hbm [thread:$0]  %s2375_s4, 2048, %s2377_s6, [#allocation5], %s2927_s17, %s2927_s17, %s2928_s18  }
 0x4cc   :  { %2924 = dma.done.wait [#allocation5], 2048  }
 0x4cd   :  { %2925 = vsyncadd [#allocation5], 4294965248 }
 0x4ce   :  { %2387 = vsyncpa [#allocation4], 1 }
 0x4cf   :  { %2388 = vsyncpa [#allocation5], 1 }

// kernel: tpu_custom_call.1
= control target key start
LH: loop header
LB: loop body
LE: loop exit
PB: predicated region body
PF: predicated region fallthrough
CT: control target
= control target key end

     0   :  { %8 = vsyncpa [#allocation4], 0  ;;  %s3996_s0 = inlined_call_operand.hbm [shape: f32[8,128,128], index: 0, kind: input, shape index: {}]   ;;  %s3997_s1 = inlined_call_operand.vmem [shape: f32[128,128], index: 1, kind: input, shape index: {}]   ;;  %s3998_s2 = inlined_call_operand.vmem [shape: s32[128,1], index: 2, kind: input, shape index: {}]   ;;  %s3999_s3 = inlined_call_operand.hbm [shape: f32[128,128], index: 3, kind: output, shape index: {}]  }
   0x1   :  { %9 = vsyncpa [#allocation5], 0  ;;  %s14_s14 = sshll.u32 %s3996_s0, 4  ;;  %s2926_s15 = smov [#allocation3]   ;;  %s15_s14 = int_to_ptr.hbm [resolvable:$true] %s14_s14 }
   0x2   :  { %s16_s16 = sshll.u32 %s2926_s15, 4  ;;  %s2927_s17 = smov 128   ;;  %s17_s16 = int_to_ptr.vmem [resolvable:$true] %s16_s16 }
   0x3   :  { %s2928_s18 = smov 8  }
   0x4   :  { %22 = dma.hbm_to_vmem [thread:$0]  %s15_s14, 16384, %s17_s16, [#allocation4], %s2927_s17, %s2927_s17, %s2928_s18  }
   0x5   :  { %2922 = dma.done.wait [#allocation4], 16384  }
   0x6   :  { %2923 = vsyncadd [#allocation4], 4294950912  ;;  %v2961_v0 = vld [vmem:[%s3997_s1 + $0x78] sm:$0xff]  ;;  %v2966_v1 = vld [vmem:[%s3997_s1 + $0x70] sm:$0xff]  ;;  %v2929_v8 = vmov 0   ;;  %v2930_v10 = vmov 0.0  }
   0x7   :  { %148 = vmatpush.msra.mxu0 %v2961_v0  ;;  %423 = vmatpush.msra.mxu1 %v2961_v0  ;;  %v2973_v2 = vld [vmem:[%s3997_s1 + $0x68] sm:$0xff]  ;;  %v2982_v3 = vld [vmem:[%s3997_s1 + $0x60] sm:$0xff]  ;;  %v2991_v4 = vld [vmem:[%s3997_s1 + $0x58] sm:$0xff]  ;;  %s2376_s6 = sshll.u32 %s3999_s3, 4  ;;  %s2377_s6 = int_to_ptr.hbm [resolvable:$true] %s2376_s6 }
   0x8   :  { %699 = vmatpush.msra.mxu2 %v2961_v0  ;;  %975 = vmatpush.msra.mxu3 %v2961_v0  ;;  %v3000_v5 = vld [vmem:[%s3997_s1 + $0x50] sm:$0xff]  ;;  %v3005_v6 = vld [vmem:[%s3998_s2] sm:$0xff]  ;;  %v3010_v7 = vld [vmem:[%s3998_s2 + $0x8] sm:$0xff] }
   0x9   :  { %149 = vmatpush.msra.mxu0 %v2966_v1  ;;  %424 = vmatpush.msra.mxu1 %v2966_v1  ;;  %vm246_vm0 = vcmp.eq.s32.totalorder %v3005_v6, 0  ;;  %vm247_vm1 = vcmp.eq.s32.totalorder %v3010_v7, 0  ;;  %v3020_v9 = vld [vmem:[%s3997_s1 + $0x48] sm:$0xff]  ;;  %v3029_v14 = vld [vmem:[%s3997_s1 + $0x40] sm:$0xff]  ;;  %v3037_v15 = vld [vmem:[%s3997_s1 + $0x38] sm:$0xff] }
   0xa   :  { %700 = vmatpush.msra.mxu2 %v2966_v1  ;;  %976 = vmatpush.msra.mxu3 %v2966_v1  ;;  %v2389_v11 = vsel %vm246_vm0, 1.0, %v2930_v10  ;;  %v2390_v12 = vsel %vm247_vm1, 1.0, %v2930_v10  ;;  %v3046_v16 = vld [vmem:[%s3997_s1 + $0x30] sm:$0xff]  ;;  %v3055_v17 = vld [vmem:[%s3997_s1 + $0x28] sm:$0xff]  ;;  %v3064_v18 = vld [vmem:[%s3997_s1 + $0x20] sm:$0xff] }
   0xb   :  { %150 = vmatpush.msra.mxu0 %v2973_v2  ;;  %425 = vmatpush.msra.mxu1 %v2973_v2  ;;  %v2524_v13 = vpack.i.bf16 %v2390_v12, %v2389_v11  ;;  %v3073_v19 = vld [vmem:[%s3997_s1 + $0x18] sm:$0xff]  ;;  %v3082_v20 = vld [vmem:[%s3997_s1 + $0x10] sm:$0xff]  ;;  %v3103_v23 = vld [vmem:[%s3997_s1 + $0x8] sm:$0xff] }
   0xc   :  { %701 = vmatpush.msra.mxu2 %v2973_v2  ;;  %977 = vmatpush.msra.mxu3 %v2973_v2  ;;  %v3087_v21 = vld [vmem:[%s3998_s2 + $0x10] sm:$0xff]  ;;  %v3092_v22 = vld [vmem:[%s3998_s2 + $0x18] sm:$0xff]  ;;  %v3114_v27 = vld [vmem:[%s3997_s1] sm:$0xff] }
   0xd   :  { %151 = vmatpush.msra.mxu0 %v2982_v3  ;;  %426 = vmatpush.msra.mxu1 %v2982_v3  ;;  %vm248_vm2 = vcmp.eq.s32.totalorder %v3087_v21, 0  ;;  %vm249_vm3 = vcmp.eq.s32.totalorder %v3092_v22, 0  ;;  %v3143_v28 = vld [vmem:[%s3998_s2 + $0x20] sm:$0xff]  ;;  %v3148_v29 = vld [vmem:[%s3998_s2 + $0x28] sm:$0xff]  ;;  %v3188_v33 = vld [vmem:[%s3998_s2 + $0x30] sm:$0xff]  ;;  %vm524_vm0 = vcmp.eq.s32.totalorder %v3087_v21, 1 }
   0xe   :  { %702 = vmatpush.msra.mxu2 %v2982_v3  ;;  %978 = vmatpush.msra.mxu3 %v2982_v3  ;;  %v2391_v24 = vsel %vm248_vm2, 1.0, %v2930_v10  ;;  %v2392_v25 = vsel %vm249_vm3, 1.0, %v2930_v10  ;;  %vm250_vm4 = vcmp.eq.s32.totalorder %v3143_v28, 0  ;;  %vm251_vm5 = vcmp.eq.s32.totalorder %v3148_v29, 0  ;;  %v3193_v34 = vld [vmem:[%s3998_s2 + $0x38] sm:$0xff]  ;;  %v3234_v38 = vld [vmem:[%s3998_s2 + $0x40] sm:$0xff] }
   0xf   :  { %152 = vmatpush.msra.mxu0 %v2991_v4  ;;  %2523 = vset.pattern.permute.xlu0 %v2929_v8  ;;  %v2529_v26 = vpack.i.bf16 %v2392_v25, %v2391_v24  ;;  %v2393_v30 = vsel %vm250_vm4, 1.0, %v2930_v10  ;;  %v2394_v31 = vsel %vm251_vm5, 1.0, %v2930_v10  ;;  %vm252_vm6 = vcmp.eq.s32.totalorder %v3188_v33, 0  ;;  %v3239_v39 = vld [vmem:[%s3998_s2 + $0x48] sm:$0xff]  ;;  %v3249_v43 = vld [vmem:[%s3998_s2 + $0x60] sm:$0xff]  ;;  %v3264_v48 = vld [vmem:[%s3998_s2 + $0x50] sm:$0xff] }
  0x10   :  { %2534 = vset.pattern.permute.xlu1 %v2929_v8  ;;  %2545 = vset.pattern.permute.xlu2 %v2929_v8  ;;  %v2535_v32 = vpack.i.bf16 %v2394_v31, %v2393_v30  ;;  %vm253_vm7 = vcmp.eq.s32.totalorder %v3193_v34, 0  ;;  %v2395_v35 = vsel %vm252_vm6, 1.0, %v2930_v10  ;;  %vm254_vm8 = vcmp.eq.s32.totalorder %v3234_v38, 0  ;;  %v3254_v44 = vld [vmem:[%s3998_s2 + $0x68] sm:$0xff]  ;;  %v3269_v49 = vld [vmem:[%s3998_s2 + $0x58] sm:$0xff]  ;;  %v3279_v53 = vld [vmem:[%s3998_s2 + $0x70] sm:$0xff] }
  0x11   :  { %153 = vmatpush.msra.mxu0 %v3000_v5  ;;  %427 = vmatpush.msra.mxu1 %v2991_v4  ;;  %v2396_v36 = vsel %vm253_vm7, 1.0, %v2930_v10  ;;  %vm255_vm9 = vcmp.eq.s32.totalorder %v3239_v39, 0  ;;  %v2397_v40 = vsel %vm254_vm8, 1.0, %v2930_v10  ;;  %vm258_vm10 = vcmp.eq.s32.totalorder %v3249_v43, 0  ;;  %v3284_v54 = vld [vmem:[%s3998_s2 + $0x78] sm:$0xff]  ;;  %v132_v58 = vld [vmem:[#allocation3] sm:$0xff] }
  0x12   :  { %703 = vmatpush.msra.mxu2 %v2991_v4  ;;  %979 = vmatpush.msra.mxu3 %v2991_v4  ;;  %v2540_v37 = vpack.i.bf16 %v2396_v36, %v2395_v35  ;;  %v2398_v41 = vsel %vm255_vm9, 1.0, %v2930_v10  ;;  %vm259_vm11 = vcmp.eq.s32.totalorder %v3254_v44, 0  ;;  %v2401_v45 = vsel %vm258_vm10, 1.0, %v2930_v10  ;;  %v135_v25 = vld [vmem:[#allocation3 + $0x18] sm:$0xff]  ;;  %v136_v31 = vld [vmem:[#allocation3 + $0x20] sm:$0xff] }
  0x13   :  { %154 = vmatpush.msra.mxu0 %v3020_v9  ;;  %2525 = vperm.xlu0 %2523, %v2524_v13   ;;  %v2546_v42 = vpack.i.bf16 %v2398_v41, %v2397_v40  ;;  %v2402_v46 = vsel %vm259_vm11, 1.0, %v2930_v10  ;;  %vm256_vm12 = vcmp.eq.s32.totalorder %v3264_v48, 0  ;;  %vm257_vm13 = vcmp.eq.s32.totalorder %v3269_v49, 0 }
  0x14   :  { %428 = vmatpush.msra.mxu1 %v3000_v5  ;;  %704 = vmatpush.msra.mxu2 %v3000_v5  ;;  %v2556_v47 = vpack.i.bf16 %v2402_v46, %v2401_v45  ;;  %v2399_v50 = vsel %vm256_vm12, 1.0, %v2930_v10  ;;  %v2400_v51 = vsel %vm257_vm13, 1.0, %v2930_v10  ;;  %vm260_vm14 = vcmp.eq.s32.totalorder %v3279_v53, 0 }
  0x15   :  { %155 = vmatpush.msra.mxu0 %v3029_v14  ;;  %980 = vmatpush.msra.mxu3 %v3000_v5  ;;  %v2551_v52 = vpack.i.bf16 %v2400_v51, %v2399_v50  ;;  %vm261_vm15 = vcmp.eq.s32.totalorder %v3284_v54, 0  ;;  %v2403_v55 = vsel %vm260_vm14, 1.0, %v2930_v10  ;;  %vm525_vm1 = vcmp.eq.s32.totalorder %v3092_v22, 1 }
  0x16   :  { %429 = vmatpush.msra.mxu1 %v3020_v9  ;;  %705 = vmatpush.msra.mxu2 %v3020_v9  ;;  %v2404_v56 = vsel %vm261_vm15, 1.0, %v2930_v10  ;;  %v2407_v60 = vsel %vm524_vm0, 1.0, %v2930_v10  ;;  %v2408_v61 = vsel %vm525_vm1, 1.0, %v2930_v10  ;;  %vm522_vm2 = vcmp.eq.s32.totalorder %v3005_v6, 1 }
  0x17   :  { %156 = vmatpush.msra.mxu0 %v3037_v15  ;;  %981 = vmatpush.msra.mxu3 %v3020_v9  ;;  %v2561_v57 = vpack.i.bf16 %v2404_v56, %v2403_v55  ;;  %v2571_v63 = vpack.i.bf16 %v2408_v61, %v2407_v60  ;;  %vm523_vm3 = vcmp.eq.s32.totalorder %v3010_v7, 1  ;;  %vm526_vm4 = vcmp.eq.s32.totalorder %v3143_v28, 1 }
  0x18   :  { %430 = vmatpush.msra.mxu1 %v3029_v14  ;;  %706 = vmatpush.msra.mxu2 %v3029_v14  ;;  %v2406_v8 = vsel %vm523_vm3, 1.0, %v2930_v10  ;;  %vm527_vm5 = vcmp.eq.s32.totalorder %v3148_v29, 1  ;;  %vm530_vm6 = vcmp.eq.s32.totalorder %v3234_v38, 1  ;;  %vm531_vm7 = vcmp.eq.s32.totalorder %v3239_v39, 1 }
  0x19   :  { %157 = vmatpush.msra.mxu0 %v3046_v16  ;;  %982 = vmatpush.msra.mxu3 %v3029_v14  ;;  %v2413_v56 = vsel %vm530_vm6, 1.0, %v2930_v10  ;;  %vm528_vm8 = vcmp.eq.s32.totalorder %v3188_v33, 1  ;;  %vm529_vm9 = vcmp.eq.s32.totalorder %v3193_v34, 1  ;;  %vm532_vm10 = vcmp.eq.s32.totalorder %v3264_v48, 1 }
  0x1a   :  { %431 = vmatpush.msra.mxu1 %v3037_v15  ;;  %707 = vmatpush.msra.mxu2 %v3037_v15  ;;  %vm533_vm11 = vcmp.eq.s32.totalorder %v3269_v49, 1  ;;  %vm536_vm12 = vcmp.eq.s32.totalorder %v3279_v53, 1  ;;  %vm537_vm13 = vcmp.eq.s32.totalorder %v3284_v54, 1  ;;  %vm534_vm14 = vcmp.eq.s32.totalorder %v3249_v43, 1 }
  0x1b   :  { %158 = vmatpush.msra.mxu0 %v3055_v17  ;;  %983 = vmatpush.msra.mxu3 %v3037_v15  ;;  %vm535_vm15 = vcmp.eq.s32.totalorder %v3254_v44, 1  ;;  %vm798_vm0 = vcmp.eq.s32.totalorder %v3005_v6, 2  ;;  %vm799_vm1 = vcmp.eq.s32.totalorder %v3010_v7, 2  ;;  %vm803_vm3 = vcmp.eq.s32.totalorder %v3148_v29, 2 }
  0x1c   :  { %432 = vmatpush.msra.mxu1 %v3046_v16  ;;  %708 = vmatpush.msra.mxu2 %v3046_v16  ;;  %vm804_vm6 = vcmp.eq.s32.totalorder %v3188_v33, 2 }
  0x1d   :  { %159 = vmatpush.msra.mxu0 %v3064_v18  ;;  %984 = vmatpush.msra.mxu3 %v3046_v16 }
  0x1e   :  { %433 = vmatpush.msra.mxu1 %v3055_v17  ;;  %709 = vmatpush.msra.mxu2 %v3055_v17 }
  0x1f   :  { %160 = vmatpush.msra.mxu0 %v3073_v19  ;;  %985 = vmatpush.msra.mxu3 %v3055_v17 }
  0x20   :  { %434 = vmatpush.msra.mxu1 %v3064_v18  ;;  %710 = vmatpush.msra.mxu2 %v3064_v18 }
  0x21   :  { %161 = vmatpush.msra.mxu0 %v3082_v20  ;;  %986 = vmatpush.msra.mxu3 %v3064_v18 }
  0x22   :  { %435 = vmatpush.msra.mxu1 %v3073_v19  ;;  %711 = vmatpush.msra.mxu2 %v3073_v19 }
  0x23   :  { %162 = vmatpush.msra.mxu0 %v3103_v23  ;;  %2530 = vperm.xlu0 %2523, %v2529_v26  }
  0x24   :  { %436 = vmatpush.msra.mxu1 %v3082_v20  ;;  %712 = vmatpush.msra.mxu2 %v3082_v20 }
  0x25   :  { %163 = vmatpush.msra.mxu0 %v3114_v27  ;;  %987 = vmatpush.msra.mxu3 %v3073_v19 }
  0x26   :  { %164 = vmatmul.f32.vlgmr.msra.gmra.mxu0 %v2930_v10  ;;  %437 = vmatpush.msra.mxu1 %v3103_v23 }
  0x27   :  { %713 = vmatpush.msra.mxu2 %v3103_v23  ;;  %988 = vmatpush.msra.mxu3 %v3082_v20 }
  0x28   :  { %438 = vmatpush.msra.mxu1 %v3114_v27  ;;  %1251 = vmatpush.msrb.mxu0 %v2961_v0 }
  0x29   :  { %714 = vmatpush.msra.mxu2 %v3114_v27  ;;  %989 = vmatpush.msra.mxu3 %v3103_v23 }
  0x2a   :  { %1252 = vmatpush.msrb.mxu0 %v2966_v1  ;;  %1527 = vmatpush.msrb.mxu1 %v2961_v0 }
  0x2b   :  { %990 = vmatpush.msra.mxu3 %v3114_v27  ;;  %1803 = vmatpush.msrb.mxu2 %v2961_v0 }
  0x2c   :  { %1253 = vmatpush.msrb.mxu0 %v2973_v2  ;;  %1528 = vmatpush.msrb.mxu1 %v2966_v1 }
  0x2d   :  { %1804 = vmatpush.msrb.mxu2 %v2966_v1  ;;  %2079 = vmatpush.msrb.mxu3 %v2961_v0 }
  0x2e   :  { %167 = vmatmul.f32.gmra.mxu0 %v2930_v10  ;;  %1529 = vmatpush.msrb.mxu1 %v2973_v2 }
  0x2f   :  { %1254 = vmatpush.msrb.mxu0 %v2982_v3  ;;  %1805 = vmatpush.msrb.mxu2 %v2973_v2 }
  0x30   :  { %1530 = vmatpush.msrb.mxu1 %v2982_v3  ;;  %2080 = vmatpush.msrb.mxu3 %v2966_v1 }
  0x31   :  { %1255 = vmatpush.msrb.mxu0 %v2991_v4  ;;  %1806 = vmatpush.msrb.mxu2 %v2982_v3 }
  0x32   :  { %1531 = vmatpush.msrb.mxu1 %v2991_v4  ;;  %2081 = vmatpush.msrb.mxu3 %v2973_v2 }
  0x33   :  { %2536 = vperm.xlu1 %2534, %v2535_v32   ;;  %1256 = vmatpush.msrb.mxu0 %v3000_v5 }
  0x34   :  { %1532 = vmatpush.msrb.mxu1 %v3000_v5  ;;  %1807 = vmatpush.msrb.mxu2 %v2991_v4 }
  0x35   :  { %1257 = vmatpush.msrb.mxu0 %v3020_v9  ;;  %2082 = vmatpush.msrb.mxu3 %v2982_v3 }
  0x36   :  { %170 = vmatmul.f32.gmra.mxu0 %v2930_v10  ;;  %1533 = vmatpush.msrb.mxu1 %v3020_v9 }
  0x37   :  { %1258 = vmatpush.msrb.mxu0 %v3029_v14  ;;  %1808 = vmatpush.msrb.mxu2 %v3000_v5 }
  0x38   :  { %1534 = vmatpush.msrb.mxu1 %v3029_v14  ;;  %2083 = vmatpush.msrb.mxu3 %v2991_v4  ;;  %v133_v4 = vld [vmem:[#allocation3 + $0x8] sm:$0xff] }
  0x39   :  { %1259 = vmatpush.msrb.mxu0 %v3037_v15  ;;  %1809 = vmatpush.msrb.mxu2 %v3020_v9 }
  0x3a   :  { %1535 = vmatpush.msrb.mxu1 %v3037_v15  ;;  %2084 = vmatpush.msrb.mxu3 %v3000_v5  ;;  %v2405_v5 = vsel %vm522_vm2, 1.0, %v2930_v10  ;;  %vm802_vm2 = vcmp.eq.s32.totalorder %v3143_v28, 2 }
  0x3b   :  { %1260 = vmatpush.msrb.mxu0 %v3046_v16  ;;  %1810 = vmatpush.msrb.mxu2 %v3029_v14  ;;  %v2566_v11 = vpack.i.bf16 %v2406_v8, %v2405_v5 }
  0x3c   :  { %1536 = vmatpush.msrb.mxu1 %v3046_v16  ;;  %2085 = vmatpush.msrb.mxu3 %v3020_v9 }
  0x3d   :  { %1261 = vmatpush.msrb.mxu0 %v3055_v17  ;;  %1811 = vmatpush.msrb.mxu2 %v3037_v15 }
  0x3e   :  { %173 = vmatmul.f32.gmra.mxu0 %v2930_v10  ;;  %1537 = vmatpush.msrb.mxu1 %v3055_v17 }
  0x3f   :  { %1262 = vmatpush.msrb.mxu0 %v3064_v18  ;;  %1812 = vmatpush.msrb.mxu2 %v3046_v16 }
  0x40   :  { %1538 = vmatpush.msrb.mxu1 %v3064_v18  ;;  %2086 = vmatpush.msrb.mxu3 %v3029_v14 }
  0x41   :  { %1263 = vmatpush.msrb.mxu0 %v3073_v19  ;;  %1813 = vmatpush.msrb.mxu2 %v3055_v17 }
  0x42   :  { %1539 = vmatpush.msrb.mxu1 %v3073_v19  ;;  %2087 = vmatpush.msrb.mxu3 %v3037_v15 }
  0x43   :  { %2541 = vperm.xlu1 %2534, %v2540_v37   ;;  %1264 = vmatpush.msrb.mxu0 %v3082_v20 }
  0x44   :  { %1540 = vmatpush.msrb.mxu1 %v3082_v20  ;;  %1814 = vmatpush.msrb.mxu2 %v3064_v18 }
  0x45   :  { %1265 = vmatpush.msrb.mxu0 %v3103_v23  ;;  %2088 = vmatpush.msrb.mxu3 %v3046_v16  ;;  %v134_v16 = vld [vmem:[#allocation3 + $0x10] sm:$0xff] }
  0x46   :  { %176 = vmatmul.f32.gmra.mxu0 %v2930_v10  ;;  %1541 = vmatpush.msrb.mxu1 %v3103_v23 }
  0x47   :  { %1266 = vmatpush.msrb.mxu0 %v3114_v27  ;;  %1815 = vmatpush.msrb.mxu2 %v3073_v19 }
  0x48   :  { %1542 = vmatpush.msrb.mxu1 %v3114_v27  ;;  %2089 = vmatpush.msrb.mxu3 %v3055_v17  ;;  %v2409_v17 = vsel %vm526_vm4, 1.0, %v2930_v10  ;;  %vm800_vm4 = vcmp.eq.s32.totalorder %v3087_v21, 2 }
  0x49   :  { %1816 = vmatpush.msrb.mxu2 %v3082_v20  ;;  %2547 = vperm.xlu2 %2545, %v2546_v42   ;;  %v137_v42 = vld [vmem:[#allocation3 + $0x28] sm:$0xff] }
  0x4a   :  { %2090 = vmatpush.msrb.mxu3 %v3064_v18  ;;  %2557 = vperm.xlu0 %2523, %v2556_v47   ;;  %v2410_v18 = vsel %vm527_vm5, 1.0, %v2930_v10  ;;  %vm801_vm5 = vcmp.eq.s32.totalorder %v3092_v22, 2  ;;  %v2427_v22 = vsel %vm804_vm6, 1.0, %v2930_v10 }
  0x4b   :  { %1817 = vmatpush.msrb.mxu2 %v3103_v23  ;;  %2562 = vperm.xlu1 %2534, %v2561_v57   ;;  %v2414_v57 = vsel %vm531_vm7, 1.0, %v2930_v10  ;;  %vm805_vm7 = vcmp.eq.s32.totalorder %v3193_v34, 2 }
  0x4c   :  { %2091 = vmatpush.msrb.mxu3 %v3073_v19 }
  0x4d   :  { %1818 = vmatpush.msrb.mxu2 %v3114_v27 }
  0x4e   :  { %179 = vmatmul.f32.gmra.mxu0 %v2930_v10  ;;  %2092 = vmatpush.msrb.mxu3 %v3082_v20  ;;  %v2576_v20 = vpack.i.bf16 %v2410_v18, %v2409_v17  ;;  %v2416_v17 = vsel %vm533_vm11, 1.0, %v2930_v10  ;;  %vm807_vm11 = vcmp.eq.s32.totalorder %v3239_v39, 2 }
  0x50   :  { %2093 = vmatpush.msrb.mxu3 %v3103_v23 }
  0x51   :  { %2552 = vperm.xlu2 %2545, %v2551_v52   ;;  %v138_v52 = vld [vmem:[#allocation3 + $0x30] sm:$0xff] }
  0x52   :  { %2094 = vmatpush.msrb.mxu3 %v3114_v27  ;;  %2572 = vperm.xlu0 %2523, %v2571_v63  }
  0x53   :  { %2577 = vperm.xlu1 %2534, %v2576_v20  }
  0x56   :  { %182 = vmatmul.f32.gmra.mxu0 %v2930_v10 }
  0x59   :  { %2567 = vperm.xlu2 %2545, %v2566_v11  }
  0x5e   :  { %185 = vmatmul.f32.gmra.mxu0 %v2930_v10 }
  0x66   :  { %188 = vmatmul.f32.gmra.mxu0 %v2930_v10 }
  0x6e   :  { %191 = vmatmul.f32.gmra.mxu0 %v2930_v10 }
  0x76   :  { %194 = vmatmul.f32.gmra.mxu0 %v2930_v10 }
  0x7e   :  { %197 = vmatmul.f32.gmra.mxu0 %v2930_v10 }
  0x85   :  { %v2526_v59 = vpop.permute.xlu0 %2525 }
  0x86   :  { %200 = vmatmul.f32.gmra.mxu0 %v2930_v10  ;;  %v2527_v1 = vunpack.i.l.bf16 %v2526_v59  ;;  %v2528_v12 = vunpack.i.h.bf16 %v2526_v59  ;;  %v2586_v59 = vpack.i.bf16 %v2414_v57, %v2413_v56 }
  0x88   :  { %2587 = vperm.xlu0 %2523, %v2586_v59  }
  0x8e   :  { %203 = vmatmul.f32.gmra.mxu0 %v2930_v10 }
  0x95   :  { %v3346_v57 = vpop.permute.xlu0 %2530 }
  0x96   :  { %206 = vmatmul.f32.gmra.mxu0 %v2930_v10 }
  0x9e   :  { %209 = vmatmul.f32.gmra.mxu0 %v2930_v10 }
  0xa3   :  { %v165_v62 = vpop.f32.mrf.mxu0 }
  0xa4   :  { %v213_v0 = vadd.f32 %v165_v62, %v132_v58 }
  0xa5   :  { %v2537_v32 = vpop.permute.xlu1 %2536 }
  0xa6   :  { %v229_v2 = vmax.f32 %v213_v0, 0.0  ;;  %v2538_v37 = vunpack.i.l.bf16 %v2537_v32  ;;  %v2539_v46 = vunpack.i.h.bf16 %v2537_v32  ;;  %v139_v0 = vld [vmem:[#allocation3 + $0x38] sm:$0xff]  ;;  %v141_v32 = vld [vmem:[#allocation3 + $0x48] sm:$0xff] }
  0xa8   :  { %v3298_v3 = vmul.f32 %v2527_v1, %v229_v2  ;;  %439 = vmatmul.f32.vlgmr.msra.gmra.mxu1 %v229_v2  ;;  %v2411_v1 = vsel %vm528_vm8, 1.0, %v2930_v10  ;;  %v2412_v2 = vsel %vm529_vm9, 1.0, %v2930_v10  ;;  %vm808_vm8 = vcmp.eq.s32.totalorder %v3264_v48, 2 }
  0xa9   :  { %v2581_v5 = vpack.i.bf16 %v2412_v2, %v2411_v1  ;;  %v144_v1 = vld [vmem:[#allocation3 + $0x60] sm:$0xff]  ;;  %vm809_vm9 = vcmp.eq.s32.totalorder %v3269_v49, 2 }
  0xab   :  { %v168_v9 = vpop.f32.mrf.mxu0  ;;  %2582 = vperm.xlu2 %2545, %v2581_v5   ;;  %v2420_v5 = vsel %vm537_vm13, 1.0, %v2930_v10  ;;  %vm811_vm13 = vcmp.eq.s32.totalorder %v3254_v44, 2 }
  0xac   :  { %v214_v13 = vadd.f32 %v168_v9, %v133_v4 }
  0xae   :  { %v230_v14 = vmax.f32 %v214_v13, 0.0  ;;  %v140_v13 = vld [vmem:[#allocation3 + $0x40] sm:$0xff] }
  0xb0   :  { %v3304_v15 = vmul.f32 %v2528_v12, %v230_v14  ;;  %442 = vmatmul.f32.gmra.mxu1 %v230_v14  ;;  %v2548_v14 = vpop.permute.xlu2 %2547 }
  0xb3   :  { %v171_v19 = vpop.f32.mrf.mxu0 }
  0xb4   :  { %v3310_v23 = vadd.f32 %v171_v19, %v134_v16  ;;  %v2415_v16 = vsel %vm532_vm10, 1.0, %v2930_v10  ;;  %vm806_vm10 = vcmp.eq.s32.totalorder %v3234_v38, 2 }
  0xb5   :  { %v2542_v55 = vpop.permute.xlu1 %2541  ;;  %v2591_v19 = vpack.i.bf16 %v2416_v17, %v2415_v16  ;;  %v145_v17 = vld [vmem:[#allocation3 + $0x68] sm:$0xff]  ;;  %v2429_v49 = vsel %vm806_vm10, 1.0, %v2930_v10 }
  0xb6   :  { %v231_v24 = vmax.f32 %v3310_v23, 0.0  ;;  %v2543_v61 = vunpack.i.l.bf16 %v2542_v55  ;;  %v2544_v8 = vunpack.i.h.bf16 %v2542_v55 }
  0xb7   :  { %2592 = vperm.xlu1 %2534, %v2591_v19   ;;  %v2418_v19 = vsel %vm535_vm15, 1.0, %v2930_v10  ;;  %vm813_vm15 = vcmp.eq.s32.totalorder %v3284_v54, 2 }
  0xb8   :  { %445 = vmatmul.f32.gmra.mxu1 %v231_v24  ;;  %v2436_v54 = vsel %vm813_vm15, 1.0, %v2930_v10 }
  0xbb   :  { %v174_v26 = vpop.f32.mrf.mxu0 }
  0xbc   :  { %v3315_v27 = vadd.f32 %v174_v26, %v135_v25  ;;  %v2549_v25 = vunpack.i.l.bf16 %v2548_v14  ;;  %v2558_v2 = vpop.permute.xlu0 %2557 }
  0xbe   :  { %v232_v30 = vmax.f32 %v3315_v27, 0.0 }
  0xc0   :  { %448 = vmatmul.f32.gmra.mxu1 %v232_v30 }
  0xc3   :  { %v177_v35 = vpop.f32.mrf.mxu0 }
  0xc4   :  { %v217_v36 = vadd.f32 %v177_v35, %v136_v31 }
  0xc6   :  { %v233_v40 = vmax.f32 %v217_v36, 0.0  ;;  %v2550_v36 = vunpack.i.h.bf16 %v2548_v14 }
  0xc8   :  { %v3320_v41 = vmul.f32 %v2538_v37, %v233_v40  ;;  %451 = vmatmul.f32.gmra.mxu1 %v233_v40 }
  0xcb   :  { %v180_v45 = vpop.f32.mrf.mxu0 }
  0xcc   :  { %v218_v47 = vadd.f32 %v180_v45, %v137_v42  ;;  %v142_v45 = vld [vmem:[#allocation3 + $0x50] sm:$0xff] }
  0xce   :  { %v234_v50 = vmax.f32 %v218_v47, 0.0 }
  0xd0   :  { %v3322_v51 = vmul.f32 %v2539_v46, %v234_v50  ;;  %454 = vmatmul.f32.gmra.mxu1 %v234_v50  ;;  %v2553_v46 = vpop.permute.xlu2 %2552 }
  0xd3   :  { %v183_v58 = vpop.f32.mrf.mxu0 }
  0xd4   :  { %v219_v60 = vadd.f32 %v183_v58, %v138_v52  ;;  %v2554_v52 = vunpack.i.l.bf16 %v2553_v46  ;;  %v143_v58 = vld [vmem:[#allocation3 + $0x58] sm:$0xff] }
  0xd6   :  { %v235_v62 = vmax.f32 %v219_v60, 0.0  ;;  %v2555_v60 = vunpack.i.h.bf16 %v2553_v46 }
  0xd8   :  { %v3328_v63 = vmul.f32 %v2543_v61, %v235_v62  ;;  %457 = vmatmul.f32.gmra.mxu1 %v235_v62 }
  0xdb   :  { %v186_v4 = vpop.f32.mrf.mxu0 }
  0xdc   :  { %v220_v9 = vadd.f32 %v186_v4, %v139_v0  ;;  %v2419_v4 = vsel %vm536_vm12, 1.0, %v2930_v10  ;;  %vm810_vm12 = vcmp.eq.s32.totalorder %v3249_v43, 2  ;;  %v419_v43 = vld [vmem:[#allocation3 + $0xe0] sm:$0xff] }
  0xde   :  { %v236_v11 = vmax.f32 %v220_v9, 0.0  ;;  %v2601_v9 = vpack.i.bf16 %v2420_v5, %v2419_v4  ;;  %v407_v5 = vld [vmem:[#allocation3 + $0x80] sm:$0xff] }
  0xe0   :  { %v3334_v12 = vmul.f32 %v2544_v8, %v236_v11  ;;  %460 = vmatmul.f32.gmra.mxu1 %v236_v11  ;;  %2602 = vperm.xlu0 %2523, %v2601_v9  }
  0xe3   :  { %v189_v18 = vpop.f32.mrf.mxu0 }
  0xe4   :  { %v221_v20 = vadd.f32 %v189_v18, %v140_v13  ;;  %v2559_v13 = vunpack.i.l.bf16 %v2558_v2  ;;  %v2417_v18 = vsel %vm534_vm14, 1.0, %v2930_v10  ;;  %vm812_vm14 = vcmp.eq.s32.totalorder %v3279_v53, 2 }
  0xe5   :  { %v2435_v53 = vsel %vm812_vm14, 1.0, %v2930_v10 }
  0xe6   :  { %v237_v26 = vmax.f32 %v221_v20, 0.0 }
  0xe8   :  { %v3340_v31 = vmul.f32 %v2549_v25, %v237_v26  ;;  %463 = vmatmul.f32.gmra.mxu1 %v237_v26  ;;  %v2596_v25 = vpack.i.bf16 %v2418_v19, %v2417_v18  ;;  %v2560_v26 = vunpack.i.h.bf16 %v2558_v2 }
  0xea   :  { %2597 = vperm.xlu2 %2545, %v2596_v25  }
  0xeb   :  { %v192_v35 = vpop.f32.mrf.mxu0 }
  0xec   :  { %v222_v37 = vadd.f32 %v192_v35, %v141_v32 }
  0xee   :  { %v238_v40 = vmax.f32 %v222_v37, 0.0  ;;  %v146_v37 = vld [vmem:[#allocation3 + $0x70] sm:$0xff] }
  0xf0   :  { %v3342_v42 = vmul.f32 %v2550_v36, %v238_v40  ;;  %466 = vmatmul.f32.gmra.mxu1 %v238_v40  ;;  %v2563_v40 = vpop.permute.xlu1 %2562 }
  0xf3   :  { %v195_v47 = vpop.f32.mrf.mxu0 }
  0xf4   :  { %v223_v50 = vadd.f32 %v195_v47, %v142_v45  ;;  %v2564_v47 = vunpack.i.l.bf16 %v2563_v40 }
  0xf6   :  { %v239_v55 = vmax.f32 %v223_v50, 0.0 }
  0xf8   :  { %v3344_v56 = vmul.f32 %v2554_v52, %v239_v55  ;;  %469 = vmatmul.f32.gmra.mxu1 %v239_v55  ;;  %v147_v55 = vld [vmem:[#allocation3 + $0x78] sm:$0xff] }
  0xfb   :  { %v198_v59 = vpop.f32.mrf.mxu0 }
  0xfc   :  { %v224_v61 = vadd.f32 %v198_v59, %v143_v58  ;;  %v2421_v58 = vsel %vm798_vm0, 1.0, %v2930_v10  ;;  %v2422_v59 = vsel %vm799_vm1, 1.0, %v2930_v10 }
  0xfe   :  { %v240_v62 = vmax.f32 %v224_v61, 0.0  ;;  %v2606_v61 = vpack.i.bf16 %v2422_v59, %v2421_v58  ;;  %v2425_v59 = vsel %vm802_vm2, 1.0, %v2930_v10 }
 0x100   :  { %v3348_v0 = vmul.f32 %v2555_v60, %v240_v62  ;;  %472 = vmatmul.f32.gmra.mxu1 %v240_v62  ;;  %v2565_v62 = vunpack.i.h.bf16 %v2563_v40  ;;  %2607 = vperm.xlu1 %2534, %v2606_v61  }
 0x103   :  { %v201_v8 = vpop.f32.mrf.mxu0 }
 0x104   :  { %v225_v11 = vadd.f32 %v201_v8, %v144_v1  ;;  %v2568_v8 = vpop.permute.xlu2 %2567 }
 0x105   :  { %v2569_v6 = vunpack.i.l.bf16 %v2568_v8  ;;  %v2570_v19 = vunpack.i.h.bf16 %v2568_v8  ;;  %v411_v8 = vld [vmem:[#allocation3 + $0xa0] sm:$0xff] }
 0x106   :  { %v241_v14 = vmax.f32 %v225_v11, 0.0 }
 0x108   :  { %v3354_v16 = vmul.f32 %v2559_v13, %v241_v14  ;;  %475 = vmatmul.f32.gmra.mxu1 %v241_v14  ;;  %v408_v14 = vld [vmem:[#allocation3 + $0x88] sm:$0xff] }
 0x10b   :  { %v204_v20 = vpop.f32.mrf.mxu0 }
 0x10c   :  { %v226_v32 = vadd.f32 %v204_v20, %v145_v17 }
 0x10e   :  { %v242_v35 = vmax.f32 %v226_v32, 0.0 }
 0x110   :  { %v3360_v36 = vmul.f32 %v2560_v26, %v242_v35  ;;  %478 = vmatmul.f32.gmra.mxu1 %v242_v35  ;;  %v2532_v26 = vunpack.i.l.bf16 %v3346_v57  ;;  %v409_v35 = vld [vmem:[#allocation3 + $0x90] sm:$0xff] }
 0x113   :  { %v207_v45 = vpop.f32.mrf.mxu0 }
 0x114   :  { %v227_v46 = vadd.f32 %v207_v45, %v146_v37  ;;  %v2573_v37 = vpop.permute.xlu0 %2572 }
 0x116   :  { %v243_v50 = vmax.f32 %v227_v46, 0.0  ;;  %v376_v46 = vmul.f32 %v2532_v26, %v231_v24 }
 0x118   :  { %v3362_v52 = vmul.f32 %v2564_v47, %v243_v50  ;;  %481 = vmatmul.f32.gmra.mxu1 %v243_v50 }
 0x11b   :  { %v210_v60 = vpop.f32.mrf.mxu0 }
 0x11c   :  { %v228_v1 = vadd.f32 %v210_v60, %v147_v55  ;;  %v2533_v55 = vunpack.i.h.bf16 %v3346_v57  ;;  %v410_v60 = vld [vmem:[#allocation3 + $0x98] sm:$0xff]  ;;  %v2575_v57 = vunpack.i.h.bf16 %v2573_v37 }
 0x11e   :  { %v244_v2 = vmax.f32 %v228_v1, 0.0  ;;  %v377_v24 = vmul.f32 %v2533_v55, %v232_v30 }
 0x120   :  { %v3368_v4 = vmul.f32 %v2565_v62, %v244_v2  ;;  %484 = vmatmul.f32.gmra.mxu1 %v244_v2  ;;  %v2423_v2 = vsel %vm800_vm4, 1.0, %v2930_v10  ;;  %vm1080_vm4 = vcmp.eq.s32.totalorder %v3188_v33, 3  ;;  %v3500_v33 = vld [vmem:[%s3998_s2 + $0x20] sm:$0xff] }
 0x121   :  { %vm1078_vm6 = vcmp.eq.s32.totalorder %v3500_v33, 3 }
 0x125   :  { %v440_v9 = vpop.f32.mrf.mxu1 }
 0x126   :  { %v488_v11 = vadd.f32 %v440_v9, %v407_v5  ;;  %v2424_v5 = vsel %vm801_vm5, 1.0, %v2930_v10  ;;  %v2578_v9 = vpop.permute.xlu1 %2577  ;;  %vm1081_vm5 = vcmp.eq.s32.totalorder %v3193_v34, 3  ;;  %v3506_v34 = vld [vmem:[%s3998_s2 + $0x28] sm:$0xff] }
 0x127   :  { %v2580_v26 = vunpack.i.h.bf16 %v2578_v9 }
 0x128   :  { %v504_v13 = vmax.f32 %v488_v11, 0.0  ;;  %v2611_v11 = vpack.i.bf16 %v2424_v5, %v2423_v2 }
 0x12a   :  { %v650_v7 = vmul.f32 %v2569_v6, %v504_v13  ;;  %715 = vmatmul.f32.vlgmr.msra.gmra.mxu2 %v504_v13  ;;  %2612 = vperm.xlu2 %2545, %v2611_v11   ;;  %v2579_v13 = vunpack.i.l.bf16 %v2578_v9  ;;  %v2431_v9 = vsel %vm808_vm8, 1.0, %v2930_v10  ;;  %v2432_v11 = vsel %vm809_vm9, 1.0, %v2930_v10 }
 0x12b   :  { %vm1082_vm8 = vcmp.eq.s32.totalorder %v3234_v38, 3  ;;  %vm1083_vm9 = vcmp.eq.s32.totalorder %v3239_v39, 3  ;;  %v691_v38 = vld [vmem:[#allocation3 + $0x140] sm:$0xff] }
 0x12c   :  { %v3371_v17 = vadd.f32 %v650_v7, %v3298_v3  ;;  %v2574_v3 = vunpack.i.l.bf16 %v2573_v37 }
 0x12d   :  { %v443_v18 = vpop.f32.mrf.mxu1 }
 0x12e   :  { %v489_v20 = vadd.f32 %v443_v18, %v408_v14  ;;  %v2428_v14 = vsel %vm805_vm7, 1.0, %v2930_v10  ;;  %v412_v18 = vld [vmem:[#allocation3 + $0xa8] sm:$0xff]  ;;  %vm1079_vm7 = vcmp.eq.s32.totalorder %v3506_v34, 3 }
 0x130   :  { %v505_v25 = vmax.f32 %v489_v20, 0.0 }
 0x132   :  { %v651_v32 = vmul.f32 %v2570_v19, %v505_v25  ;;  %718 = vmatmul.f32.gmra.mxu2 %v505_v25  ;;  %v2621_v19 = vpack.i.bf16 %v2428_v14, %v2427_v22  ;;  %v2430_v14 = vsel %vm807_vm11, 1.0, %v2930_v10 }
 0x134   :  { %v3375_v40 = vadd.f32 %v651_v32, %v3304_v15  ;;  %v2426_v15 = vsel %vm803_vm3, 1.0, %v2930_v10  ;;  %2622 = vperm.xlu1 %2534, %v2621_v19   ;;  %v2593_v19 = vpop.permute.xlu1 %2592 }
 0x135   :  { %v446_v45 = vpop.f32.mrf.mxu1  ;;  %v2616_v61 = vpack.i.bf16 %v2426_v15, %v2425_v59 }
 0x136   :  { %v490_v47 = vadd.f32 %v446_v45, %v409_v35  ;;  %v413_v45 = vld [vmem:[#allocation3 + $0xb0] sm:$0xff] }
 0x137   :  { %2617 = vperm.xlu0 %2523, %v2616_v61  }
 0x138   :  { %v506_v50 = vmax.f32 %v490_v47, 0.0 }
 0x13a   :  { %v652_v58 = vmul.f32 %v2574_v3, %v506_v50  ;;  %721 = vmatmul.f32.gmra.mxu2 %v506_v50 }
 0x13c   :  { %v3384_v62 = vadd.f32 %v652_v58, %v376_v46  ;;  %v2583_v46 = vpop.permute.xlu2 %2582 }
 0x13d   :  { %v449_v23 = vpop.f32.mrf.mxu1  ;;  %v2584_v55 = vunpack.i.l.bf16 %v2583_v46  ;;  %v2585_v61 = vunpack.i.h.bf16 %v2583_v46  ;;  %v2433_v46 = vsel %vm810_vm12, 1.0, %v2930_v10 }
 0x13e   :  { %v491_v1 = vadd.f32 %v449_v23, %v410_v60 }
 0x140   :  { %v507_v28 = vmax.f32 %v491_v1, 0.0  ;;  %v415_v1 = vld [vmem:[#allocation3 + $0xc0] sm:$0xff] }
 0x142   :  { %v653_v29 = vmul.f32 %v2575_v57, %v507_v28  ;;  %724 = vmatmul.f32.gmra.mxu2 %v507_v28  ;;  %v2588_v28 = vpop.permute.xlu0 %2587 }
 0x143   :  { %v2589_v5 = vunpack.i.l.bf16 %v2588_v28 }
 0x144   :  { %v3392_v6 = vadd.f32 %v653_v29, %v377_v24  ;;  %v2598_v44 = vpop.permute.xlu2 %2597 }
 0x145   :  { %v452_v27 = vpop.f32.mrf.mxu1 }
 0x146   :  { %v492_v30 = vadd.f32 %v452_v27, %v411_v8  ;;  %v416_v27 = vld [vmem:[#allocation3 + $0xc8] sm:$0xff] }
 0x148   :  { %v508_v7 = vmax.f32 %v492_v30, 0.0  ;;  %v2631_v30 = vpack.i.bf16 %v2432_v11, %v2431_v9 }
 0x14a   :  { %v654_v21 = vmul.f32 %v2579_v13, %v508_v7  ;;  %727 = vmatmul.f32.gmra.mxu2 %v508_v7  ;;  %2632 = vperm.xlu0 %2523, %v2631_v30   ;;  %v2590_v7 = vunpack.i.h.bf16 %v2588_v28 }
 0x14c   :  { %v3399_v20 = vadd.f32 %v654_v21, %v3320_v41  ;;  %v414_v41 = vld [vmem:[#allocation3 + $0xb8] sm:$0xff] }
 0x14d   :  { %v455_v25 = vpop.f32.mrf.mxu1 }
 0x14e   :  { %v493_v32 = vadd.f32 %v455_v25, %v412_v18  ;;  %v417_v18 = vld [vmem:[#allocation3 + $0xd0] sm:$0xff]  ;;  %v2626_v25 = vpack.i.bf16 %v2430_v14, %v2429_v49  ;;  %v422_v49 = vld [vmem:[#allocation3 + $0xf8] sm:$0xff] }
 0x150   :  { %v509_v35 = vmax.f32 %v493_v32, 0.0  ;;  %2627 = vperm.xlu2 %2545, %v2626_v25  }
 0x152   :  { %v655_v37 = vmul.f32 %v2580_v26, %v509_v35  ;;  %730 = vmatmul.f32.gmra.mxu2 %v509_v35  ;;  %v2594_v35 = vunpack.i.l.bf16 %v2593_v19  ;;  %v2603_v30 = vpop.permute.xlu0 %2602 }
 0x154   :  { %v3402_v47 = vadd.f32 %v655_v37, %v3322_v51 }
 0x155   :  { %v458_v3 = vpop.f32.mrf.mxu1 }
 0x156   :  { %v494_v50 = vadd.f32 %v458_v3, %v413_v45  ;;  %v2434_v3 = vsel %vm811_vm13, 1.0, %v2930_v10 }
 0x158   :  { %v510_v58 = vmax.f32 %v494_v50, 0.0  ;;  %v418_v50 = vld [vmem:[#allocation3 + $0xd8] sm:$0xff] }
 0x15a   :  { %v656_v59 = vmul.f32 %v2584_v55, %v510_v58  ;;  %733 = vmatmul.f32.gmra.mxu2 %v510_v58  ;;  %v2636_v55 = vpack.i.bf16 %v2434_v3, %v2433_v46  ;;  %v683_v3 = vld [vmem:[#allocation3 + $0x100] sm:$0xff] }
 0x15c   :  { %v3405_v15 = vadd.f32 %v656_v59, %v3328_v63  ;;  %2637 = vperm.xlu1 %2534, %v2636_v55   ;;  %v2595_v59 = vunpack.i.h.bf16 %v2593_v19 }
 0x15d   :  { %v461_v60 = vpop.f32.mrf.mxu1 }
 0x15e   :  { %v495_v23 = vadd.f32 %v461_v60, %v414_v41 }
 0x160   :  { %v511_v24 = vmax.f32 %v495_v23, 0.0 }
 0x162   :  { %v657_v57 = vmul.f32 %v2585_v61, %v511_v24  ;;  %736 = vmatmul.f32.gmra.mxu2 %v511_v24 }
 0x164   :  { %v3408_v51 = vadd.f32 %v657_v57, %v3334_v12 }
 0x165   :  { %v464_v29 = vpop.f32.mrf.mxu1 }
 0x166   :  { %v496_v2 = vadd.f32 %v464_v29, %v415_v1  ;;  %v2599_v1 = vunpack.i.l.bf16 %v2598_v44 }
 0x168   :  { %v512_v8 = vmax.f32 %v496_v2, 0.0 }
 0x16a   :  { %v658_v63 = vmul.f32 %v2589_v5, %v512_v8  ;;  %739 = vmatmul.f32.gmra.mxu2 %v512_v8  ;;  %v2600_v8 = vunpack.i.h.bf16 %v2598_v44 }
 0x16c   :  { %v3415_v13 = vadd.f32 %v658_v63, %v3340_v31 }
 0x16d   :  { %v467_v12 = vpop.f32.mrf.mxu1 }
 0x16e   :  { %v497_v21 = vadd.f32 %v467_v12, %v416_v27  ;;  %v421_v27 = vld [vmem:[#allocation3 + $0xf0] sm:$0xff] }
 0x170   :  { %v513_v22 = vmax.f32 %v497_v21, 0.0  ;;  %v2604_v21 = vunpack.i.l.bf16 %v2603_v30 }
 0x172   :  { %v659_v48 = vmul.f32 %v2590_v7, %v513_v22  ;;  %742 = vmatmul.f32.gmra.mxu2 %v513_v22 }
 0x174   :  { %v3422_v31 = vadd.f32 %v659_v48, %v3342_v42 }
 0x175   :  { %v470_v26 = vpop.f32.mrf.mxu1 }
 0x176   :  { %v498_v32 = vadd.f32 %v470_v26, %v417_v18  ;;  %v2605_v18 = vunpack.i.h.bf16 %v2603_v30 }
 0x178   :  { %v514_v37 = vmax.f32 %v498_v32, 0.0 }
 0x17a   :  { %v660_v45 = vmul.f32 %v2594_v35, %v514_v37  ;;  %745 = vmatmul.f32.gmra.mxu2 %v514_v37  ;;  %v2641_v35 = vpack.i.bf16 %v2436_v54, %v2435_v53 }
 0x17c   :  { %v3429_v42 = vadd.f32 %v660_v45, %v3344_v56  ;;  %v420_v56 = vld [vmem:[#allocation3 + $0xe8] sm:$0xff]  ;;  %2642 = vperm.xlu2 %2545, %v2641_v35  }
 0x17d   :  { %v473_v58 = vpop.f32.mrf.mxu1 }
 0x17e   :  { %v499_v41 = vadd.f32 %v473_v58, %v418_v50  ;;  %v2608_v50 = vpop.permute.xlu1 %2607 }
 0x180   :  { %v515_v60 = vmax.f32 %v499_v41, 0.0 }
 0x182   :  { %v661_v61 = vmul.f32 %v2595_v59, %v515_v60  ;;  %748 = vmatmul.f32.gmra.mxu2 %v515_v60  ;;  %v2609_v59 = vunpack.i.l.bf16 %v2608_v50  ;;  %v3467_v60 = vld [vmem:[%s3998_s2 + $0x10] sm:$0xff] }
 0x183   :  { %vm1076_vm2 = vcmp.eq.s32.totalorder %v3467_v60, 3 }
 0x184   :  { %v3432_v23 = vadd.f32 %v661_v61, %v3348_v0 }
 0x185   :  { %v476_v24 = vpop.f32.mrf.mxu1 }
 0x186   :  { %v500_v57 = vadd.f32 %v476_v24, %v419_v43  ;;  %v2439_v43 = vsel %vm1076_vm2, 1.0, %v2930_v10  ;;  %v684_v24 = vld [vmem:[#allocation3 + $0x108] sm:$0xff] }
 0x188   :  { %v516_v28 = vmax.f32 %v500_v57, 0.0 }
 0x18a   :  { %v662_v29 = vmul.f32 %v2599_v1, %v516_v28  ;;  %751 = vmatmul.f32.gmra.mxu2 %v516_v28 }
 0x18c   :  { %v3435_v2 = vadd.f32 %v662_v29, %v3354_v16  ;;  %v2610_v29 = vunpack.i.h.bf16 %v2608_v50 }
 0x18d   :  { %v479_v5 = vpop.f32.mrf.mxu1 }
 0x18e   :  { %v501_v63 = vadd.f32 %v479_v5, %v420_v56 }
 0x190   :  { %v517_v9 = vmax.f32 %v501_v63, 0.0  ;;  %v685_v63 = vld [vmem:[#allocation3 + $0x110] sm:$0xff] }
 0x192   :  { %v663_v11 = vmul.f32 %v2600_v8, %v517_v9  ;;  %754 = vmatmul.f32.gmra.mxu2 %v517_v9  ;;  %v2613_v9 = vpop.permute.xlu2 %2612 }
 0x194   :  { %v3438_v0 = vadd.f32 %v663_v11, %v3360_v36  ;;  %v3448_v36 = vld [vmem:[%s3998_s2] sm:$0xff] }
 0x195   :  { %v482_v12 = vpop.f32.mrf.mxu1  ;;  %vm1074_vm0 = vcmp.eq.s32.totalorder %v3448_v36, 3  ;;  %vm1350_vm2 = vcmp.eq.s32.totalorder %v3448_v36, 4 }
 0x196   :  { %v502_v7 = vadd.f32 %v482_v12, %v421_v27  ;;  %v2437_v32 = vsel %vm1074_vm0, 1.0, %v2930_v10  ;;  %v2614_v12 = vunpack.i.l.bf16 %v2613_v9  ;;  %vm1352_vm0 = vcmp.eq.s32.totalorder %v3467_v60, 4 }
 0x198   :  { %v518_v22 = vmax.f32 %v502_v7, 0.0 }
 0x19a   :  { %v664_v48 = vmul.f32 %v2604_v21, %v518_v22  ;;  %757 = vmatmul.f32.gmra.mxu2 %v518_v22 }
 0x19c   :  { %v3441_v16 = vadd.f32 %v664_v48, %v3362_v52  ;;  %v3454_v52 = vld [vmem:[%s3998_s2 + $0x8] sm:$0xff] }
 0x19d   :  { %v485_v14 = vpop.f32.mrf.mxu1  ;;  %vm1075_vm1 = vcmp.eq.s32.totalorder %v3454_v52, 3 }
 0x19e   :  { %v503_v19 = vadd.f32 %v485_v14, %v422_v49  ;;  %v2438_v37 = vsel %vm1075_vm1, 1.0, %v2930_v10  ;;  %v2615_v49 = vunpack.i.h.bf16 %v2613_v9  ;;  %v2445_v9 = vsel %vm1082_vm8, 1.0, %v2930_v10 }
 0x19f   :  { %v2646_v46 = vpack.i.bf16 %v2438_v37, %v2437_v32  ;;  %v2443_v37 = vsel %vm1080_vm4, 1.0, %v2930_v10  ;;  %vm1354_vm4 = vcmp.eq.s32.totalorder %v3500_v33, 4 }
 0x1a0   :  { %v519_v25 = vmax.f32 %v503_v19, 0.0 }
 0x1a1   :  { %2647 = vperm.xlu0 %2523, %v2646_v46   ;;  %v2444_v46 = vsel %vm1081_vm5, 1.0, %v2930_v10  ;;  %vm1355_vm5 = vcmp.eq.s32.totalorder %v3506_v34, 4 }
 0x1a2   :  { %v665_v26 = vmul.f32 %v2605_v18, %v519_v25  ;;  %760 = vmatmul.f32.gmra.mxu2 %v519_v25  ;;  %v687_v25 = vld [vmem:[#allocation3 + $0x120] sm:$0xff]  ;;  %v2661_v50 = vpack.i.bf16 %v2444_v46, %v2443_v37 }
 0x1a4   :  { %v3462_v45 = vadd.f32 %v665_v26, %v3368_v4  ;;  %v3473_v4 = vld [vmem:[%s3998_s2 + $0x18] sm:$0xff] }
 0x1a5   :  { %vm1077_vm3 = vcmp.eq.s32.totalorder %v3473_v4, 3  ;;  %vm1353_vm1 = vcmp.eq.s32.totalorder %v3473_v4, 4 }
 0x1a6   :  { %v2440_v44 = vsel %vm1077_vm3, 1.0, %v2930_v10  ;;  %vm1351_vm3 = vcmp.eq.s32.totalorder %v3454_v52, 4 }
 0x1a7   :  { %v2651_v57 = vpack.i.bf16 %v2440_v44, %v2439_v43  ;;  %v2442_v43 = vsel %vm1079_vm7, 1.0, %v2930_v10  ;;  %v689_v44 = vld [vmem:[#allocation3 + $0x130] sm:$0xff] }
 0x1a9   :  { %2652 = vperm.xlu1 %2534, %v2651_v57   ;;  %v2618_v26 = vpop.permute.xlu0 %2617  ;;  %2662 = vperm.xlu0 %2523, %v2661_v50  }
 0x1aa   :  { %v2619_v32 = vunpack.i.l.bf16 %v2618_v26  ;;  %v2628_v39 = vpop.permute.xlu2 %2627 }
 0x1ad   :  { %v716_v55 = vpop.f32.mrf.mxu2 }
 0x1ae   :  { %v764_v58 = vadd.f32 %v716_v55, %v683_v3  ;;  %v688_v3 = vld [vmem:[#allocation3 + $0x128] sm:$0xff] }
 0x1b0   :  { %v780_v41 = vmax.f32 %v764_v58, 0.0  ;;  %v2620_v58 = vunpack.i.h.bf16 %v2618_v26 }
 0x1b2   :  { %v926_v61 = vmul.f32 %v2609_v59, %v780_v41  ;;  %991 = vmatmul.f32.vlgmr.msra.gmra.mxu3 %v780_v41 }
 0x1b4   :  { %v3479_v1 = vadd.f32 %v926_v61, %v3371_v17  ;;  %v686_v17 = vld [vmem:[#allocation3 + $0x118] sm:$0xff]  ;;  %v2441_v61 = vsel %vm1078_vm6, 1.0, %v2930_v10 }
 0x1b5   :  { %v719_v28 = vpop.f32.mrf.mxu2  ;;  %v2656_v57 = vpack.i.bf16 %v2442_v43, %v2441_v61 }
 0x1b6   :  { %v765_v56 = vadd.f32 %v719_v28, %v684_v24  ;;  %v2623_v24 = vpop.permute.xlu1 %2622 }
 0x1b7   :  { %2657 = vperm.xlu2 %2545, %v2656_v57  }
 0x1b8   :  { %v781_v5 = vmax.f32 %v765_v56, 0.0 }
 0x1ba   :  { %v927_v8 = vmul.f32 %v2610_v29, %v781_v5  ;;  %994 = vmatmul.f32.gmra.mxu3 %v781_v5  ;;  %v2624_v5 = vunpack.i.l.bf16 %v2623_v24 }
 0x1bc   :  { %v3482_v11 = vadd.f32 %v927_v8, %v3375_v40  ;;  %v2633_v50 = vpop.permute.xlu0 %2632 }
 0x1bd   :  { %v722_v27 = vpop.f32.mrf.mxu2 }
 0x1be   :  { %v766_v30 = vadd.f32 %v722_v27, %v685_v63  ;;  %v2446_v27 = vsel %vm1083_vm9, 1.0, %v2930_v10 }
 0x1c0   :  { %v782_v7 = vmax.f32 %v766_v30, 0.0  ;;  %v690_v30 = vld [vmem:[#allocation3 + $0x138] sm:$0xff] }
 0x1c2   :  { %v928_v21 = vmul.f32 %v2614_v12, %v782_v7  ;;  %997 = vmatmul.f32.gmra.mxu3 %v782_v7  ;;  %v2666_v12 = vpack.i.bf16 %v2446_v27, %v2445_v9  ;;  %v3556_v9 = vld [vmem:[%s3998_s2 + $0x58] sm:$0xff] }
 0x1c3   :  { %vm1085_vm13 = vcmp.eq.s32.totalorder %v3556_v9, 3 }
 0x1c4   :  { %v3485_v22 = vadd.f32 %v928_v21, %v3384_v62  ;;  %2667 = vperm.xlu1 %2534, %v2666_v12   ;;  %v2625_v21 = vunpack.i.h.bf16 %v2623_v24  ;;  %v695_v12 = vld [vmem:[#allocation3 + $0x160] sm:$0xff] }
 0x1c5   :  { %v725_v48 = vpop.f32.mrf.mxu2 }
 0x1c6   :  { %v767_v14 = vadd.f32 %v725_v48, %v686_v17 }
 0x1c8   :  { %v783_v18 = vmax.f32 %v767_v14, 0.0 }
 0x1ca   :  { %v929_v19 = vmul.f32 %v2615_v49, %v783_v18  ;;  %1000 = vmatmul.f32.gmra.mxu3 %v783_v18 }
 0x1cc   :  { %v3488_v40 = vadd.f32 %v929_v19, %v3392_v6 }
 0x1cd   :  { %v728_v53 = vpop.f32.mrf.mxu2 }
 0x1ce   :  { %v768_v54 = vadd.f32 %v728_v53, %v687_v25  ;;  %v2629_v25 = vunpack.i.l.bf16 %v2628_v39 }
 0x1d0   :  { %v784_v35 = vmax.f32 %v768_v54, 0.0 }
 0x1d2   :  { %v930_v62 = vmul.f32 %v2619_v32, %v784_v35  ;;  %1003 = vmatmul.f32.gmra.mxu3 %v784_v35  ;;  %v2630_v35 = vunpack.i.h.bf16 %v2628_v39 }
 0x1d4   :  { %v3495_v55 = vadd.f32 %v930_v62, %v3399_v20 }
 0x1d5   :  { %v731_v6 = vpop.f32.mrf.mxu2 }
 0x1d6   :  { %v769_v59 = vadd.f32 %v731_v6, %v688_v3  ;;  %v693_v3 = vld [vmem:[#allocation3 + $0x150] sm:$0xff] }
 0x1d8   :  { %v785_v41 = vmax.f32 %v769_v59, 0.0  ;;  %v2634_v59 = vunpack.i.l.bf16 %v2633_v50 }
 0x1da   :  { %v931_v20 = vmul.f32 %v2620_v58, %v785_v41  ;;  %1006 = vmatmul.f32.gmra.mxu3 %v785_v41 }
 0x1dc   :  { %v3512_v28 = vadd.f32 %v931_v20, %v3402_v47  ;;  %v3539_v20 = vld [vmem:[%s3998_s2 + $0x68] sm:$0xff] }
 0x1dd   :  { %v734_v29 = vpop.f32.mrf.mxu2  ;;  %vm1087_vm11 = vcmp.eq.s32.totalorder %v3539_v20, 3 }
 0x1de   :  { %v770_v56 = vadd.f32 %v734_v29, %v689_v44  ;;  %v2450_v43 = vsel %vm1087_vm11, 1.0, %v2930_v10  ;;  %v694_v44 = vld [vmem:[#allocation3 + $0x158] sm:$0xff]  ;;  %vm1361_vm11 = vcmp.eq.s32.totalorder %v3556_v9, 4 }
 0x1e0   :  { %v786_v8 = vmax.f32 %v770_v56, 0.0  ;;  %v2635_v56 = vunpack.i.h.bf16 %v2633_v50  ;;  %v697_v50 = vld [vmem:[#allocation3 + $0x170] sm:$0xff] }
 0x1e2   :  { %v932_v63 = vmul.f32 %v2624_v5, %v786_v8  ;;  %1009 = vmatmul.f32.gmra.mxu3 %v786_v8 }
 0x1e4   :  { %v3519_v47 = vadd.f32 %v932_v63, %v3405_v15  ;;  %v692_v15 = vld [vmem:[#allocation3 + $0x148] sm:$0xff]  ;;  %v3550_v63 = vld [vmem:[%s3998_s2 + $0x50] sm:$0xff] }
 0x1e5   :  { %v737_v7 = vpop.f32.mrf.mxu2  ;;  %vm1084_vm12 = vcmp.eq.s32.totalorder %v3550_v63, 3 }
 0x1e6   :  { %v771_v17 = vadd.f32 %v737_v7, %v690_v30  ;;  %v2447_v27 = vsel %vm1084_vm12, 1.0, %v2930_v10  ;;  %v2448_v30 = vsel %vm1085_vm13, 1.0, %v2930_v10  ;;  %v2638_v7 = vpop.permute.xlu1 %2637 }
 0x1e8   :  { %v787_v48 = vmax.f32 %v771_v17, 0.0 }
 0x1ea   :  { %v933_v49 = vmul.f32 %v2625_v21, %v787_v48  ;;  %1012 = vmatmul.f32.gmra.mxu3 %v787_v48  ;;  %v2671_v21 = vpack.i.bf16 %v2448_v30, %v2447_v27  ;;  %v3567_v48 = vld [vmem:[%s3998_s2 + $0x70] sm:$0xff]  ;;  %v2455_v30 = vsel %vm1352_vm0, 1.0, %v2930_v10  ;;  %vm1626_vm0 = vcmp.eq.s32.totalorder %v3448_v36, 5 }
 0x1eb   :  { %vm1088_vm14 = vcmp.eq.s32.totalorder %v3567_v48, 3  ;;  %vm1364_vm12 = vcmp.eq.s32.totalorder %v3567_v48, 4 }
 0x1ec   :  { %v3522_v14 = vadd.f32 %v933_v49, %v3408_v51  ;;  %v3573_v49 = vld [vmem:[%s3998_s2 + $0x78] sm:$0xff]  ;;  %2672 = vperm.xlu2 %2545, %v2671_v21   ;;  %v2451_v39 = vsel %vm1088_vm14, 1.0, %v2930_v10 }
 0x1ed   :  { %v740_v18 = vpop.f32.mrf.mxu2  ;;  %vm1089_vm15 = vcmp.eq.s32.totalorder %v3573_v49, 3  ;;  %vm1365_vm13 = vcmp.eq.s32.totalorder %v3573_v49, 4 }
 0x1ee   :  { %v772_v19 = vadd.f32 %v740_v18, %v691_v38 }
 0x1f0   :  { %v788_v26 = vmax.f32 %v772_v19, 0.0  ;;  %v2639_v19 = vunpack.i.l.bf16 %v2638_v7 }
 0x1f2   :  { %v934_v53 = vmul.f32 %v2629_v25, %v788_v26  ;;  %1015 = vmatmul.f32.gmra.mxu3 %v788_v26 }
 0x1f4   :  { %v3525_v54 = vadd.f32 %v934_v53, %v3415_v13  ;;  %v3533_v13 = vld [vmem:[%s3998_s2 + $0x60] sm:$0xff] }
 0x1f5   :  { %v743_v32 = vpop.f32.mrf.mxu2  ;;  %vm1086_vm10 = vcmp.eq.s32.totalorder %v3533_v13, 3  ;;  %vm1362_vm14 = vcmp.eq.s32.totalorder %v3533_v13, 4 }
 0x1f6   :  { %v773_v62 = vadd.f32 %v743_v32, %v692_v15  ;;  %v2449_v61 = vsel %vm1086_vm10, 1.0, %v2930_v10  ;;  %v696_v15 = vld [vmem:[#allocation3 + $0x168] sm:$0xff]  ;;  %vm1360_vm10 = vcmp.eq.s32.totalorder %v3550_v63, 4 }
 0x1f7   :  { %v2676_v24 = vpack.i.bf16 %v2450_v43, %v2449_v61 }
 0x1f8   :  { %v789_v37 = vmax.f32 %v773_v62, 0.0  ;;  %v2640_v62 = vunpack.i.h.bf16 %v2638_v7 }
 0x1f9   :  { %2677 = vperm.xlu0 %2523, %v2676_v24  }
 0x1fa   :  { %v935_v46 = vmul.f32 %v2630_v35, %v789_v37  ;;  %1018 = vmatmul.f32.gmra.mxu3 %v789_v37 }
 0x1fc   :  { %v3528_v51 = vadd.f32 %v935_v46, %v3422_v31 }
 0x1fd   :  { %v746_v6 = vpop.f32.mrf.mxu2 }
 0x1fe   :  { %v774_v58 = vadd.f32 %v746_v6, %v693_v3  ;;  %v2643_v6 = vpop.permute.xlu2 %2642 }
 0x200   :  { %v790_v41 = vmax.f32 %v774_v58, 0.0 }
 0x202   :  { %v936_v31 = vmul.f32 %v2634_v59, %v790_v41  ;;  %1021 = vmatmul.f32.gmra.mxu3 %v790_v41 }
 0x204   :  { %v3545_v57 = vadd.f32 %v936_v31, %v3429_v42  ;;  %v2644_v31 = vunpack.i.l.bf16 %v2643_v6 }
 0x205   :  { %v749_v29 = vpop.f32.mrf.mxu2 }
 0x206   :  { %v775_v5 = vadd.f32 %v749_v29, %v694_v44  ;;  %v698_v44 = vld [vmem:[#allocation3 + $0x178] sm:$0xff]  ;;  %v2645_v29 = vunpack.i.h.bf16 %v2643_v6  ;;  %v2458_v6 = vsel %vm1355_vm5, 1.0, %v2930_v10  ;;  %vm1629_vm5 = vcmp.eq.s32.totalorder %v3473_v4, 5 }
 0x208   :  { %v791_v8 = vmax.f32 %v775_v5, 0.0 }
 0x20a   :  { %v937_v42 = vmul.f32 %v2635_v56, %v791_v8  ;;  %1024 = vmatmul.f32.gmra.mxu3 %v791_v8 }
 0x20c   :  { %v3562_v17 = vadd.f32 %v937_v42, %v3432_v23  ;;  %v2452_v23 = vsel %vm1089_vm15, 1.0, %v2930_v10  ;;  %vm1363_vm15 = vcmp.eq.s32.totalorder %v3539_v20, 4 }
 0x20d   :  { %v752_v38 = vpop.f32.mrf.mxu2  ;;  %v2681_v25 = vpack.i.bf16 %v2452_v23, %v2451_v39 }
 0x20e   :  { %v776_v18 = vadd.f32 %v752_v38, %v695_v12 }
 0x20f   :  { %2682 = vperm.xlu1 %2534, %v2681_v25   ;;  %v2454_v25 = vsel %vm1351_vm3, 1.0, %v2930_v10  ;;  %vm1631_vm3 = vcmp.eq.s32.totalorder %v3506_v34, 5 }
 0x210   :  { %v792_v26 = vmax.f32 %v776_v18, 0.0 }
 0x212   :  { %v938_v53 = vmul.f32 %v2639_v19, %v792_v26  ;;  %1027 = vmatmul.f32.gmra.mxu3 %v792_v26  ;;  %v2453_v19 = vsel %vm1350_vm2, 1.0, %v2930_v10  ;;  %vm1630_vm2 = vcmp.eq.s32.totalorder %v3500_v33, 5 }
 0x213   :  { %v2648_v27 = vpop.permute.xlu0 %2647 }
 0x214   :  { %v3579_v32 = vadd.f32 %v938_v53, %v3435_v2  ;;  %v2649_v38 = vunpack.i.l.bf16 %v2648_v27  ;;  %v2686_v53 = vpack.i.bf16 %v2454_v25, %v2453_v19 }
 0x215   :  { %v755_v35 = vpop.f32.mrf.mxu2 }
 0x216   :  { %v777_v37 = vadd.f32 %v755_v35, %v696_v15  ;;  %v2650_v15 = vunpack.i.h.bf16 %v2648_v27  ;;  %2687 = vperm.xlu2 %2545, %v2686_v53   ;;  %v963_v27 = vld [vmem:[#allocation3 + $0x1a0] sm:$0xff] }
 0x218   :  { %v793_v46 = vmax.f32 %v777_v37, 0.0 }
 0x21a   :  { %v939_v3 = vmul.f32 %v2640_v62, %v793_v46  ;;  %1030 = vmatmul.f32.gmra.mxu3 %v793_v46  ;;  %v961_v46 = vld [vmem:[#allocation3 + $0x190] sm:$0xff] }
 0x21c   :  { %v3582_v58 = vadd.f32 %v939_v3, %v3438_v0  ;;  %v959_v0 = vld [vmem:[#allocation3 + $0x180] sm:$0xff]  ;;  %v2653_v3 = vpop.permute.xlu1 %2652 }
 0x21d   :  { %v758_v59 = vpop.f32.mrf.mxu2 }
 0x21e   :  { %v778_v41 = vadd.f32 %v758_v59, %v697_v50  ;;  %v2457_v50 = vsel %vm1354_vm4, 1.0, %v2930_v10  ;;  %vm1628_vm4 = vcmp.eq.s32.totalorder %v3467_v60, 5 }
 0x21f   :  { %v2471_v34 = vsel %vm1628_vm4, 1.0, %v2930_v10 }
 0x220   :  { %v794_v61 = vmax.f32 %v778_v41, 0.0  ;;  %v2696_v41 = vpack.i.bf16 %v2458_v6, %v2457_v50 }
 0x222   :  { %v940_v43 = vmul.f32 %v2644_v31, %v794_v61  ;;  %1033 = vmatmul.f32.gmra.mxu3 %v794_v61  ;;  %v2654_v61 = vunpack.i.l.bf16 %v2653_v3  ;;  %2697 = vperm.xlu1 %2534, %v2696_v41  }
 0x224   :  { %v3585_v2 = vadd.f32 %v940_v43, %v3441_v16  ;;  %v2456_v16 = vsel %vm1353_vm1, 1.0, %v2930_v10  ;;  %vm1627_vm1 = vcmp.eq.s32.totalorder %v3454_v52, 5 }
 0x225   :  { %v761_v24 = vpop.f32.mrf.mxu2  ;;  %v2691_v7 = vpack.i.bf16 %v2456_v16, %v2455_v30  ;;  %v2658_v30 = vpop.permute.xlu2 %2657 }
 0x226   :  { %v779_v56 = vadd.f32 %v761_v24, %v698_v44  ;;  %v962_v24 = vld [vmem:[#allocation3 + $0x198] sm:$0xff]  ;;  %v2660_v19 = vunpack.i.h.bf16 %v2658_v30 }
 0x227   :  { %2692 = vperm.xlu0 %2523, %v2691_v7  }
 0x228   :  { %v795_v5 = vmax.f32 %v779_v56, 0.0 }
 0x22a   :  { %v941_v8 = vmul.f32 %v2645_v29, %v795_v5  ;;  %1036 = vmatmul.f32.gmra.mxu3 %v795_v5  ;;  %v2655_v5 = vunpack.i.h.bf16 %v2653_v3 }
 0x22c   :  { %v3588_v42 = vadd.f32 %v941_v8, %v3462_v45  ;;  %v960_v45 = vld [vmem:[#allocation3 + $0x188] sm:$0xff] }
 0x235   :  { %v992_v12 = vpop.f32.mrf.mxu3 }
 0x236   :  { %v1040_v21 = vadd.f32 %v992_v12, %v959_v0 }
 0x238   :  { %v1056_v39 = vmax.f32 %v1040_v21, 0.0  ;;  %v2659_v21 = vunpack.i.l.bf16 %v2658_v30 }
 0x23a   :  { %v1202_v23 = vmul.f32 %v2649_v38, %v1056_v39  ;;  %1267 = vmatmul.f32.vlgmr.msrb.gmra.mxu0 %v1056_v39 }
 0x23c   :  { %v3597_v18 = vadd.f32 %v1202_v23, %v3479_v1  ;;  %v964_v23 = vld [vmem:[#allocation3 + $0x1a8] sm:$0xff] }
 0x23d   :  { %v995_v26 = vpop.f32.mrf.mxu3 }
 0x23e   :  { %v1041_v35 = vadd.f32 %v995_v26, %v960_v45 }
 0x240   :  { %v1057_v62 = vmax.f32 %v1041_v35, 0.0  ;;  %v2663_v35 = vpop.permute.xlu0 %2662 }
 0x242   :  { %v1203_v37 = vmul.f32 %v2650_v15, %v1057_v62  ;;  %1270 = vmatmul.f32.gmra.mxu0 %v1057_v62  ;;  %v965_v15 = vld [vmem:[#allocation3 + $0x1b0] sm:$0xff] }
 0x244   :  { %v3604_v1 = vadd.f32 %v1203_v37, %v3482_v11 }
 0x245   :  { %v998_v59 = vpop.f32.mrf.mxu3 }
 0x246   :  { %v1042_v31 = vadd.f32 %v998_v59, %v961_v46  ;;  %v2664_v59 = vunpack.i.l.bf16 %v2663_v35 }
 0x248   :  { %v1058_v43 = vmax.f32 %v1042_v31, 0.0 }
 0x24a   :  { %v1204_v44 = vmul.f32 %v2654_v61, %v1058_v43  ;;  %1273 = vmatmul.f32.gmra.mxu0 %v1058_v43  ;;  %v966_v61 = vld [vmem:[#allocation3 + $0x1b8] sm:$0xff]  ;;  %v3637_v43 = vld [vmem:[%s3998_s2 + $0x30] sm:$0xff] }
 0x24b   :  { %vm1356_vm8 = vcmp.eq.s32.totalorder %v3637_v43, 4  ;;  %vm1908_vm4 = vcmp.eq.s32.totalorder %v3637_v43, 6 }
 0x24c   :  { %v3609_v29 = vadd.f32 %v1204_v44, %v3485_v22 }
 0x24d   :  { %v1001_v56 = vpop.f32.mrf.mxu3 }
 0x24e   :  { %v1043_v11 = vadd.f32 %v1001_v56, %v962_v24  ;;  %v2459_v24 = vsel %vm1356_vm8, 1.0, %v2930_v10  ;;  %vm1636_vm8 = vcmp.eq.s32.totalorder %v3550_v63, 5 }
 0x250   :  { %v1059_v8 = vmax.f32 %v1043_v11, 0.0 }
 0x252   :  { %v1205_v0 = vmul.f32 %v2655_v5, %v1059_v8  ;;  %1276 = vmatmul.f32.gmra.mxu0 %v1059_v8  ;;  %v2665_v8 = vunpack.i.h.bf16 %v2663_v35 }
 0x254   :  { %v3612_v16 = vadd.f32 %v1205_v0, %v3488_v40  ;;  %v3620_v40 = vld [vmem:[%s3998_s2 + $0x40] sm:$0xff] }
 0x255   :  { %v1004_v12 = vpop.f32.mrf.mxu3  ;;  %vm1358_vm6 = vcmp.eq.s32.totalorder %v3620_v40, 4 }
 0x256   :  { %v1044_v7 = vadd.f32 %v1004_v12, %v963_v27  ;;  %v2461_v37 = vsel %vm1358_vm6, 1.0, %v2930_v10  ;;  %v967_v12 = vld [vmem:[#allocation3 + $0x1c0] sm:$0xff]  ;;  %vm1632_vm6 = vcmp.eq.s32.totalorder %v3637_v43, 5 }
 0x257   :  { %v2475_v4 = vsel %vm1632_vm6, 1.0, %v2930_v10 }
 0x258   :  { %v1060_v38 = vmax.f32 %v1044_v7, 0.0  ;;  %v2668_v7 = vpop.permute.xlu1 %2667 }
 0x25a   :  { %v1206_v39 = vmul.f32 %v2659_v21, %v1060_v38  ;;  %1279 = vmatmul.f32.gmra.mxu0 %v1060_v38  ;;  %v2463_v21 = vsel %vm1360_vm10, 1.0, %v2930_v10  ;;  %v2464_v38 = vsel %vm1361_vm11, 1.0, %v2930_v10  ;;  %vm1634_vm10 = vcmp.eq.s32.totalorder %v3620_v40, 5 }
 0x25c   :  { %v3615_v22 = vadd.f32 %v1206_v39, %v3495_v55  ;;  %v3626_v55 = vld [vmem:[%s3998_s2 + $0x48] sm:$0xff] }
 0x25d   :  { %v1007_v45 = vpop.f32.mrf.mxu3  ;;  %vm1359_vm7 = vcmp.eq.s32.totalorder %v3626_v55, 4  ;;  %vm1635_vm11 = vcmp.eq.s32.totalorder %v3626_v55, 5 }
 0x25e   :  { %v1045_v25 = vadd.f32 %v1007_v45, %v964_v23  ;;  %v2462_v46 = vsel %vm1359_vm7, 1.0, %v2930_v10  ;;  %v2711_v23 = vpack.i.bf16 %v2464_v38, %v2463_v21  ;;  %v2467_v21 = vsel %vm1364_vm12, 1.0, %v2930_v10 }
 0x25f   :  { %v2706_v50 = vpack.i.bf16 %v2462_v46, %v2461_v37  ;;  %v2670_v37 = vunpack.i.h.bf16 %v2668_v7  ;;  %vm1638_vm12 = vcmp.eq.s32.totalorder %v3533_v13, 5 }
 0x260   :  { %v1061_v26 = vmax.f32 %v1045_v25, 0.0  ;;  %2712 = vperm.xlu1 %2534, %v2711_v23  }
 0x261   :  { %2707 = vperm.xlu0 %2523, %v2706_v50   ;;  %v969_v50 = vld [vmem:[#allocation3 + $0x1d0] sm:$0xff] }
 0x262   :  { %v1207_v53 = vmul.f32 %v2660_v19, %v1061_v26  ;;  %1282 = vmatmul.f32.gmra.mxu0 %v1061_v26  ;;  %v2669_v19 = vunpack.i.l.bf16 %v2668_v7 }
 0x264   :  { %v3630_v62 = vadd.f32 %v1207_v53, %v3512_v28  ;;  %v3643_v28 = vld [vmem:[%s3998_s2 + $0x38] sm:$0xff]  ;;  %v968_v53 = vld [vmem:[#allocation3 + $0x1c8] sm:$0xff] }
 0x265   :  { %v1010_v3 = vpop.f32.mrf.mxu3  ;;  %vm1357_vm9 = vcmp.eq.s32.totalorder %v3643_v28, 4  ;;  %vm1633_vm7 = vcmp.eq.s32.totalorder %v3643_v28, 5 }
 0x266   :  { %v1046_v6 = vadd.f32 %v1010_v3, %v965_v15  ;;  %v2460_v56 = vsel %vm1357_vm9, 1.0, %v2930_v10  ;;  %vm1637_vm9 = vcmp.eq.s32.totalorder %v3556_v9, 5  ;;  %v2477_v9 = vsel %vm1634_vm10, 1.0, %v2930_v10 }
 0x267   :  { %v2701_v11 = vpack.i.bf16 %v2460_v56, %v2459_v24 }
 0x268   :  { %v1062_v41 = vmax.f32 %v1046_v6, 0.0  ;;  %v2673_v6 = vpop.permute.xlu2 %2672 }
 0x269   :  { %2702 = vperm.xlu2 %2545, %v2701_v11  }
 0x26a   :  { %v1208_v31 = vmul.f32 %v2664_v59, %v1062_v41  ;;  %1285 = vmatmul.f32.gmra.mxu0 %v1062_v41 }
 0x26b   :  { %v2678_v7 = vpop.permute.xlu0 %2677 }
 0x26c   :  { %v3647_v44 = vadd.f32 %v1208_v31, %v3519_v47 }
 0x26d   :  { %v1013_v5 = vpop.f32.mrf.mxu3 }
 0x26e   :  { %v1047_v0 = vadd.f32 %v1013_v5, %v966_v61  ;;  %v2674_v61 = vunpack.i.l.bf16 %v2673_v6  ;;  %v970_v5 = vld [vmem:[#allocation3 + $0x1d8] sm:$0xff] }
 0x270   :  { %v1063_v27 = vmax.f32 %v1047_v0, 0.0 }
 0x272   :  { %v1209_v30 = vmul.f32 %v2665_v8, %v1063_v27  ;;  %1288 = vmatmul.f32.gmra.mxu0 %v1063_v27  ;;  %v2675_v8 = vunpack.i.h.bf16 %v2673_v6 }
 0x274   :  { %v3654_v47 = vadd.f32 %v1209_v30, %v3522_v14 }
 0x275   :  { %v1016_v39 = vpop.f32.mrf.mxu3 }
 0x276   :  { %v1048_v45 = vadd.f32 %v1016_v39, %v967_v12  ;;  %v971_v12 = vld [vmem:[#allocation3 + $0x1e0] sm:$0xff] }
 0x278   :  { %v1064_v25 = vmax.f32 %v1048_v45, 0.0  ;;  %v2679_v45 = vunpack.i.l.bf16 %v2678_v7 }
 0x27a   :  { %v1210_v26 = vmul.f32 %v2669_v19, %v1064_v25  ;;  %1291 = vmatmul.f32.gmra.mxu0 %v1064_v25 }
 0x27c   :  { %v3659_v15 = vadd.f32 %v1210_v26, %v3525_v54  ;;  %v972_v26 = vld [vmem:[#allocation3 + $0x1e8] sm:$0xff] }
 0x27d   :  { %v1019_v35 = vpop.f32.mrf.mxu3 }
 0x27e   :  { %v1049_v14 = vadd.f32 %v1019_v35, %v968_v53  ;;  %v2465_v53 = vsel %vm1362_vm14, 1.0, %v2930_v10  ;;  %v2466_v35 = vsel %vm1363_vm15, 1.0, %v2930_v10  ;;  %vm1640_vm14 = vcmp.eq.s32.totalorder %v3567_v48, 5 }
 0x27f   :  { %vm1641_vm15 = vcmp.eq.s32.totalorder %v3573_v49, 5  ;;  %v2483_v48 = vsel %vm1640_vm14, 1.0, %v2930_v10 }
 0x280   :  { %v1065_v46 = vmax.f32 %v1049_v14, 0.0  ;;  %v2716_v14 = vpack.i.bf16 %v2466_v35, %v2465_v53  ;;  %v1236_v53 = vld [vmem:[#allocation3 + $0x208] sm:$0xff]  ;;  %v2484_v49 = vsel %vm1641_vm15, 1.0, %v2930_v10 }
 0x282   :  { %v1211_v3 = vmul.f32 %v2670_v37, %v1065_v46  ;;  %1294 = vmatmul.f32.gmra.mxu0 %v1065_v46  ;;  %v2680_v46 = vunpack.i.h.bf16 %v2678_v7  ;;  %2717 = vperm.xlu2 %2545, %v2716_v14  }
 0x284   :  { %v3662_v59 = vadd.f32 %v1211_v3, %v3528_v51 }
 0x285   :  { %v1022_v41 = vpop.f32.mrf.mxu3 }
 0x286   :  { %v1050_v31 = vadd.f32 %v1022_v41, %v969_v50  ;;  %v973_v41 = vld [vmem:[#allocation3 + $0x1f0] sm:$0xff] }
 0x288   :  { %v1066_v24 = vmax.f32 %v1050_v31, 0.0  ;;  %v2683_v31 = vpop.permute.xlu1 %2682 }
 0x289   :  { %v2685_v7 = vunpack.i.h.bf16 %v2683_v31 }
 0x28a   :  { %v1212_v56 = vmul.f32 %v2674_v61, %v1066_v24  ;;  %1297 = vmatmul.f32.gmra.mxu0 %v1066_v24 }
 0x28c   :  { %v3665_v54 = vadd.f32 %v1212_v56, %v3545_v57  ;;  %v2468_v57 = vsel %vm1365_vm13, 1.0, %v2930_v10  ;;  %v2684_v56 = vunpack.i.l.bf16 %v2683_v31  ;;  %vm1639_vm13 = vcmp.eq.s32.totalorder %v3539_v20, 5 }
 0x28d   :  { %v1025_v11 = vpop.f32.mrf.mxu3  ;;  %v2721_v39 = vpack.i.bf16 %v2468_v57, %v2467_v21 }
 0x28e   :  { %v1051_v0 = vadd.f32 %v1025_v11, %v970_v5  ;;  %v2469_v5 = vsel %vm1626_vm0, 1.0, %v2930_v10  ;;  %v2470_v11 = vsel %vm1627_vm1, 1.0, %v2930_v10 }
 0x28f   :  { %2722 = vperm.xlu0 %2523, %v2721_v39   ;;  %v2688_v39 = vpop.permute.xlu2 %2687 }
 0x290   :  { %v1067_v27 = vmax.f32 %v1051_v0, 0.0 }
 0x292   :  { %v1213_v30 = vmul.f32 %v2675_v8, %v1067_v27  ;;  %1300 = vmatmul.f32.gmra.mxu0 %v1067_v27  ;;  %v2726_v8 = vpack.i.bf16 %v2470_v11, %v2469_v5 }
 0x294   :  { %v3670_v51 = vadd.f32 %v1213_v30, %v3562_v17  ;;  %2727 = vperm.xlu1 %2534, %v2726_v8   ;;  %v974_v30 = vld [vmem:[#allocation3 + $0x1f8] sm:$0xff] }
 0x295   :  { %v1028_v38 = vpop.f32.mrf.mxu3  ;;  %v1238_v8 = vld [vmem:[#allocation3 + $0x218] sm:$0xff] }
 0x296   :  { %v1052_v23 = vadd.f32 %v1028_v38, %v971_v12  ;;  %v1235_v38 = vld [vmem:[#allocation3 + $0x200] sm:$0xff] }
 0x298   :  { %v1068_v19 = vmax.f32 %v1052_v23, 0.0 }
 0x29a   :  { %v1214_v25 = vmul.f32 %v2679_v45, %v1068_v19  ;;  %1303 = vmatmul.f32.gmra.mxu0 %v1068_v19  ;;  %v2689_v19 = vunpack.i.l.bf16 %v2688_v39 }
 0x29c   :  { %v3677_v17 = vadd.f32 %v1214_v25, %v3579_v32 }
 0x29d   :  { %v1031_v37 = vpop.f32.mrf.mxu3 }
 0x29e   :  { %v1053_v3 = vadd.f32 %v1031_v37, %v972_v26  ;;  %v2690_v37 = vunpack.i.h.bf16 %v2688_v39 }
 0x2a0   :  { %v1069_v50 = vmax.f32 %v1053_v3, 0.0 }
 0x2a2   :  { %v1215_v6 = vmul.f32 %v2680_v46, %v1069_v50  ;;  %1306 = vmatmul.f32.gmra.mxu0 %v1069_v50  ;;  %v2693_v50 = vpop.permute.xlu0 %2692 }
 0x2a4   :  { %v3682_v61 = vadd.f32 %v1215_v6, %v3582_v58 }
 0x2a5   :  { %v1034_v24 = vpop.f32.mrf.mxu3 }
 0x2a6   :  { %v1054_v32 = vadd.f32 %v1034_v24, %v973_v41  ;;  %v2473_v41 = vsel %vm1630_vm2, 1.0, %v2930_v10 }
 0x2a8   :  { %v1070_v0 = vmax.f32 %v1054_v32, 0.0 }
 0x2aa   :  { %v1216_v27 = vmul.f32 %v2684_v56, %v1070_v0  ;;  %1309 = vmatmul.f32.gmra.mxu0 %v1070_v0  ;;  %v2694_v56 = vunpack.i.l.bf16 %v2693_v50 }
 0x2ac   :  { %v3689_v58 = vadd.f32 %v1216_v27, %v3585_v2 }
 0x2ad   :  { %v1037_v12 = vpop.f32.mrf.mxu3 }
 0x2ae   :  { %v1055_v36 = vadd.f32 %v1037_v12, %v974_v30  ;;  %v2695_v30 = vunpack.i.h.bf16 %v2693_v50 }
 0x2b0   :  { %v1071_v21 = vmax.f32 %v1055_v36, 0.0 }
 0x2b2   :  { %v1217_v52 = vmul.f32 %v2685_v7, %v1071_v21  ;;  %1312 = vmatmul.f32.gmra.mxu0 %v1071_v21  ;;  %v1239_v21 = vld [vmem:[#allocation3 + $0x220] sm:$0xff] }
 0x2b4   :  { %v3692_v57 = vadd.f32 %v1217_v52, %v3588_v42  ;;  %v1237_v42 = vld [vmem:[#allocation3 + $0x210] sm:$0xff]  ;;  %v2698_v52 = vpop.permute.xlu1 %2697 }
 0x2b7   :  { %v1268_v23 = vpop.f32.mrf.mxu0 }
 0x2b8   :  { %v1316_v45 = vadd.f32 %v1268_v23, %v1235_v38 }
 0x2ba   :  { %v1332_v25 = vmax.f32 %v1316_v45, 0.0  ;;  %v2699_v45 = vunpack.i.l.bf16 %v2698_v52 }
 0x2bc   :  { %v1478_v26 = vmul.f32 %v2689_v19, %v1332_v25  ;;  %1543 = vmatmul.f32.vlgmr.msrb.gmra.mxu1 %v1332_v25 }
 0x2be   :  { %v3695_v2 = vadd.f32 %v1478_v26, %v3597_v18  ;;  %v2474_v18 = vsel %vm1631_vm3, 1.0, %v2930_v10  ;;  %v1240_v26 = vld [vmem:[#allocation3 + $0x228] sm:$0xff] }
 0x2bf   :  { %v1271_v35 = vpop.f32.mrf.mxu0  ;;  %v2736_v24 = vpack.i.bf16 %v2474_v18, %v2473_v41 }
 0x2c0   :  { %v1317_v14 = vadd.f32 %v1271_v35, %v1236_v53 }
 0x2c1   :  { %2737 = vperm.xlu0 %2523, %v2736_v24  }
 0x2c2   :  { %v1333_v46 = vmax.f32 %v1317_v14, 0.0 }
 0x2c4   :  { %v1479_v3 = vmul.f32 %v2690_v37, %v1333_v46  ;;  %1546 = vmatmul.f32.gmra.mxu1 %v1333_v46  ;;  %v2700_v37 = vunpack.i.h.bf16 %v2698_v52 }
 0x2c6   :  { %v3700_v6 = vadd.f32 %v1479_v3, %v3604_v1  ;;  %v2472_v1 = vsel %vm1629_vm5, 1.0, %v2930_v10  ;;  %v1241_v3 = vld [vmem:[#allocation3 + $0x230] sm:$0xff]  ;;  %vm1909_vm5 = vcmp.eq.s32.totalorder %v3643_v28, 6 }
 0x2c7   :  { %v1274_v31 = vpop.f32.mrf.mxu0  ;;  %v2731_v27 = vpack.i.bf16 %v2472_v1, %v2471_v34 }
 0x2c8   :  { %v1318_v32 = vadd.f32 %v1274_v31, %v1237_v42  ;;  %v2703_v42 = vpop.permute.xlu2 %2702 }
 0x2c9   :  { %2732 = vperm.xlu2 %2545, %v2731_v27   ;;  %v2704_v31 = vunpack.i.l.bf16 %v2703_v42 }
 0x2ca   :  { %v1334_v5 = vmax.f32 %v1318_v32, 0.0 }
 0x2cc   :  { %v1480_v11 = vmul.f32 %v2694_v56, %v1334_v5  ;;  %1549 = vmatmul.f32.gmra.mxu1 %v1334_v5  ;;  %v1242_v56 = vld [vmem:[#allocation3 + $0x238] sm:$0xff] }
 0x2ce   :  { %v3707_v33 = vadd.f32 %v1480_v11, %v3609_v29  ;;  %v2476_v29 = vsel %vm1633_vm7, 1.0, %v2930_v10  ;;  %v2705_v11 = vunpack.i.h.bf16 %v2703_v42 }
 0x2cf   :  { %v1277_v0 = vpop.f32.mrf.mxu0  ;;  %v2741_v39 = vpack.i.bf16 %v2476_v29, %v2475_v4  ;;  %v1244_v29 = vld [vmem:[#allocation3 + $0x248] sm:$0xff] }
 0x2d0   :  { %v1319_v12 = vadd.f32 %v1277_v0, %v1238_v8  ;;  %v1243_v0 = vld [vmem:[#allocation3 + $0x240] sm:$0xff] }
 0x2d1   :  { %2742 = vperm.xlu1 %2534, %v2741_v39  }
 0x2d2   :  { %v1335_v7 = vmax.f32 %v1319_v12, 0.0 }
 0x2d3   :  { %v2708_v27 = vpop.permute.xlu0 %2707 }
 0x2d4   :  { %v1481_v36 = vmul.f32 %v2695_v30, %v1335_v7  ;;  %1552 = vmatmul.f32.gmra.mxu1 %v1335_v7  ;;  %v2479_v30 = vsel %vm1636_vm8, 1.0, %v2930_v10  ;;  %vm1910_vm8 = vcmp.eq.s32.totalorder %v3620_v40, 6 }
 0x2d6   :  { %v3714_v60 = vadd.f32 %v1481_v36, %v3612_v16 }
 0x2d7   :  { %v1280_v38 = vpop.f32.mrf.mxu0 }
 0x2d8   :  { %v1320_v23 = vadd.f32 %v1280_v38, %v1239_v21  ;;  %v2709_v21 = vunpack.i.l.bf16 %v2708_v27 }
 0x2da   :  { %v1336_v19 = vmax.f32 %v1320_v23, 0.0  ;;  %v2710_v23 = vunpack.i.h.bf16 %v2708_v27 }
 0x2dc   :  { %v1482_v25 = vmul.f32 %v2699_v45, %v1336_v19  ;;  %1555 = vmatmul.f32.gmra.mxu1 %v1336_v19 }
 0x2de   :  { %v3719_v53 = vadd.f32 %v1482_v25, %v3615_v22 }
 0x2df   :  { %v1283_v35 = vpop.f32.mrf.mxu0 }
 0x2e0   :  { %v1321_v16 = vadd.f32 %v1283_v35, %v1240_v26  ;;  %v1245_v26 = vld [vmem:[#allocation3 + $0x250] sm:$0xff]  ;;  %v2713_v35 = vpop.permute.xlu1 %2712 }
 0x2e1   :  { %v2714_v42 = vunpack.i.l.bf16 %v2713_v35 }
 0x2e2   :  { %v1337_v14 = vmax.f32 %v1321_v16, 0.0  ;;  %v2482_v16 = vsel %vm1639_vm13, 1.0, %v2930_v10 }
 0x2e4   :  { %v1483_v46 = vmul.f32 %v2700_v37, %v1337_v14  ;;  %1558 = vmatmul.f32.gmra.mxu1 %v1337_v14  ;;  %v2481_v37 = vsel %vm1638_vm12, 1.0, %v2930_v10 }
 0x2e6   :  { %v3722_v50 = vadd.f32 %v1483_v46, %v3630_v62  ;;  %v2756_v46 = vpack.i.bf16 %v2482_v16, %v2481_v37 }
 0x2e7   :  { %v1286_v41 = vpop.f32.mrf.mxu0 }
 0x2e8   :  { %v1322_v18 = vadd.f32 %v1286_v41, %v1241_v3  ;;  %2757 = vperm.xlu1 %2534, %v2756_v46  }
 0x2ea   :  { %v1338_v24 = vmax.f32 %v1322_v18, 0.0 }
 0x2ec   :  { %v1484_v32 = vmul.f32 %v2704_v31, %v1338_v24  ;;  %1561 = vmatmul.f32.gmra.mxu1 %v1338_v24  ;;  %v1246_v31 = vld [vmem:[#allocation3 + $0x258] sm:$0xff]  ;;  %v2715_v24 = vunpack.i.h.bf16 %v2713_v35  ;;  %v2761_v35 = vpack.i.bf16 %v2484_v49, %v2483_v48 }
 0x2ee   :  { %v3725_v22 = vadd.f32 %v1484_v32, %v3647_v44  ;;  %v2480_v44 = vsel %vm1637_vm9, 1.0, %v2930_v10  ;;  %vm1911_vm9 = vcmp.eq.s32.totalorder %v3626_v55, 6 }
 0x2ef   :  { %v1289_v5 = vpop.f32.mrf.mxu0  ;;  %v2751_v7 = vpack.i.bf16 %v2480_v44, %v2479_v30  ;;  %v1248_v44 = vld [vmem:[#allocation3 + $0x268] sm:$0xff] }
 0x2f0   :  { %v1323_v8 = vadd.f32 %v1289_v5, %v1242_v56  ;;  %v1247_v5 = vld [vmem:[#allocation3 + $0x260] sm:$0xff] }
 0x2f1   :  { %2752 = vperm.xlu0 %2523, %v2751_v7  }
 0x2f2   :  { %v1339_v34 = vmax.f32 %v1323_v8, 0.0 }
 0x2f4   :  { %v1485_v1 = vmul.f32 %v2705_v11, %v1339_v34  ;;  %1564 = vmatmul.f32.gmra.mxu1 %v1339_v34  ;;  %v2718_v11 = vpop.permute.xlu2 %2717 }
 0x2f5   :  { %v2720_v7 = vunpack.i.h.bf16 %v2718_v11 }
 0x2f6   :  { %v3730_v62 = vadd.f32 %v1485_v1, %v3654_v47  ;;  %v2478_v47 = vsel %vm1635_vm11, 1.0, %v2930_v10 }
 0x2f7   :  { %v1292_v12 = vpop.f32.mrf.mxu0  ;;  %v2746_v39 = vpack.i.bf16 %v2478_v47, %v2477_v9 }
 0x2f8   :  { %v1324_v36 = vadd.f32 %v1292_v12, %v1243_v0  ;;  %v2719_v0 = vunpack.i.l.bf16 %v2718_v11 }
 0x2f9   :  { %2747 = vperm.xlu2 %2545, %v2746_v39  }
 0x2fa   :  { %v1340_v52 = vmax.f32 %v1324_v36, 0.0 }
 0x2fc   :  { %v1486_v4 = vmul.f32 %v2709_v21, %v1340_v52  ;;  %1567 = vmatmul.f32.gmra.mxu1 %v1340_v52 }
 0x2fe   :  { %v3737_v63 = vadd.f32 %v1486_v4, %v3659_v15  ;;  %v1249_v4 = vld [vmem:[#allocation3 + $0x270] sm:$0xff] }
 0x2ff   :  { %v1295_v38 = vpop.f32.mrf.mxu0 }
 0x300   :  { %v1325_v45 = vadd.f32 %v1295_v38, %v1244_v29 }
 0x301   :  { %v2723_v29 = vpop.permute.xlu0 %2722  ;;  %2762 = vperm.xlu2 %2545, %v2761_v35  }
 0x302   :  { %v1341_v19 = vmax.f32 %v1325_v45, 0.0  ;;  %v2724_v38 = vunpack.i.l.bf16 %v2723_v29  ;;  %v1250_v45 = vld [vmem:[#allocation3 + $0x278] sm:$0xff]  ;;  %v2725_v16 = vunpack.i.h.bf16 %v2723_v29 }
 0x304   :  { %v1487_v25 = vmul.f32 %v2710_v23, %v1341_v19  ;;  %1570 = vmatmul.f32.gmra.mxu1 %v1341_v19 }
 0x306   :  { %v3744_v15 = vadd.f32 %v1487_v25, %v3662_v59 }
 0x307   :  { %v1298_v14 = vpop.f32.mrf.mxu0 }
 0x308   :  { %v1326_v3 = vadd.f32 %v1298_v14, %v1245_v26 }
 0x30a   :  { %v1342_v41 = vmax.f32 %v1326_v3, 0.0 }
 0x30c   :  { %v1488_v18 = vmul.f32 %v2714_v42, %v1342_v41  ;;  %1573 = vmatmul.f32.gmra.mxu1 %v1342_v41  ;;  %v1511_v41 = vld [vmem:[#allocation3 + $0x280] sm:$0xff] }
 0x30e   :  { %v3749_v13 = vadd.f32 %v1488_v18, %v3665_v54  ;;  %v2728_v18 = vpop.permute.xlu1 %2727 }
 0x30f   :  { %v1301_v20 = vpop.f32.mrf.mxu0 }
 0x310   :  { %v1327_v59 = vadd.f32 %v1301_v20, %v1246_v31 }
 0x312   :  { %v1343_v32 = vmax.f32 %v1327_v59, 0.0 }
 0x314   :  { %v1489_v56 = vmul.f32 %v2715_v24, %v1343_v32  ;;  %1576 = vmatmul.f32.gmra.mxu1 %v1343_v32  ;;  %v2729_v24 = vunpack.i.l.bf16 %v2728_v18  ;;  %v3787_v32 = vld [vmem:[%s3998_s2 + $0x10] sm:$0xff] }
 0x315   :  { %vm1904_vm2 = vcmp.eq.s32.totalorder %v3787_v32, 6  ;;  %vm2180_vm12 = vcmp.eq.s32.totalorder %v3787_v32, 7  ;;  %v2870_v32 = vld [vmem:[%s3998_s2 + $0x70] sm:$0xff] }
 0x316   :  { %v3752_v8 = vadd.f32 %v1489_v56, %v3670_v51  ;;  %v3793_v56 = vld [vmem:[%s3998_s2 + $0x18] sm:$0xff]  ;;  %vm1916_vm14 = vcmp.eq.s32.totalorder %v2870_v32, 6 }
 0x317   :  { %v1304_v34 = vpop.f32.mrf.mxu0  ;;  %vm1905_vm3 = vcmp.eq.s32.totalorder %v3793_v56, 6  ;;  %vm2181_vm13 = vcmp.eq.s32.totalorder %v3793_v56, 7  ;;  %v2871_v56 = vld [vmem:[%s3998_s2 + $0x78] sm:$0xff] }
 0x318   :  { %v1328_v1 = vadd.f32 %v1304_v34, %v1247_v5  ;;  %v2487_v5 = vsel %vm1904_vm2, 1.0, %v2930_v10  ;;  %v2488_v11 = vsel %vm1905_vm3, 1.0, %v2930_v10  ;;  %v1512_v34 = vld [vmem:[#allocation3 + $0x288] sm:$0xff]  ;;  %vm1917_vm15 = vcmp.eq.s32.totalorder %v2871_v56, 6 }
 0x31a   :  { %v1344_v27 = vmax.f32 %v1328_v1, 0.0  ;;  %v2771_v1 = vpack.i.bf16 %v2488_v11, %v2487_v5  ;;  %v3826_v5 = vld [vmem:[%s3998_s2 + $0x28] sm:$0xff] }
 0x31b   :  { %vm1907_vm7 = vcmp.eq.s32.totalorder %v3826_v5, 6  ;;  %vm2183_vm3 = vcmp.eq.s32.totalorder %v3826_v5, 7 }
 0x31c   :  { %v1490_v30 = vmul.f32 %v2719_v0, %v1344_v27  ;;  %1579 = vmatmul.f32.gmra.mxu1 %v1344_v27  ;;  %2772 = vperm.xlu1 %2534, %v2771_v1   ;;  %v1517_v1 = vld [vmem:[#allocation3 + $0x2b0] sm:$0xff] }
 0x31e   :  { %v3755_v54 = vadd.f32 %v1490_v30, %v3677_v17  ;;  %v3765_v17 = vld [vmem:[%s3998_s2] sm:$0xff]  ;;  %v2730_v30 = vunpack.i.h.bf16 %v2728_v18 }
 0x31f   :  { %v1307_v12 = vpop.f32.mrf.mxu0  ;;  %vm1902_vm0 = vcmp.eq.s32.totalorder %v3765_v17, 6 }
 0x320   :  { %v1329_v36 = vadd.f32 %v1307_v12, %v1248_v44  ;;  %v2485_v25 = vsel %vm1902_vm0, 1.0, %v2930_v10  ;;  %vm2186_vm0 = vcmp.eq.s32.totalorder %v3620_v40, 7 }
 0x322   :  { %v1345_v21 = vmax.f32 %v1329_v36, 0.0  ;;  %v1513_v36 = vld [vmem:[#allocation3 + $0x290] sm:$0xff] }
 0x324   :  { %v1491_v52 = vmul.f32 %v2720_v7, %v1345_v21  ;;  %1582 = vmatmul.f32.gmra.mxu1 %v1345_v21  ;;  %v2733_v21 = vpop.permute.xlu2 %2732 }
 0x326   :  { %v3758_v51 = vadd.f32 %v1491_v52, %v3682_v61  ;;  %v3771_v61 = vld [vmem:[%s3998_s2 + $0x8] sm:$0xff] }
 0x327   :  { %v1310_v9 = vpop.f32.mrf.mxu0  ;;  %vm1903_vm1 = vcmp.eq.s32.totalorder %v3771_v61, 6 }
 0x328   :  { %v1330_v47 = vadd.f32 %v1310_v9, %v1249_v4  ;;  %v2486_v37 = vsel %vm1903_vm1, 1.0, %v2930_v10  ;;  %v2734_v9 = vunpack.i.l.bf16 %v2733_v21  ;;  %vm2187_vm1 = vcmp.eq.s32.totalorder %v3626_v55, 7 }
 0x329   :  { %v2766_v46 = vpack.i.bf16 %v2486_v37, %v2485_v25 }
 0x32a   :  { %v1346_v39 = vmax.f32 %v1330_v47, 0.0 }
 0x32b   :  { %2767 = vperm.xlu0 %2523, %v2766_v46  }
 0x32c   :  { %v1492_v23 = vmul.f32 %v2724_v38, %v1346_v39  ;;  %1585 = vmatmul.f32.gmra.mxu1 %v1346_v39 }
 0x32e   :  { %v3775_v19 = vadd.f32 %v1492_v23, %v3689_v58 }
 0x32f   :  { %v1313_v26 = vpop.f32.mrf.mxu0 }
 0x330   :  { %v1331_v14 = vadd.f32 %v1313_v26, %v1250_v45  ;;  %v2735_v45 = vunpack.i.h.bf16 %v2733_v21  ;;  %v1515_v26 = vld [vmem:[#allocation3 + $0x2a0] sm:$0xff] }
 0x332   :  { %v1347_v3 = vmax.f32 %v1331_v14, 0.0 }
 0x333   :  { %v2738_v35 = vpop.permute.xlu0 %2737 }
 0x334   :  { %v1493_v42 = vmul.f32 %v2725_v16, %v1347_v3  ;;  %1588 = vmatmul.f32.gmra.mxu1 %v1347_v3  ;;  %v2739_v14 = vunpack.i.l.bf16 %v2738_v35  ;;  %v2491_v3 = vsel %vm1908_vm4, 1.0, %v2930_v10  ;;  %vm2192_vm4 = vcmp.eq.s32.totalorder %v2870_v32, 7 }
 0x336   :  { %v3782_v58 = vadd.f32 %v1493_v42, %v3692_v57  ;;  %v2492_v42 = vsel %vm1909_vm5, 1.0, %v2930_v10  ;;  %vm2193_vm5 = vcmp.eq.s32.totalorder %v2871_v56, 7 }
 0x337   :  { %v2781_v18 = vpack.i.bf16 %v2492_v42, %v2491_v3 }
 0x339   :  { %v1544_v31 = vpop.f32.mrf.mxu1  ;;  %2782 = vperm.xlu0 %2523, %v2781_v18  }
 0x33a   :  { %v1592_v20 = vadd.f32 %v1544_v31, %v1511_v41  ;;  %v1516_v41 = vld [vmem:[#allocation3 + $0x2a8] sm:$0xff] }
 0x33c   :  { %v1608_v59 = vmax.f32 %v1592_v20, 0.0  ;;  %v2740_v20 = vunpack.i.h.bf16 %v2738_v35 }
 0x33e   :  { %v1754_v57 = vmul.f32 %v2729_v24, %v1608_v59  ;;  %1819 = vmatmul.f32.vlgmr.msrb.gmra.mxu2 %v1608_v59 }
 0x340   :  { %v3799_v0 = vadd.f32 %v1754_v57, %v3695_v2  ;;  %v1514_v2 = vld [vmem:[#allocation3 + $0x298] sm:$0xff]  ;;  %v3820_v57 = vld [vmem:[%s3998_s2 + $0x20] sm:$0xff] }
 0x341   :  { %v1547_v27 = vpop.f32.mrf.mxu1  ;;  %vm1906_vm6 = vcmp.eq.s32.totalorder %v3820_v57, 6  ;;  %vm2182_vm2 = vcmp.eq.s32.totalorder %v3820_v57, 7 }
 0x342   :  { %v1593_v44 = vadd.f32 %v1547_v27, %v1512_v34  ;;  %v2489_v11 = vsel %vm1906_vm6, 1.0, %v2930_v10  ;;  %v2490_v34 = vsel %vm1907_vm7, 1.0, %v2930_v10 }
 0x343   :  { %v2743_v27 = vpop.permute.xlu1 %2742 }
 0x344   :  { %v1609_v12 = vmax.f32 %v1593_v44, 0.0 }
 0x346   :  { %v1755_v7 = vmul.f32 %v2730_v30, %v1609_v12  ;;  %1822 = vmatmul.f32.gmra.mxu2 %v1609_v12  ;;  %v2776_v30 = vpack.i.bf16 %v2490_v34, %v2489_v11  ;;  %v1520_v11 = vld [vmem:[#allocation3 + $0x2c8] sm:$0xff] }
 0x348   :  { %v3802_v52 = vadd.f32 %v1755_v7, %v3700_v6  ;;  %2777 = vperm.xlu2 %2545, %v2776_v30  }
 0x349   :  { %v1550_v4 = vpop.f32.mrf.mxu1 }
 0x34a   :  { %v1594_v29 = vadd.f32 %v1550_v4, %v1513_v36  ;;  %v2744_v36 = vunpack.i.l.bf16 %v2743_v27  ;;  %v3839_v4 = vld [vmem:[%s3998_s2 + $0x60] sm:$0xff] }
 0x34b   :  { %vm1914_vm10 = vcmp.eq.s32.totalorder %v3839_v4, 6 }
 0x34c   :  { %v1610_v47 = vmax.f32 %v1594_v29, 0.0 }
 0x34e   :  { %v1756_v38 = vmul.f32 %v2734_v9, %v1610_v47  ;;  %1825 = vmatmul.f32.gmra.mxu2 %v1610_v47  ;;  %v2493_v9 = vsel %vm1910_vm8, 1.0, %v2930_v10  ;;  %v2494_v47 = vsel %vm1911_vm9, 1.0, %v2930_v10 }
 0x350   :  { %v3805_v39 = vadd.f32 %v1756_v38, %v3707_v33  ;;  %v2497_v38 = vsel %vm1914_vm10, 1.0, %v2930_v10  ;;  %vm2178_vm10 = vcmp.eq.s32.totalorder %v3765_v17, 7 }
 0x351   :  { %v1553_v23 = vpop.f32.mrf.mxu1 }
 0x352   :  { %v1595_v48 = vadd.f32 %v1553_v23, %v1514_v2  ;;  %v1518_v2 = vld [vmem:[#allocation3 + $0x2b8] sm:$0xff]  ;;  %v2786_v23 = vpack.i.bf16 %v2494_v47, %v2493_v9  ;;  %v1521_v9 = vld [vmem:[#allocation3 + $0x2d0] sm:$0xff] }
 0x354   :  { %v1611_v49 = vmax.f32 %v1595_v48, 0.0  ;;  %2787 = vperm.xlu1 %2534, %v2786_v23  }
 0x356   :  { %v1757_v25 = vmul.f32 %v2735_v45, %v1611_v49  ;;  %1828 = vmatmul.f32.gmra.mxu2 %v1611_v49 }
 0x358   :  { %v3808_v6 = vadd.f32 %v1757_v25, %v3714_v60 }
 0x359   :  { %v1556_v37 = vpop.f32.mrf.mxu1 }
 0x35a   :  { %v1596_v16 = vadd.f32 %v1556_v37, %v1515_v26  ;;  %v2745_v26 = vunpack.i.h.bf16 %v2743_v27 }
 0x35c   :  { %v1612_v46 = vmax.f32 %v1596_v16, 0.0 }
 0x35e   :  { %v1758_v33 = vmul.f32 %v2739_v14, %v1612_v46  ;;  %1831 = vmatmul.f32.gmra.mxu2 %v1612_v46  ;;  %v2503_v14 = vsel %vm2180_vm12, 1.0, %v2930_v10  ;;  %v2504_v46 = vsel %vm2181_vm13, 1.0, %v2930_v10  ;;  %vm2184_vm12 = vcmp.eq.s32.totalorder %v3637_v43, 7 }
 0x35f   :  { %v2811_v3 = vpack.i.bf16 %v2504_v46, %v2503_v14  ;;  %v1522_v46 = vld [vmem:[#allocation3 + $0x2d8] sm:$0xff]  ;;  %vm2185_vm13 = vcmp.eq.s32.totalorder %v3643_v28, 7 }
 0x360   :  { %v3815_v31 = vadd.f32 %v1758_v33, %v3719_v53  ;;  %v1519_v33 = vld [vmem:[#allocation3 + $0x2c0] sm:$0xff] }
 0x361   :  { %v1559_v60 = vpop.f32.mrf.mxu1 }
 0x362   :  { %v1597_v24 = vadd.f32 %v1559_v60, %v1516_v41 }
 0x363   :  { %v2753_v47 = vpop.permute.xlu0 %2752 }
 0x364   :  { %v1613_v59 = vmax.f32 %v1597_v24, 0.0  ;;  %v2499_v24 = vsel %vm1916_vm14, 1.0, %v2930_v10  ;;  %vm2190_vm14 = vcmp.eq.s32.totalorder %v3839_v4, 7 }
 0x366   :  { %v1759_v53 = vmul.f32 %v2740_v20, %v1613_v59  ;;  %1834 = vmatmul.f32.gmra.mxu2 %v1613_v59  ;;  %v2500_v59 = vsel %vm1917_vm15, 1.0, %v2930_v10 }
 0x367   :  { %v2801_v34 = vpack.i.bf16 %v2500_v59, %v2499_v24  ;;  %v1523_v59 = vld [vmem:[#allocation3 + $0x2e0] sm:$0xff] }
 0x368   :  { %v3832_v44 = vadd.f32 %v1759_v53, %v3722_v50  ;;  %v3845_v50 = vld [vmem:[%s3998_s2 + $0x68] sm:$0xff]  ;;  %v2509_v53 = vsel %vm2186_vm0, 1.0, %v2930_v10 }
 0x369   :  { %v1562_v12 = vpop.f32.mrf.mxu1  ;;  %vm1915_vm11 = vcmp.eq.s32.totalorder %v3845_v50, 6  ;;  %2802 = vperm.xlu1 %2534, %v2801_v34   ;;  %vm2191_vm15 = vcmp.eq.s32.totalorder %v3845_v50, 7  ;;  %v1526_v50 = vld [vmem:[#allocation3 + $0x2f8] sm:$0xff] }
 0x36a   :  { %v1598_v7 = vadd.f32 %v1562_v12, %v1517_v1  ;;  %v2498_v45 = vsel %vm1915_vm11, 1.0, %v2930_v10  ;;  %v2510_v1 = vsel %vm2187_vm1, 1.0, %v2930_v10  ;;  %vm2179_vm11 = vcmp.eq.s32.totalorder %v3771_v61, 7 }
 0x36b   :  { %v2796_v49 = vpack.i.bf16 %v2498_v45, %v2497_v38  ;;  %v2826_v30 = vpack.i.bf16 %v2510_v1, %v2509_v53  ;;  %v2502_v24 = vsel %vm2179_vm11, 1.0, %v2930_v10  ;;  %v2507_v61 = vsel %vm2184_vm12, 1.0, %v2930_v10 }
 0x36c   :  { %v1614_v21 = vmax.f32 %v1598_v7, 0.0 }
 0x36d   :  { %2797 = vperm.xlu0 %2523, %v2796_v49   ;;  %v2754_v49 = vunpack.i.l.bf16 %v2753_v47 }
 0x36e   :  { %v1760_v29 = vmul.f32 %v2744_v36, %v1614_v21  ;;  %1837 = vmatmul.f32.gmra.mxu2 %v1614_v21  ;;  %v2505_v21 = vsel %vm2182_vm2, 1.0, %v2930_v10 }
 0x370   :  { %v3853_v48 = vadd.f32 %v1760_v29, %v3725_v22  ;;  %v2748_v22 = vpop.permute.xlu2 %2747  ;;  %v2515_v29 = vsel %vm2192_vm4, 1.0, %v2930_v10 }
 0x371   :  { %v1565_v25 = vpop.f32.mrf.mxu1  ;;  %v2749_v60 = vunpack.i.l.bf16 %v2748_v22  ;;  %v2750_v40 = vunpack.i.h.bf16 %v2748_v22 }
 0x372   :  { %v1599_v35 = vadd.f32 %v1565_v25, %v1518_v2  ;;  %v2516_v2 = vsel %vm2193_vm5, 1.0, %v2930_v10 }
 0x373   :  { %v2841_v57 = vpack.i.bf16 %v2516_v2, %v2515_v29  ;;  %v2513_v29 = vsel %vm2190_vm14, 1.0, %v2930_v10 }
 0x374   :  { %v1615_v37 = vmax.f32 %v1599_v35, 0.0  ;;  %v2873_v35 = vld [vmem:[%s3998_s2 + $0x58] sm:$0xff] }
 0x375   :  { %2812 = vperm.xlu0 %2523, %v2811_v3   ;;  %vm2189_vm7 = vcmp.eq.s32.totalorder %v2873_v35, 7  ;;  %vm1913_vm9 = vcmp.eq.s32.totalorder %v2873_v35, 6 }
 0x376   :  { %v1761_v16 = vmul.f32 %v2745_v26, %v1615_v37  ;;  %1840 = vmatmul.f32.gmra.mxu2 %v1615_v37  ;;  %v2872_v26 = vld [vmem:[%s3998_s2 + $0x50] sm:$0xff]  ;;  %v2496_v22 = vsel %vm1913_vm9, 1.0, %v2930_v10  ;;  %s2931_s2 = smov [#allocation6]  }
 0x377   :  { %vm2188_vm6 = vcmp.eq.s32.totalorder %v2872_v26, 7  ;;  %vm1912_vm8 = vcmp.eq.s32.totalorder %v2872_v26, 6  ;;  %s2374_s4 = sshll.u32 %s2931_s2, 4  ;;  %s2375_s4 = int_to_ptr.vmem [resolvable:$true] %s2374_s4 }
 0x378   :  { %v3860_v42 = vadd.f32 %v1761_v16, %v3730_v62  ;;  %v2511_v37 = vsel %vm2188_vm6, 1.0, %v2930_v10  ;;  %v2512_v16 = vsel %vm2189_vm7, 1.0, %v2930_v10  ;;  %v2495_v14 = vsel %vm1912_vm8, 1.0, %v2930_v10 }
 0x379   :  { %v1568_v41 = vpop.f32.mrf.mxu1 }
 0x37a   :  { %v1600_v18 = vadd.f32 %v1568_v41, %v1519_v33  ;;  %v2831_v33 = vpack.i.bf16 %v2512_v16, %v2511_v37  ;;  %v2791_v41 = vpack.i.bf16 %v2496_v22, %v2495_v14  ;;  %v1787_v16 = vld [vmem:[#allocation3 + $0x300] sm:$0xff] }
 0x37c   :  { %v1616_v20 = vmax.f32 %v1600_v18, 0.0  ;;  %2792 = vperm.xlu2 %2545, %v2791_v41  }
 0x37d   :  { %2827 = vperm.xlu0 %2523, %v2826_v30   ;;  %v2508_v30 = vsel %vm2185_vm13, 1.0, %v2930_v10 }
 0x37e   :  { %v1762_v62 = vmul.f32 %v2749_v60, %v1616_v20  ;;  %1843 = vmatmul.f32.gmra.mxu2 %v1616_v20  ;;  %v2755_v60 = vunpack.i.h.bf16 %v2753_v47  ;;  %v1525_v47 = vld [vmem:[#allocation3 + $0x2f0] sm:$0xff] }
 0x380   :  { %v3875_v27 = vadd.f32 %v1762_v62, %v3737_v63  ;;  %v2506_v63 = vsel %vm2183_vm3, 1.0, %v2930_v10  ;;  %v2501_v62 = vsel %vm2178_vm10, 1.0, %v2930_v10 }
 0x381   :  { %v1571_v12 = vpop.f32.mrf.mxu1  ;;  %v2816_v38 = vpack.i.bf16 %v2506_v63, %v2505_v21  ;;  %v2806_v53 = vpack.i.bf16 %v2502_v24, %v2501_v62 }
 0x382   :  { %v1601_v55 = vadd.f32 %v1571_v12, %v1520_v11 }
 0x383   :  { %2817 = vperm.xlu1 %2534, %v2816_v38   ;;  %v2763_v38 = vpop.permute.xlu2 %2762 }
 0x384   :  { %v1617_v7 = vmax.f32 %v1601_v55, 0.0  ;;  %2807 = vperm.xlu2 %2545, %v2806_v53   ;;  %v2821_v55 = vpack.i.bf16 %v2508_v30, %v2507_v61  ;;  %v2765_v35 = vunpack.i.h.bf16 %v2763_v38  ;;  %v1790_v30 = vld [vmem:[#allocation3 + $0x318] sm:$0xff] }
 0x385   :  { %2842 = vperm.xlu0 %2523, %v2841_v57  }
 0x386   :  { %v1763_v36 = vmul.f32 %v2750_v40, %v1617_v7  ;;  %1846 = vmatmul.f32.gmra.mxu2 %v1617_v7  ;;  %v1524_v7 = vld [vmem:[#allocation3 + $0x2e8] sm:$0xff] }
 0x388   :  { %v3884_v23 = vadd.f32 %v1763_v36, %v3744_v15 }
 0x389   :  { %v1574_v5 = vpop.f32.mrf.mxu1 }
 0x38a   :  { %v1602_v45 = vadd.f32 %v1574_v5, %v1521_v9  ;;  %v2514_v9 = vsel %vm2191_vm15, 1.0, %v2930_v10 }
 0x38b   :  { %2832 = vperm.xlu1 %2534, %v2831_v33   ;;  %v2836_v2 = vpack.i.bf16 %v2514_v9, %v2513_v29 }
 0x38c   :  { %v1618_v25 = vmax.f32 %v1602_v45, 0.0  ;;  %2822 = vperm.xlu2 %2545, %v2821_v55   ;;  %v2764_v45 = vunpack.i.l.bf16 %v2763_v38  ;;  %v1792_v38 = vld [vmem:[#allocation3 + $0x328] sm:$0xff] }
 0x38e   :  { %v1764_v15 = vmul.f32 %v2754_v49, %v1618_v25  ;;  %1849 = vmatmul.f32.gmra.mxu2 %v1618_v25 }
 0x390   :  { %v3897_v3 = vadd.f32 %v1764_v15, %v3749_v13  ;;  %v2758_v13 = vpop.permute.xlu1 %2757 }
 0x391   :  { %v1577_v18 = vpop.f32.mrf.mxu1  ;;  %v2759_v1 = vunpack.i.l.bf16 %v2758_v13  ;;  %v2760_v43 = vunpack.i.h.bf16 %v2758_v13 }
 0x392   :  { %v1603_v20 = vadd.f32 %v1577_v18, %v1522_v46 }
 0x394   :  { %v1619_v32 = vmax.f32 %v1603_v20, 0.0  ;;  %2837 = vperm.xlu2 %2545, %v2836_v2  }
 0x396   :  { %v1765_v56 = vmul.f32 %v2755_v60, %v1619_v32  ;;  %1852 = vmatmul.f32.gmra.mxu2 %v1619_v32  ;;  %v1788_v60 = vld [vmem:[#allocation3 + $0x308] sm:$0xff] }
 0x398   :  { %v3904_v11 = vadd.f32 %v1765_v56, %v3752_v8 }
 0x399   :  { %v1580_v34 = vpop.f32.mrf.mxu1 }
 0x39a   :  { %v1604_v17 = vadd.f32 %v1580_v34, %v1523_v59  ;;  %v2773_v59 = vpop.permute.xlu1 %2772 }
 0x39c   :  { %v1620_v12 = vmax.f32 %v1604_v17, 0.0  ;;  %v2774_v17 = vunpack.i.l.bf16 %v2773_v59 }
 0x39d   :  { %v2768_v14 = vpop.permute.xlu0 %2767 }
 0x39e   :  { %v1766_v40 = vmul.f32 %v2759_v1, %v1620_v12  ;;  %1855 = vmatmul.f32.gmra.mxu2 %v1620_v12  ;;  %v2769_v22 = vunpack.i.l.bf16 %v2768_v14  ;;  %v2770_v32 = vunpack.i.h.bf16 %v2768_v14 }
 0x3a0   :  { %v3911_v8 = vadd.f32 %v1766_v40, %v3755_v54  ;;  %v2775_v40 = vunpack.i.h.bf16 %v2773_v59 }
 0x3a1   :  { %v1583_v36 = vpop.f32.mrf.mxu1 }
 0x3a2   :  { %v1605_v21 = vadd.f32 %v1583_v36, %v1524_v7 }
 0x3a4   :  { %v1621_v28 = vmax.f32 %v1605_v21, 0.0  ;;  %v2778_v21 = vpop.permute.xlu2 %2777 }
 0x3a5   :  { %v2779_v29 = vunpack.i.l.bf16 %v2778_v21 }
 0x3a6   :  { %v1767_v63 = vmul.f32 %v2760_v43, %v1621_v28  ;;  %1858 = vmatmul.f32.gmra.mxu2 %v1621_v28  ;;  %v1791_v43 = vld [vmem:[#allocation3 + $0x320] sm:$0xff] }
 0x3a8   :  { %v3918_v54 = vadd.f32 %v1767_v63, %v3758_v51 }
 0x3a9   :  { %v1586_v57 = vpop.f32.mrf.mxu1 }
 0x3aa   :  { %v1606_v5 = vadd.f32 %v1586_v57, %v1525_v47  ;;  %v2780_v57 = vunpack.i.h.bf16 %v2778_v21 }
 0x3ac   :  { %v1622_v49 = vmax.f32 %v1606_v5, 0.0 }
 0x3ae   :  { %v1768_v4 = vmul.f32 %v2764_v45, %v1622_v49  ;;  %1861 = vmatmul.f32.gmra.mxu2 %v1622_v49 }
 0x3b0   :  { %v3921_v25 = vadd.f32 %v1768_v4, %v3775_v19  ;;  %v1793_v4 = vld [vmem:[#allocation3 + $0x330] sm:$0xff] }
 0x3b1   :  { %v1589_v26 = vpop.f32.mrf.mxu1 }
 0x3b2   :  { %v1607_v10 = vadd.f32 %v1589_v26, %v1526_v50  ;;  %v2783_v50 = vpop.permute.xlu0 %2782 }
 0x3b4   :  { %v1623_v15 = vmax.f32 %v1607_v10, 0.0  ;;  %v2784_v10 = vunpack.i.l.bf16 %v2783_v50 }
 0x3b6   :  { %v1769_v37 = vmul.f32 %v2765_v35, %v1623_v15  ;;  %1864 = vmatmul.f32.gmra.mxu2 %v1623_v15 }
 0x3b8   :  { %v3924_v51 = vadd.f32 %v1769_v37, %v3782_v58  ;;  %v1789_v58 = vld [vmem:[#allocation3 + $0x310] sm:$0xff] }
 0x3c1   :  { %v1820_v46 = vpop.f32.mrf.mxu2 }
 0x3c2   :  { %v1868_v33 = vadd.f32 %v1820_v46, %v1787_v16  ;;  %v1794_v16 = vld [vmem:[#allocation3 + $0x338] sm:$0xff]  ;;  %v2785_v46 = vunpack.i.h.bf16 %v2783_v50 }
 0x3c4   :  { %v1884_v41 = vmax.f32 %v1868_v33, 0.0 }
 0x3c6   :  { %v2030_v18 = vmul.f32 %v2769_v22, %v1884_v41  ;;  %2095 = vmatmul.f32.vlgmr.msrb.gmra.mxu3 %v1884_v41 }
 0x3c8   :  { %v3927_v19 = vadd.f32 %v2030_v18, %v3799_v0  ;;  %v1795_v18 = vld [vmem:[#allocation3 + $0x340] sm:$0xff] }
 0x3c9   :  { %v1823_v20 = vpop.f32.mrf.mxu2 }
 0x3ca   :  { %v1869_v56 = vadd.f32 %v1823_v20, %v1788_v60  ;;  %v2788_v60 = vpop.permute.xlu1 %2787 }
 0x3cc   :  { %v1885_v62 = vmax.f32 %v1869_v56, 0.0  ;;  %v2789_v56 = vunpack.i.l.bf16 %v2788_v60 }
 0x3ce   :  { %v2031_v24 = vmul.f32 %v2770_v32, %v1885_v62  ;;  %2098 = vmatmul.f32.gmra.mxu3 %v1885_v62 }
 0x3d0   :  { %v3930_v13 = vadd.f32 %v2031_v24, %v3802_v52 }
 0x3d1   :  { %v1826_v53 = vpop.f32.mrf.mxu2 }
 0x3d2   :  { %v1870_v34 = vadd.f32 %v1826_v53, %v1789_v58  ;;  %v1796_v58 = vld [vmem:[#allocation3 + $0x348] sm:$0xff]  ;;  %v2790_v53 = vunpack.i.h.bf16 %v2788_v60 }
 0x3d4   :  { %v1886_v1 = vmax.f32 %v1870_v34, 0.0 }
 0x3d6   :  { %v2032_v61 = vmul.f32 %v2774_v17, %v1886_v1  ;;  %2101 = vmatmul.f32.gmra.mxu3 %v1886_v1 }
 0x3d8   :  { %v3933_v0 = vadd.f32 %v2032_v61, %v3805_v39  ;;  %v1797_v61 = vld [vmem:[#allocation3 + $0x350] sm:$0xff] }
 0x3d9   :  { %v1829_v12 = vpop.f32.mrf.mxu2 }
 0x3da   :  { %v1871_v55 = vadd.f32 %v1829_v12, %v1790_v30  ;;  %v2793_v30 = vpop.permute.xlu2 %2792 }
 0x3dc   :  { %v1887_v7 = vmax.f32 %v1871_v55, 0.0 }
 0x3de   :  { %v2033_v36 = vmul.f32 %v2775_v40, %v1887_v7  ;;  %2104 = vmatmul.f32.gmra.mxu3 %v1887_v7  ;;  %v2794_v40 = vunpack.i.l.bf16 %v2793_v30 }
 0x3e0   :  { %v3936_v52 = vadd.f32 %v2033_v36, %v3808_v6 }
 0x3e1   :  { %v1832_v28 = vpop.f32.mrf.mxu2 }
 0x3e2   :  { %v1872_v63 = vadd.f32 %v1832_v28, %v1791_v43  ;;  %v1798_v43 = vld [vmem:[#allocation3 + $0x358] sm:$0xff]  ;;  %v2795_v28 = vunpack.i.h.bf16 %v2793_v30 }
 0x3e4   :  { %v1888_v9 = vmax.f32 %v1872_v63, 0.0 }
 0x3e6   :  { %v2034_v47 = vmul.f32 %v2779_v29, %v1888_v9  ;;  %2107 = vmatmul.f32.gmra.mxu3 %v1888_v9 }
 0x3e8   :  { %v3939_v39 = vadd.f32 %v2034_v47, %v3815_v31  ;;  %v1799_v47 = vld [vmem:[#allocation3 + $0x360] sm:$0xff] }
 0x3e9   :  { %v1835_v2 = vpop.f32.mrf.mxu2 }
 0x3ea   :  { %v1873_v5 = vadd.f32 %v1835_v2, %v1792_v38 }
 0x3ec   :  { %v1889_v45 = vmax.f32 %v1873_v5, 0.0 }
 0x3ee   :  { %v2035_v49 = vmul.f32 %v2780_v57, %v1889_v45  ;;  %2110 = vmatmul.f32.gmra.mxu3 %v1889_v45  ;;  %v2798_v57 = vpop.permute.xlu0 %2797 }
 0x3ef   :  { %v2799_v5 = vunpack.i.l.bf16 %v2798_v57 }
 0x3f0   :  { %v3942_v6 = vadd.f32 %v2035_v49, %v3832_v44 }
 0x3f1   :  { %v1838_v26 = vpop.f32.mrf.mxu2 }
 0x3f2   :  { %v1874_v35 = vadd.f32 %v1838_v26, %v1793_v4  ;;  %v1800_v4 = vld [vmem:[#allocation3 + $0x368] sm:$0xff] }
 0x3f4   :  { %v1890_v15 = vmax.f32 %v1874_v35, 0.0  ;;  %v2800_v35 = vunpack.i.h.bf16 %v2798_v57 }
 0x3f6   :  { %v2036_v37 = vmul.f32 %v2784_v10, %v1890_v15  ;;  %2113 = vmatmul.f32.gmra.mxu3 %v1890_v15 }
 0x3f8   :  { %v3945_v31 = vadd.f32 %v2036_v37, %v3853_v48  ;;  %v1801_v37 = vld [vmem:[#allocation3 + $0x370] sm:$0xff] }
 0x3f9   :  { %v1841_v14 = vpop.f32.mrf.mxu2 }
 0x3fa   :  { %v1875_v33 = vadd.f32 %v1841_v14, %v1794_v16 }
 0x3fc   :  { %v1891_v22 = vmax.f32 %v1875_v33, 0.0 }
 0x3fe   :  { %v2037_v41 = vmul.f32 %v2785_v46, %v1891_v22  ;;  %2116 = vmatmul.f32.gmra.mxu3 %v1891_v22  ;;  %v2803_v46 = vpop.permute.xlu1 %2802 }
 0x3ff   :  { %v2804_v33 = vunpack.i.l.bf16 %v2803_v46 }
 0x400   :  { %v3948_v44 = vadd.f32 %v2037_v41, %v3860_v42 }
 0x401   :  { %v1844_v20 = vpop.f32.mrf.mxu2 }
 0x402   :  { %v1876_v32 = vadd.f32 %v1844_v20, %v1795_v18  ;;  %v1802_v18 = vld [vmem:[#allocation3 + $0x378] sm:$0xff] }
 0x404   :  { %v1892_v62 = vmax.f32 %v1876_v32, 0.0  ;;  %v2805_v32 = vunpack.i.h.bf16 %v2803_v46 }
 0x406   :  { %v2038_v24 = vmul.f32 %v2789_v56, %v1892_v62  ;;  %2119 = vmatmul.f32.gmra.mxu3 %v1892_v62 }
 0x408   :  { %v3951_v48 = vadd.f32 %v2038_v24, %v3875_v27  ;;  %v2063_v24 = vld [vmem:[#allocation3 + $0x380] sm:$0xff] }
 0x409   :  { %v1847_v59 = vpop.f32.mrf.mxu2 }
 0x40a   :  { %v1877_v34 = vadd.f32 %v1847_v59, %v1796_v58 }
 0x40c   :  { %v1893_v17 = vmax.f32 %v1877_v34, 0.0 }
 0x40e   :  { %v2039_v1 = vmul.f32 %v2790_v53, %v1893_v17  ;;  %2122 = vmatmul.f32.gmra.mxu3 %v1893_v17  ;;  %v2808_v53 = vpop.permute.xlu2 %2807 }
 0x40f   :  { %v2809_v34 = vunpack.i.l.bf16 %v2808_v53 }
 0x410   :  { %v3954_v42 = vadd.f32 %v2039_v1, %v3884_v23 }
 0x411   :  { %v1850_v12 = vpop.f32.mrf.mxu2 }
 0x412   :  { %v1878_v55 = vadd.f32 %v1850_v12, %v1797_v61  ;;  %v2064_v61 = vld [vmem:[#allocation3 + $0x388] sm:$0xff] }
 0x414   :  { %v1894_v7 = vmax.f32 %v1878_v55, 0.0 }
 0x416   :  { %v2040_v36 = vmul.f32 %v2794_v40, %v1894_v7  ;;  %2125 = vmatmul.f32.gmra.mxu3 %v1894_v7  ;;  %v2810_v40 = vunpack.i.h.bf16 %v2808_v53 }
 0x418   :  { %v3957_v27 = vadd.f32 %v2040_v36, %v3897_v3  ;;  %v2065_v36 = vld [vmem:[#allocation3 + $0x390] sm:$0xff] }
 0x419   :  { %v1853_v21 = vpop.f32.mrf.mxu2 }
 0x41a   :  { %v1879_v63 = vadd.f32 %v1853_v21, %v1798_v43 }
 0x41c   :  { %v1895_v29 = vmax.f32 %v1879_v63, 0.0 }
 0x41e   :  { %v2041_v9 = vmul.f32 %v2795_v28, %v1895_v29  ;;  %2128 = vmatmul.f32.gmra.mxu3 %v1895_v29  ;;  %v2813_v28 = vpop.permute.xlu0 %2812 }
 0x41f   :  { %v2814_v63 = vunpack.i.l.bf16 %v2813_v28  ;;  %v2815_v57 = vunpack.i.h.bf16 %v2813_v28 }
 0x420   :  { %v3960_v23 = vadd.f32 %v2041_v9, %v3904_v11 }
 0x421   :  { %v1856_v38 = vpop.f32.mrf.mxu2 }
 0x422   :  { %v1880_v2 = vadd.f32 %v1856_v38, %v1799_v47  ;;  %v2066_v47 = vld [vmem:[#allocation3 + $0x398] sm:$0xff] }
 0x424   :  { %v1896_v45 = vmax.f32 %v1880_v2, 0.0 }
 0x426   :  { %v2042_v49 = vmul.f32 %v2799_v5, %v1896_v45  ;;  %2131 = vmatmul.f32.gmra.mxu3 %v1896_v45 }
 0x428   :  { %v3963_v3 = vadd.f32 %v2042_v49, %v3911_v8  ;;  %v2067_v49 = vld [vmem:[#allocation3 + $0x3a0] sm:$0xff] }
 0x429   :  { %v1859_v50 = vpop.f32.mrf.mxu2 }
 0x42a   :  { %v1881_v26 = vadd.f32 %v1859_v50, %v1800_v4 }
 0x42c   :  { %v1897_v10 = vmax.f32 %v1881_v26, 0.0  ;;  %v2818_v26 = vpop.permute.xlu1 %2817 }
 0x42d   :  { %v2820_v46 = vunpack.i.h.bf16 %v2818_v26 }
 0x42e   :  { %v2043_v15 = vmul.f32 %v2800_v35, %v1897_v10  ;;  %2134 = vmatmul.f32.gmra.mxu3 %v1897_v10  ;;  %v2819_v35 = vunpack.i.l.bf16 %v2818_v26 }
 0x430   :  { %v3966_v11 = vadd.f32 %v2043_v15, %v3918_v54 }
 0x431   :  { %v1862_v16 = vpop.f32.mrf.mxu2 }
 0x432   :  { %v1882_v14 = vadd.f32 %v1862_v16, %v1801_v37  ;;  %v2068_v37 = vld [vmem:[#allocation3 + $0x3a8] sm:$0xff] }
 0x434   :  { %v1898_v22 = vmax.f32 %v1882_v14, 0.0 }
 0x436   :  { %v2044_v41 = vmul.f32 %v2804_v33, %v1898_v22  ;;  %2137 = vmatmul.f32.gmra.mxu3 %v1898_v22 }
 0x438   :  { %v3969_v8 = vadd.f32 %v2044_v41, %v3921_v25  ;;  %v2069_v41 = vld [vmem:[#allocation3 + $0x3b0] sm:$0xff] }
 0x439   :  { %v1865_v60 = vpop.f32.mrf.mxu2 }
 0x43a   :  { %v1883_v20 = vadd.f32 %v1865_v60, %v1802_v18 }
 0x43c   :  { %v1899_v56 = vmax.f32 %v1883_v20, 0.0  ;;  %v2823_v20 = vpop.permute.xlu2 %2822 }
 0x43d   :  { %v2825_v53 = vunpack.i.h.bf16 %v2823_v20 }
 0x43e   :  { %v2045_v62 = vmul.f32 %v2805_v32, %v1899_v56  ;;  %2140 = vmatmul.f32.gmra.mxu3 %v1899_v56  ;;  %v2824_v32 = vunpack.i.l.bf16 %v2823_v20 }
 0x440   :  { %v3972_v54 = vadd.f32 %v2045_v62, %v3924_v51 }
 0x449   :  { %v2096_v58 = vpop.f32.mrf.mxu3 }
 0x44a   :  { %v2144_v59 = vadd.f32 %v2096_v58, %v2063_v24  ;;  %v2070_v24 = vld [vmem:[#allocation3 + $0x3b8] sm:$0xff] }
 0x44c   :  { %v2160_v17 = vmax.f32 %v2144_v59, 0.0 }
 0x44e   :  { %v2306_v1 = vmul.f32 %v2809_v34, %v2160_v17 }
 0x450   :  { %v2322_v25 = vadd.f32 %v2306_v1, %v3927_v19  ;;  %v2071_v1 = vld [vmem:[#allocation3 + $0x3c0] sm:$0xff] }
 0x451   :  { %v2099_v30 = vpop.f32.mrf.mxu3 }
 0x452   :  { %2354 = vst [vmem:[#allocation6] sm:$0xff] %v2322_v25  ;;  %v2145_v12 = vadd.f32 %v2099_v30, %v2064_v61  ;;  %v2828_v30 = vpop.permute.xlu0 %2827 }
 0x454   :  { %v2161_v55 = vmax.f32 %v2145_v12, 0.0  ;;  %v2829_v12 = vunpack.i.l.bf16 %v2828_v30 }
 0x456   :  { %v2307_v7 = vmul.f32 %v2810_v40, %v2161_v55 }
 0x458   :  { %v2323_v51 = vadd.f32 %v2307_v7, %v3930_v13  ;;  %v2072_v7 = vld [vmem:[#allocation3 + $0x3c8] sm:$0xff] }
 0x459   :  { %v2102_v43 = vpop.f32.mrf.mxu3 }
 0x45a   :  { %2355 = vst [vmem:[#allocation6 + $0x8] sm:$0xff] %v2323_v51  ;;  %v2146_v21 = vadd.f32 %v2102_v43, %v2065_v36  ;;  %v2830_v43 = vunpack.i.h.bf16 %v2828_v30 }
 0x45c   :  { %v2162_v29 = vmax.f32 %v2146_v21, 0.0 }
 0x45e   :  { %v2308_v9 = vmul.f32 %v2814_v63, %v2162_v29  ;;  %v2073_v63 = vld [vmem:[#allocation3 + $0x3d0] sm:$0xff] }
 0x460   :  { %v2324_v38 = vadd.f32 %v2308_v9, %v3933_v0 }
 0x461   :  { %v2105_v19 = vpop.f32.mrf.mxu3 }
 0x462   :  { %2356 = vst [vmem:[#allocation6 + $0x10] sm:$0xff] %v2324_v38  ;;  %v2147_v2 = vadd.f32 %v2105_v19, %v2066_v47 }
 0x464   :  { %v2163_v5 = vmax.f32 %v2147_v2, 0.0 }
 0x466   :  { %v2309_v45 = vmul.f32 %v2815_v57, %v2163_v5  ;;  %v2074_v57 = vld [vmem:[#allocation3 + $0x3d8] sm:$0xff] }
 0x468   :  { %v2325_v4 = vadd.f32 %v2309_v45, %v3936_v52 }
 0x469   :  { %v2108_v13 = vpop.f32.mrf.mxu3 }
 0x46a   :  { %2357 = vst [vmem:[#allocation6 + $0x18] sm:$0xff] %v2325_v4  ;;  %v2148_v50 = vadd.f32 %v2108_v13, %v2067_v49 }
 0x46c   :  { %v2164_v10 = vmax.f32 %v2148_v50, 0.0  ;;  %v2075_v50 = vld [vmem:[#allocation3 + $0x3e0] sm:$0xff] }
 0x46e   :  { %v2310_v15 = vmul.f32 %v2819_v35, %v2164_v10 }
 0x470   :  { %v2326_v16 = vadd.f32 %v2310_v15, %v3939_v39 }
 0x471   :  { %v2111_v0 = vpop.f32.mrf.mxu3 }
 0x472   :  { %2358 = vst [vmem:[#allocation6 + $0x20] sm:$0xff] %v2326_v16  ;;  %v2149_v14 = vadd.f32 %v2111_v0, %v2068_v37  ;;  %v2076_v0 = vld [vmem:[#allocation3 + $0x3e8] sm:$0xff] }
 0x474   :  { %v2165_v33 = vmax.f32 %v2149_v14, 0.0 }
 0x476   :  { %v2311_v22 = vmul.f32 %v2820_v46, %v2165_v33 }
 0x478   :  { %v2327_v18 = vadd.f32 %v2311_v22, %v3942_v6 }
 0x479   :  { %v2114_v52 = vpop.f32.mrf.mxu3 }
 0x47a   :  { %2359 = vst [vmem:[#allocation6 + $0x28] sm:$0xff] %v2327_v18  ;;  %v2150_v60 = vadd.f32 %v2114_v52, %v2069_v41  ;;  %v2077_v18 = vld [vmem:[#allocation3 + $0x3f0] sm:$0xff] }
 0x47c   :  { %v2166_v56 = vmax.f32 %v2150_v60, 0.0 }
 0x47e   :  { %v2312_v62 = vmul.f32 %v2824_v32, %v2166_v56 }
 0x480   :  { %v2328_v58 = vadd.f32 %v2312_v62, %v3945_v31 }
 0x481   :  { %v2117_v39 = vpop.f32.mrf.mxu3 }
 0x482   :  { %2360 = vst [vmem:[#allocation6 + $0x30] sm:$0xff] %v2328_v58  ;;  %v2151_v59 = vadd.f32 %v2117_v39, %v2070_v24  ;;  %v2078_v24 = vld [vmem:[#allocation3 + $0x3f8] sm:$0xff] }
 0x484   :  { %v2167_v34 = vmax.f32 %v2151_v59, 0.0 }
 0x486   :  { %v2313_v17 = vmul.f32 %v2825_v53, %v2167_v34 }
 0x488   :  { %v2329_v61 = vadd.f32 %v2313_v17, %v3948_v44  ;;  %v2833_v44 = vpop.permute.xlu1 %2832 }
 0x489   :  { %v2120_v6 = vpop.f32.mrf.mxu3  ;;  %v2834_v38 = vunpack.i.l.bf16 %v2833_v44  ;;  %v2835_v49 = vunpack.i.h.bf16 %v2833_v44 }
 0x48a   :  { %2361 = vst [vmem:[#allocation6 + $0x38] sm:$0xff] %v2329_v61  ;;  %v2152_v25 = vadd.f32 %v2120_v6, %v2071_v1 }
 0x48c   :  { %v2168_v40 = vmax.f32 %v2152_v25, 0.0 }
 0x48e   :  { %v2314_v55 = vmul.f32 %v2829_v12, %v2168_v40 }
 0x490   :  { %v2330_v36 = vadd.f32 %v2314_v55, %v3951_v48 }
 0x491   :  { %v2123_v31 = vpop.f32.mrf.mxu3 }
 0x492   :  { %2362 = vst [vmem:[#allocation6 + $0x40] sm:$0xff] %v2330_v36  ;;  %v2153_v51 = vadd.f32 %v2123_v31, %v2072_v7 }
 0x494   :  { %v2169_v21 = vmax.f32 %v2153_v51, 0.0 }
 0x496   :  { %v2315_v28 = vmul.f32 %v2830_v43, %v2169_v21 }
 0x498   :  { %v2331_v29 = vadd.f32 %v2315_v28, %v3954_v42  ;;  %v2838_v42 = vpop.permute.xlu2 %2837 }
 0x499   :  { %v2126_v9 = vpop.f32.mrf.mxu3  ;;  %v2839_v15 = vunpack.i.l.bf16 %v2838_v42  ;;  %v2840_v33 = vunpack.i.h.bf16 %v2838_v42 }
 0x49a   :  { %2363 = vst [vmem:[#allocation6 + $0x48] sm:$0xff] %v2331_v29  ;;  %v2154_v47 = vadd.f32 %v2126_v9, %v2073_v63 }
 0x49c   :  { %v2170_v19 = vmax.f32 %v2154_v47, 0.0 }
 0x49e   :  { %v2316_v2 = vmul.f32 %v2834_v38, %v2170_v19 }
 0x4a0   :  { %v2332_v5 = vadd.f32 %v2316_v2, %v3957_v27 }
 0x4a1   :  { %v2129_v48 = vpop.f32.mrf.mxu3 }
 0x4a2   :  { %2364 = vst [vmem:[#allocation6 + $0x50] sm:$0xff] %v2332_v5  ;;  %v2155_v45 = vadd.f32 %v2129_v48, %v2074_v57 }
 0x4a4   :  { %v2171_v4 = vmax.f32 %v2155_v45, 0.0 }
 0x4a6   :  { %v2317_v13 = vmul.f32 %v2835_v49, %v2171_v4 }
 0x4a8   :  { %v2333_v26 = vadd.f32 %v2317_v13, %v3960_v23  ;;  %v2843_v23 = vpop.permute.xlu0 %2842 }
 0x4a9   :  { %v2132_v35 = vpop.f32.mrf.mxu3  ;;  %v2844_v32 = vunpack.i.l.bf16 %v2843_v23  ;;  %v2845_v59 = vunpack.i.h.bf16 %v2843_v23 }
 0x4aa   :  { %2365 = vst [vmem:[#allocation6 + $0x58] sm:$0xff] %v2333_v26  ;;  %v2156_v10 = vadd.f32 %v2132_v35, %v2075_v50 }
 0x4ac   :  { %v2172_v37 = vmax.f32 %v2156_v10, 0.0 }
 0x4ae   :  { %v2318_v16 = vmul.f32 %v2839_v15, %v2172_v37 }
 0x4b0   :  { %v2334_v14 = vadd.f32 %v2318_v16, %v3963_v3 }
 0x4b1   :  { %v2135_v27 = vpop.f32.mrf.mxu3 }
 0x4b2   :  { %2366 = vst [vmem:[#allocation6 + $0x60] sm:$0xff] %v2334_v14  ;;  %v2157_v46 = vadd.f32 %v2135_v27, %v2076_v0 }
 0x4b4   :  { %v2173_v22 = vmax.f32 %v2157_v46, 0.0 }
 0x4b6   :  { %v2319_v41 = vmul.f32 %v2840_v33, %v2173_v22 }
 0x4b8   :  { %v2335_v52 = vadd.f32 %v2319_v41, %v3966_v11 }
 0x4b9   :  { %v2138_v60 = vpop.f32.mrf.mxu3 }
 0x4ba   :  { %2367 = vst [vmem:[#allocation6 + $0x68] sm:$0xff] %v2335_v52  ;;  %v2158_v20 = vadd.f32 %v2138_v60, %v2077_v18 }
 0x4bc   :  { %v2174_v56 = vmax.f32 %v2158_v20, 0.0 }
 0x4be   :  { %v2320_v62 = vmul.f32 %v2844_v32, %v2174_v56 }
 0x4c0   :  { %v2336_v58 = vadd.f32 %v2320_v62, %v3969_v8 }
 0x4c1   :  { %v2141_v3 = vpop.f32.mrf.mxu3 }
 0x4c2   :  { %2368 = vst [vmem:[#allocation6 + $0x70] sm:$0xff] %v2336_v58  ;;  %v2159_v39 = vadd.f32 %v2141_v3, %v2078_v24 }
 0x4c4   :  { %v2175_v53 = vmax.f32 %v2159_v39, 0.0 }
 0x4c6   :  { %v2321_v11 = vmul.f32 %v2845_v59, %v2175_v53 }
 0x4c8   :  { %v2337_v34 = vadd.f32 %v2321_v11, %v3972_v54 }
 0x4ca   :  { %2369 = vst [vmem:[#allocation6 + $0x78] sm:$0xff] %v2337_v34 }
 0x4cb   :  { %2382 = dma.vmem_to_hbm [thread:$0]  %s2375_s4, 2048, %s2377_s6, [#allocation5], %s2927_s17, %s2927_s17, %s2928_s18  }
 0x4cc   :  { %2924 = dma.done.wait [#allocation5], 2048  }
 0x4cd   :  { %2925 = vsyncadd [#allocation5], 4294965248 }
 0x4ce   :  { %2387 = vsyncpa [#allocation4], 1 }
 0x4cf   :  { %2388 = vsyncpa [#allocation5], 1 }

</bundles_post_ra>
